<compile_context>
chip_gen: v7x
topology: tpu7x:2x2x1
jax: 0.10.0
libtpu: 0.0.40
codegen_flags: <defaults>
</compile_context>

<pallas_src>
import numpy as np
import jax
import jax.numpy as jnp
from jax import lax
from jax.experimental import pallas as pl
from jax.experimental.pallas import tpu as pltpu

# --------------------------------------------------------------------------
# Architecture constants (synthetic frozen encoders, as in the PyTorch spec:
#   encoder = Conv(Cin->8,3,s2,p1)+ReLU, Conv(8->16,3,s2,p1)+ReLU ; fc_enc = Linear(256,128))
# --------------------------------------------------------------------------
IMG_HW = 16
OBS_CIN, PATH_CIN = 4, 2
DRONE_INFO_DIM = 46
DI_IN = 48                            # drone_info padded 46 -> 48 (sublane aligned)
OBS_K = OBS_CIN * IMG_HW * IMG_HW     # 1024
PATH_K = PATH_CIN * IMG_HW * IMG_HW   # 512
N1 = 8 * 8 * 8                        # conv1 out, NHWC-flat (8x8 spatial, 8 ch)  = 512
N2 = 4 * 4 * 16                       # conv2 out, NHWC-flat (4x4 spatial, 16 ch) = 256
LAT = 128                             # encoder latent (fc_enc output)

# Packed-slab row layout (matches init_params; architecture-fixed):
#   w512 (1536,512): [   0,1024) obs conv1-as-matrix | [1024,1536) path conv1-as-matrix
#   w256 (1072,256): [   0, 512) obs conv2 | [ 512,1024) path conv2 | [1024,1072) di_w1
#   w128 (1408,128): [   0, 256) obs fc  | [ 256, 512) path fc | [ 512, 768) di_w2
#                    [ 768,1024) op_w1   | [1024,1280) ip_w1   | [1280,1408) rp_w1
#   w64  ( 384, 64): [   0, 128) op_w2   | [ 128, 256) ip_w2   | [ 256, 384) rp_w2
#   bias (  16,512) f32: row i holds the i-th bias vector (see init_params row list).


# --------------------------------------------------------------------------
# Fused Pallas kernel: both frozen encoders + full head, one batch tile.
# --------------------------------------------------------------------------
def _fused_kernel(obs_ref, path_ref, di_ref,
                  w512_ref, w256_ref, w128_ref, w64_ref, bias_ref, out_ref):
    def mm(x, w):  # MXU matmul: bf16 operands, f32 accumulation
        return jnp.dot(x.astype(jnp.bfloat16), w, preferred_element_type=jnp.float32)

    def bias(i, n):  # (1, n) f32 bias row from the packed bias slab
        return bias_ref[i:i + 1, :n]

    def relu(v):
        return jnp.maximum(v, 0.0)

    # ---- obstacle encoder: conv1+ReLU -> conv2+ReLU -> fc_enc (conv-as-matrix) ----
    h = relu(mm(obs_ref[...], w512_ref[0:1024, :]) + bias(0, 512))
    h = relu(mm(h, w256_ref[0:512, :]) + bias(2, 256))
    obs_f = mm(h, w128_ref[0:256, :]) + bias(4, 128)                       # (B, 128)

    # ---- path encoder ----
    h = relu(mm(path_ref[...], w512_ref[1024:1536, :]) + bias(1, 512))
    h = relu(mm(h, w256_ref[512:1024, :]) + bias(3, 256))
    path_f = mm(h, w128_ref[256:512, :]) + bias(5, 128)                    # (B, 128)

    # ---- drone_info_dim: Linear(46->256) ReLU Linear(256->128) ----
    h = relu(mm(di_ref[...], w256_ref[1024:1072, :]) + bias(6, 256))
    drone_f = mm(h, w128_ref[512:768, :]) + bias(7, 128)                   # (B, 128)

    # ---- obs_path_encoder: Linear(256->128)[BN folded] ReLU (Dropout=id) Linear(128->64) ReLU
    h = relu(mm(jnp.concatenate([obs_f, path_f], axis=-1),
                w128_ref[768:1024, :]) + bias(8, 128))
    obs_path = relu(mm(h, w64_ref[0:128, :]) + bias(9, 64))                # (B, 64)

    # ---- info_path_encoder: same structure on cat([drone_f, path_f]) ----
    h = relu(mm(jnp.concatenate([drone_f, path_f], axis=-1),
                w128_ref[1024:1280, :]) + bias(10, 128))
    info_path = relu(mm(h, w64_ref[128:256, :]) + bias(11, 64))            # (B, 64)

    # ---- reward_predictor: Linear(128->128) ReLU Linear(128->64) ReLU Linear(64->1) Sigmoid
    h = relu(mm(jnp.concatenate([obs_path, info_path], axis=-1),
                w128_ref[1280:1408, :]) + bias(12, 128))
    h = relu(mm(h, w64_ref[256:384, :]) + bias(13, 64))
    # Final 64->1 on the VPU/XLU (broadcast multiply + lane reduction), not the MXU.
    logit = jnp.sum(h * bias(14, 64), axis=-1, keepdims=True) + bias(15, 1)
    out_ref[...] = jax.nn.sigmoid(logit).astype(out_ref.dtype)


# --------------------------------------------------------------------------
# pallas_call wrapper (single fused call, batch-tiled "parallel" grid)
# --------------------------------------------------------------------------
def reward_model_forward(params, drone_info, obs, path, *, batch_tile=256):
    B = drone_info.shape[0]
    obs_flat = obs.reshape(B, OBS_K)          # free relayout: row-major NCHW flatten
    path_flat = path.reshape(B, PATH_K)
    di = jnp.pad(drone_info, ((0, 0), (0, DI_IN - drone_info.shape[1])))   # 46 -> 48

    if B <= batch_tile:
        tb = B                                # full-extent batch block
    else:
        tb = batch_tile
        assert B % tb == 0, "pad B to a multiple of batch_tile for large batches"
    grid = (B // tb,)

    def act(k):                               # batch-tiled activation specs
        return pl.BlockSpec((tb, k), lambda i: (i, 0))

    def res(arr):                             # VMEM-resident parameter slabs
        return pl.BlockSpec(arr.shape, lambda i: (0, 0))

    return pl.pallas_call(
        _fused_kernel,
        out_shape=jax.ShapeDtypeStruct((B, 1), jnp.float32),
        grid=grid,
        in_specs=[
            act(OBS_K), act(PATH_K), act(DI_IN),
            res(params["w512"]), res(params["w256"]),
            res(params["w128"]), res(params["w64"]), res(params["bias"]),
        ],
        out_specs=pl.BlockSpec((tb, 1), lambda i: (i, 0)),
        compiler_params=pltpu.CompilerParams(
            dimension_semantics=("parallel",),          # batch tiles across TCs (v7x)
            vmem_limit_bytes=32 * 1024 * 1024),
    )(obs_flat, path_flat, di,
      params["w512"], params["w256"], params["w128"], params["w64"], params["bias"])


# --------------------------------------------------------------------------
# Deterministic parameter init (PyTorch-style uniform(-1/sqrt(fan_in), +)) + packing
# --------------------------------------------------------------------------
def _init_linear(key, fan_in, fan_out):
    kw, kb = jax.random.split(key)
    bound = 1.0 / float(fan_in) ** 0.5
    w = jax.random.uniform(kw, (fan_in, fan_out), jnp.float32, -bound, bound)
    b = jax.random.uniform(kb, (fan_out,), jnp.float32, -bound, bound)
    return np.asarray(w), np.asarray(b)


def _init_conv(key, cout, cin, k=3):
    kw, kb = jax.random.split(key)
    fan_in = cin * k * k
    bound = 1.0 / float(fan_in) ** 0.5
    w = jax.random.uniform(kw, (cout, cin, k, k), jnp.float32, -bound, bound)
    b = jax.random.uniform(kb, (cout,), jnp.float32, -bound, bound)
    return np.asarray(w), np.asarray(b)


def _conv_as_matrix(w_oihw, b, H, W, stride, pad, input_layout):
    """Fold zero-pad + im2col gather + conv weights into one dense matrix.

    Rows index the flattened input ('NCHW' or 'NHWC' order); columns index the
    NHWC-flattened conv output ((oh*Wo + ow)*Cout + co).
    """
    w_np = np.asarray(w_oihw, np.float32)
    Cout, Cin, kh, kw = w_np.shape
    Ho = (H + 2 * pad - kh) // stride + 1
    Wo = (W + 2 * pad - kw) // stride + 1
    M = np.zeros((Cin * H * W, Ho * Wo * Cout), np.float32)
    for oh in range(Ho):
        for ow in range(Wo):
            col = (oh * Wo + ow) * Cout
            for di in range(kh):
                h = oh * stride + di - pad
                if not 0 <= h < H:
                    continue
                for dj in range(kw):
                    w_ = ow * stride + dj - pad
                    if not 0 <= w_ < W:
                        continue
                    for ci in range(Cin):
                        if input_layout == "NCHW":
                            row = (ci * H + h) * W + w_
                        else:  # NHWC
                            row = (h * W + w_) * Cin + ci
                        M[row, col:col + Cout] = w_np[:, ci, di, dj]
    b_exp = np.tile(np.asarray(b, np.float32), Ho * Wo)
    return M, b_exp, (Ho, Wo, Cout)


def _build_encoder_mats(c1, c2, fc):
    """Encoder -> (M1, b1, M2, b2, Wfc, bfc): 3 dense matmuls with NHWC-ordered columns."""
    (c1w, c1b), (c2w, c2b), (fcw, fcb) = c1, c2, fc
    M1, b1, (H1, W1, _) = _conv_as_matrix(c1w, c1b, IMG_HW, IMG_HW, 2, 1, "NCHW")
    M2, b2, (H2, W2, C2) = _conv_as_matrix(c2w, c2b, H1, W1, 2, 1, "NHWC")
    # fc_enc expects torch.flatten of NCHW; conv2 output columns are NHWC-flattened,
    # so permute the fc weight rows once: (C,H,W) -> (H,W,C).
    nf = fcw.shape[1]
    wfc = fcw.reshape(C2, H2, W2, nf).transpose(1, 2, 0, 3).reshape(H2 * W2 * C2, nf)
    return M1, b1, M2, b2, wfc, np.asarray(fcb, np.float32)


def init_params(key):
    ks = jax.random.split(key, 15)

    # Frozen synthetic encoders.
    obs_c1 = _init_conv(ks[0], 8, OBS_CIN)
    obs_c2 = _init_conv(ks[1], 16, 8)
    obs_fc = _init_linear(ks[2], N2, LAT)
    path_c1 = _init_conv(ks[3], 8, PATH_CIN)
    path_c2 = _init_conv(ks[4], 16, 8)
    path_fc = _init_linear(ks[5], N2, LAT)

    # Head (trainable) layers.
    di_w1, di_b1 = _init_linear(ks[6], DRONE_INFO_DIM, 256)
    di_w2, di_b2 = _init_linear(ks[7], 256, 128)
    op_w1, op_b1 = _init_linear(ks[8], 256, 128)
    op_w2, op_b2 = _init_linear(ks[9], 128, 64)
    ip_w1, ip_b1 = _init_linear(ks[10], 256, 128)
    ip_w2, ip_b2 = _init_linear(ks[11], 128, 64)
    rp_w1, rp_b1 = _init_linear(ks[12], 128, 128)
    rp_w2, rp_b2 = _init_linear(ks[13], 128, 64)
    rp_w3, rp_b3 = _init_linear(ks[14], 64, 1)

    # BatchNorm1d(128) eval-mode defaults (gamma=1, beta=0, mean=0, var=1).
    bn_gamma = np.ones(128, np.float32)
    bn_beta = np.zeros(128, np.float32)
    bn_mean = np.zeros(128, np.float32)
    bn_var = np.ones(128, np.float32)
    scale = bn_gamma / np.sqrt(bn_var + 1e-5)
    shift = bn_beta - bn_mean * scale

    raw = dict(
        obs_enc=dict(c1w=obs_c1[0], c1b=obs_c1[1], c2w=obs_c2[0], c2b=obs_c2[1],
                     fcw=obs_fc[0], fcb=obs_fc[1]),
        path_enc=dict(c1w=path_c1[0], c1b=path_c1[1], c2w=path_c2[0], c2b=path_c2[1],
                      fcw=path_fc[0], fcb=path_fc[1]),
        di_w1=di_w1, di_b1=di_b1, di_w2=di_w2, di_b2=di_b2,
        op_w1=op_w1, op_b1=op_b1, op_w2=op_w2, op_b2=op_b2,
        ip_w1=ip_w1, ip_b1=ip_b1, ip_w2=ip_w2, ip_b2=ip_b2,
        rp_w1=rp_w1, rp_b1=rp_b1, rp_w2=rp_w2, rp_b2=rp_b2,
        rp_w3=rp_w3, rp_b3=rp_b3,
        bn_gamma=bn_gamma, bn_beta=bn_beta, bn_mean=bn_mean, bn_var=bn_var,
    )

    # Fold encoders to dense matrices (conv-as-matrix, NHWC-chained, no zero-row padding).
    oM1, ob1, oM2, ob2, owfc, obfc = _build_encoder_mats(obs_c1, obs_c2, obs_fc)
    pM1, pb1, pM2, pb2, pwfc, pbfc = _build_encoder_mats(path_c1, path_c2, path_fc)

    # Fold eval-mode BatchNorm into the first Linear of obs_path / info_path encoders.
    op_w1f = op_w1 * scale[None, :]
    op_b1f = op_b1 * scale + shift
    ip_w1f = ip_w1 * scale[None, :]
    ip_b1f = ip_b1 * scale + shift

    # Pack weights into bf16 slabs grouped by output lane width (see layout comment above).
    di_w1p = np.pad(di_w1, ((0, DI_IN - DRONE_INFO_DIM), (0, 0)))          # 46 -> 48 rows
    w512 = np.concatenate([oM1, pM1], axis=0)                              # (1536, 512)
    w256 = np.concatenate([oM2, pM2, di_w1p], axis=0)                      # (1072, 256)
    w128 = np.concatenate([owfc, pwfc, di_w2, op_w1f, ip_w1f, rp_w1], axis=0)  # (1408,128)
    w64 = np.concatenate([op_w2, ip_w2, rp_w2], axis=0)                    # (384, 64)

    # Pack all biases (plus the final 64->1 weight row) into one f32 slab -> one DMA.
    bias = np.zeros((16, 512), np.float32)
    bias_rows = [ob1, pb1, ob2, pb2, obfc, pbfc, di_b1, di_b2,
                 op_b1f, op_b2, ip_b1f, ip_b2, rp_b1, rp_b2, rp_w3[:, 0], rp_b3]
    for i, v in enumerate(bias_rows):
        v = np.asarray(v, np.float32).reshape(-1)
        bias[i, :v.shape[0]] = v

    packed = dict(
        w512=jnp.asarray(w512, jnp.bfloat16),
        w256=jnp.asarray(w256, jnp.bfloat16),
        w128=jnp.asarray(w128, jnp.bfloat16),
        w64=jnp.asarray(w64, jnp.bfloat16),
        bias=jnp.asarray(bias, jnp.float32),
    )
    return packed, raw


# --------------------------------------------------------------------------
# Pure-JAX f32 reference (validates conv-as-matrix folding + bf16 numerics)
# --------------------------------------------------------------------------
def reference_forward(raw, drone_info, obs, path):
    def conv(x, w, b):
        y = lax.conv_general_dilated(x, w, (2, 2), [(1, 1), (1, 1)],
                                     dimension_numbers=("NCHW", "OIHW", "NCHW"))
        return y + b[None, :, None, None]

    def encoder(x, p):
        h = jnp.maximum(conv(x, p["c1w"], p["c1b"]), 0.0)
        h = jnp.maximum(conv(h, p["c2w"], p["c2b"]), 0.0)
        h = h.reshape(h.shape[0], -1)                       # torch.flatten (NCHW)
        return h @ p["fcw"] + p["fcb"]

    def bn(x):
        return ((x - raw["bn_mean"]) / jnp.sqrt(raw["bn_var"] + 1e-5)
                * raw["bn_gamma"] + raw["bn_beta"])

    obs_f = encoder(obs, raw["obs_enc"])
    path_f = encoder(path, raw["path_enc"])

    h = jnp.maximum(drone_info @ raw["di_w1"] + raw["di_b1"], 0.0)
    drone_f = h @ raw["di_w2"] + raw["di_b2"]

    h = jnp.concatenate([obs_f, path_f], -1) @ raw["op_w1"] + raw["op_b1"]
    h = jnp.maximum(bn(h), 0.0)                              # Dropout = identity (eval)
    obs_path = jnp.maximum(h @ raw["op_w2"] + raw["op_b2"], 0.0)

    h = jnp.concatenate([drone_f, path_f], -1) @ raw["ip_w1"] + raw["ip_b1"]
    h = jnp.maximum(bn(h), 0.0)
    info_path = jnp.maximum(h @ raw["ip_w2"] + raw["ip_b2"], 0.0)

    h = jnp.concatenate([obs_path, info_path], -1)
    h = jnp.maximum(h @ raw["rp_w1"] + raw["rp_b1"], 0.0)
    h = jnp.maximum(h @ raw["rp_w2"] + raw["rp_b2"], 0.0)
    return jax.nn.sigmoid(h @ raw["rp_w3"] + raw["rp_b3"])


if __name__ == "__main__":
    key = jax.random.PRNGKey(0)
    kparams, kdi, kobs, kpath = jax.random.split(key, 4)
    params, raw = init_params(kparams)

    B = 2
    drone_info = jax.random.normal(kdi, (B, DRONE_INFO_DIM), jnp.float32)
    obs = jax.random.normal(kobs, (B, OBS_CIN, IMG_HW, IMG_HW), jnp.float32)    # NCHW
    path = jax.random.normal(kpath, (B, PATH_CIN, IMG_HW, IMG_HW), jnp.float32)  # NCHW

    reward = jax.jit(reward_model_forward)(params, drone_info, obs, path)
    reward = jax.block_until_ready(reward)

    assert reward.shape == (B, 1), reward.shape
    assert reward.dtype == jnp.float32
    assert bool(jnp.all(jnp.isfinite(reward)))
    assert bool(jnp.all((reward >= 0.0) & (reward <= 1.0)))  # sigmoid range

    # Numerical parity vs the pure-JAX f32 reference (tolerance covers bf16 weights/acts).
    ref = reference_forward(raw, drone_info, obs, path)
    max_err = float(jnp.max(jnp.abs(reward - ref)))
    assert max_err < 2e-2, f"mismatch vs reference: max abs err = {max_err}"

    print("KERNEL_OK")
</pallas_src>

<mosaic_0001>
module attributes {stable_mosaic.version = 11 : i64} {
  func.func @_fused_kernel(%arg0: i32, %arg1: memref<2x1024xf32, #tpu.memory_space<vmem>>, %arg2: memref<2x512xf32, #tpu.memory_space<vmem>>, %arg3: memref<2x48xf32, #tpu.memory_space<vmem>>, %arg4: memref<1536x512xbf16, #tpu.memory_space<vmem>>, %arg5: memref<1072x256xbf16, #tpu.memory_space<vmem>>, %arg6: memref<1408x128xbf16, #tpu.memory_space<vmem>>, %arg7: memref<384x64xbf16, #tpu.memory_space<vmem>>, %arg8: memref<16x512xf32, #tpu.memory_space<vmem>>, %arg9: memref<2x1xf32, #tpu.memory_space<vmem>>) attributes {dimension_semantics = [#tpu.dimension_semantics<parallel>], iteration_bounds = array<i64: 1>, scalar_prefetch = 0 : i64, scratch_operands = 0 : i64, tpu.core_type = #tpu.core_type<tc>, window_params = [{transform_indices = @transform_0, window_bounds = array<i64: 2, 1024>}, {transform_indices = @transform_1, window_bounds = array<i64: 2, 512>}, {transform_indices = @transform_2, window_bounds = array<i64: 2, 48>}, {pipeline_mode = #tpu.pipeline_mode<synchronous>, transform_indices = @transform_3, window_bounds = array<i64: 1536, 512>}, {pipeline_mode = #tpu.pipeline_mode<synchronous>, transform_indices = @transform_4, window_bounds = array<i64: 1072, 256>}, {pipeline_mode = #tpu.pipeline_mode<synchronous>, transform_indices = @transform_5, window_bounds = array<i64: 1408, 128>}, {pipeline_mode = #tpu.pipeline_mode<synchronous>, transform_indices = @transform_6, window_bounds = array<i64: 384, 64>}, {pipeline_mode = #tpu.pipeline_mode<synchronous>, transform_indices = @transform_7, window_bounds = array<i64: 16, 512>}, {transform_indices = @transform_8, window_bounds = array<i64: 2, 1>}]} {
    %c0 = arith.constant 0 : index
    %c0_0 = arith.constant 0 : index
    %0 = vector.load %arg1[%c0, %c0_0] : memref<2x1024xf32, #tpu.memory_space<vmem>>, vector<2x1024xf32>
    %c0_1 = arith.constant 0 : index
    %c0_2 = arith.constant 0 : index
    %1 = vector.load %arg4[%c0_1, %c0_2] : memref<1536x512xbf16, #tpu.memory_space<vmem>>, vector<1024x512xbf16>
    %2 = arith.truncf %0 : vector<2x1024xf32> to vector<2x1024xbf16>
    %cst = arith.constant dense<0.000000e+00> : vector<2x512xf32>
    %3 = tpu.matmul %2, %1, %cst {dimension_numbers = #tpu.dot_dimension_numbers<[1], [0], [0], [1], [0, 0, 1, 1], [], []>} : vector<2x1024xbf16>, vector<1024x512xbf16>, vector<2x512xf32> -> vector<2x512xf32>
    %c0_3 = arith.constant 0 : index
    %c0_4 = arith.constant 0 : index
    %4 = vector.load %arg8[%c0_3, %c0_4] : memref<16x512xf32, #tpu.memory_space<vmem>>, vector<1x512xf32>
    %5 = vector.broadcast %4 : vector<1x512xf32> to vector<2x512xf32>
    %6 = arith.addf %3, %5 : vector<2x512xf32>
    %cst_5 = arith.constant 0.000000e+00 : f32
    %7 = vector.broadcast %cst_5 : f32 to vector<2x512xf32>
    %8 = arith.maximumf %6, %7 : vector<2x512xf32>
    %c0_6 = arith.constant 0 : index
    %c0_7 = arith.constant 0 : index
    %9 = vector.load %arg5[%c0_6, %c0_7] : memref<1072x256xbf16, #tpu.memory_space<vmem>>, vector<512x256xbf16>
    %10 = arith.truncf %8 : vector<2x512xf32> to vector<2x512xbf16>
    %cst_8 = arith.constant dense<0.000000e+00> : vector<2x256xf32>
    %11 = tpu.matmul %10, %9, %cst_8 {dimension_numbers = #tpu.dot_dimension_numbers<[1], [0], [0], [1], [0, 0, 1, 1], [], []>} : vector<2x512xbf16>, vector<512x256xbf16>, vector<2x256xf32> -> vector<2x256xf32>
    %c2 = arith.constant 2 : index
    %c0_9 = arith.constant 0 : index
    %12 = vector.load %arg8[%c2, %c0_9] : memref<16x512xf32, #tpu.memory_space<vmem>>, vector<1x256xf32>
    %13 = vector.broadcast %12 : vector<1x256xf32> to vector<2x256xf32>
    %14 = arith.addf %11, %13 : vector<2x256xf32>
    %cst_10 = arith.constant 0.000000e+00 : f32
    %15 = vector.broadcast %cst_10 : f32 to vector<2x256xf32>
    %16 = arith.maximumf %14, %15 : vector<2x256xf32>
    %c0_11 = arith.constant 0 : index
    %c0_12 = arith.constant 0 : index
    %17 = vector.load %arg6[%c0_11, %c0_12] : memref<1408x128xbf16, #tpu.memory_space<vmem>>, vector<256x128xbf16>
    %18 = arith.truncf %16 : vector<2x256xf32> to vector<2x256xbf16>
    %cst_13 = arith.constant dense<0.000000e+00> : vector<2x128xf32>
    %19 = tpu.matmul %18, %17, %cst_13 {dimension_numbers = #tpu.dot_dimension_numbers<[1], [0], [0], [1], [0, 0, 1, 1], [], []>} : vector<2x256xbf16>, vector<256x128xbf16>, vector<2x128xf32> -> vector<2x128xf32>
    %c4 = arith.constant 4 : index
    %c0_14 = arith.constant 0 : index
    %20 = vector.load %arg8[%c4, %c0_14] : memref<16x512xf32, #tpu.memory_space<vmem>>, vector<1x128xf32>
    %21 = vector.broadcast %20 : vector<1x128xf32> to vector<2x128xf32>
    %22 = arith.addf %19, %21 : vector<2x128xf32>
    %c0_15 = arith.constant 0 : index
    %c0_16 = arith.constant 0 : index
    %23 = vector.load %arg2[%c0_15, %c0_16] : memref<2x512xf32, #tpu.memory_space<vmem>>, vector<2x512xf32>
    %c1024 = arith.constant 1024 : index
    %c0_17 = arith.constant 0 : index
    %24 = vector.load %arg4[%c1024, %c0_17] : memref<1536x512xbf16, #tpu.memory_space<vmem>>, vector<512x512xbf16>
    %25 = arith.truncf %23 : vector<2x512xf32> to vector<2x512xbf16>
    %cst_18 = arith.constant dense<0.000000e+00> : vector<2x512xf32>
    %26 = tpu.matmul %25, %24, %cst_18 {dimension_numbers = #tpu.dot_dimension_numbers<[1], [0], [0], [1], [0, 0, 1, 1], [], []>} : vector<2x512xbf16>, vector<512x512xbf16>, vector<2x512xf32> -> vector<2x512xf32>
    %c1 = arith.constant 1 : index
    %c0_19 = arith.constant 0 : index
    %27 = vector.load %arg8[%c1, %c0_19] : memref<16x512xf32, #tpu.memory_space<vmem>>, vector<1x512xf32>
    %28 = vector.broadcast %27 : vector<1x512xf32> to vector<2x512xf32>
    %29 = arith.addf %26, %28 : vector<2x512xf32>
    %cst_20 = arith.constant 0.000000e+00 : f32
    %30 = vector.broadcast %cst_20 : f32 to vector<2x512xf32>
    %31 = arith.maximumf %29, %30 : vector<2x512xf32>
    %c512 = arith.constant 512 : index
    %c0_21 = arith.constant 0 : index
    %32 = vector.load %arg5[%c512, %c0_21] : memref<1072x256xbf16, #tpu.memory_space<vmem>>, vector<512x256xbf16>
    %33 = arith.truncf %31 : vector<2x512xf32> to vector<2x512xbf16>
    %cst_22 = arith.constant dense<0.000000e+00> : vector<2x256xf32>
    %34 = tpu.matmul %33, %32, %cst_22 {dimension_numbers = #tpu.dot_dimension_numbers<[1], [0], [0], [1], [0, 0, 1, 1], [], []>} : vector<2x512xbf16>, vector<512x256xbf16>, vector<2x256xf32> -> vector<2x256xf32>
    %c3 = arith.constant 3 : index
    %c0_23 = arith.constant 0 : index
    %35 = vector.load %arg8[%c3, %c0_23] : memref<16x512xf32, #tpu.memory_space<vmem>>, vector<1x256xf32>
    %36 = vector.broadcast %35 : vector<1x256xf32> to vector<2x256xf32>
    %37 = arith.addf %34, %36 : vector<2x256xf32>
    %cst_24 = arith.constant 0.000000e+00 : f32
    %38 = vector.broadcast %cst_24 : f32 to vector<2x256xf32>
    %39 = arith.maximumf %37, %38 : vector<2x256xf32>
    %c256 = arith.constant 256 : index
    %c0_25 = arith.constant 0 : index
    %40 = vector.load %arg6[%c256, %c0_25] : memref<1408x128xbf16, #tpu.memory_space<vmem>>, vector<256x128xbf16>
    %41 = arith.truncf %39 : vector<2x256xf32> to vector<2x256xbf16>
    %cst_26 = arith.constant dense<0.000000e+00> : vector<2x128xf32>
    %42 = tpu.matmul %41, %40, %cst_26 {dimension_numbers = #tpu.dot_dimension_numbers<[1], [0], [0], [1], [0, 0, 1, 1], [], []>} : vector<2x256xbf16>, vector<256x128xbf16>, vector<2x128xf32> -> vector<2x128xf32>
    %c5 = arith.constant 5 : index
    %c0_27 = arith.constant 0 : index
    %43 = vector.load %arg8[%c5, %c0_27] : memref<16x512xf32, #tpu.memory_space<vmem>>, vector<1x128xf32>
    %44 = vector.broadcast %43 : vector<1x128xf32> to vector<2x128xf32>
    %45 = arith.addf %42, %44 : vector<2x128xf32>
    %c0_28 = arith.constant 0 : index
    %c0_29 = arith.constant 0 : index
    %46 = vector.load %arg3[%c0_28, %c0_29] : memref<2x48xf32, #tpu.memory_space<vmem>>, vector<2x48xf32>
    %c1024_30 = arith.constant 1024 : index
    %c0_31 = arith.constant 0 : index
    %47 = vector.load %arg5[%c1024_30, %c0_31] : memref<1072x256xbf16, #tpu.memory_space<vmem>>, vector<48x256xbf16>
    %48 = arith.truncf %46 : vector<2x48xf32> to vector<2x48xbf16>
    %cst_32 = arith.constant dense<0.000000e+00> : vector<2x256xf32>
    %49 = tpu.matmul %48, %47, %cst_32 {dimension_numbers = #tpu.dot_dimension_numbers<[1], [0], [0], [1], [0, 0, 1, 1], [], []>} : vector<2x48xbf16>, vector<48x256xbf16>, vector<2x256xf32> -> vector<2x256xf32>
    %c6 = arith.constant 6 : index
    %c0_33 = arith.constant 0 : index
    %50 = vector.load %arg8[%c6, %c0_33] : memref<16x512xf32, #tpu.memory_space<vmem>>, vector<1x256xf32>
    %51 = vector.broadcast %50 : vector<1x256xf32> to vector<2x256xf32>
    %52 = arith.addf %49, %51 : vector<2x256xf32>
    %cst_34 = arith.constant 0.000000e+00 : f32
    %53 = vector.broadcast %cst_34 : f32 to vector<2x256xf32>
    %54 = arith.maximumf %52, %53 : vector<2x256xf32>
    %c512_35 = arith.constant 512 : index
    %c0_36 = arith.constant 0 : index
    %55 = vector.load %arg6[%c512_35, %c0_36] : memref<1408x128xbf16, #tpu.memory_space<vmem>>, vector<256x128xbf16>
    %56 = arith.truncf %54 : vector<2x256xf32> to vector<2x256xbf16>
    %cst_37 = arith.constant dense<0.000000e+00> : vector<2x128xf32>
    %57 = tpu.matmul %56, %55, %cst_37 {dimension_numbers = #tpu.dot_dimension_numbers<[1], [0], [0], [1], [0, 0, 1, 1], [], []>} : vector<2x256xbf16>, vector<256x128xbf16>, vector<2x128xf32> -> vector<2x128xf32>
    %c7 = arith.constant 7 : index
    %c0_38 = arith.constant 0 : index
    %58 = vector.load %arg8[%c7, %c0_38] : memref<16x512xf32, #tpu.memory_space<vmem>>, vector<1x128xf32>
    %59 = vector.broadcast %58 : vector<1x128xf32> to vector<2x128xf32>
    %60 = arith.addf %57, %59 : vector<2x128xf32>
    %61 = tpu.concatenate %22, %45 in 1 : vector<2x128xf32>, vector<2x128xf32> -> vector<2x256xf32>
    %c768 = arith.constant 768 : index
    %c0_39 = arith.constant 0 : index
    %62 = vector.load %arg6[%c768, %c0_39] : memref<1408x128xbf16, #tpu.memory_space<vmem>>, vector<256x128xbf16>
    %63 = arith.truncf %61 : vector<2x256xf32> to vector<2x256xbf16>
    %cst_40 = arith.constant dense<0.000000e+00> : vector<2x128xf32>
    %64 = tpu.matmul %63, %62, %cst_40 {dimension_numbers = #tpu.dot_dimension_numbers<[1], [0], [0], [1], [0, 0, 1, 1], [], []>} : vector<2x256xbf16>, vector<256x128xbf16>, vector<2x128xf32> -> vector<2x128xf32>
    %c8 = arith.constant 8 : index
    %c0_41 = arith.constant 0 : index
    %65 = vector.load %arg8[%c8, %c0_41] : memref<16x512xf32, #tpu.memory_space<vmem>>, vector<1x128xf32>
    %66 = vector.broadcast %65 : vector<1x128xf32> to vector<2x128xf32>
    %67 = arith.addf %64, %66 : vector<2x128xf32>
    %cst_42 = arith.constant 0.000000e+00 : f32
    %68 = vector.broadcast %cst_42 : f32 to vector<2x128xf32>
    %69 = arith.maximumf %67, %68 : vector<2x128xf32>
    %c0_43 = arith.constant 0 : index
    %c0_44 = arith.constant 0 : index
    %70 = vector.load %arg7[%c0_43, %c0_44] : memref<384x64xbf16, #tpu.memory_space<vmem>>, vector<128x64xbf16>
    %71 = arith.truncf %69 : vector<2x128xf32> to vector<2x128xbf16>
    %cst_45 = arith.constant dense<0.000000e+00> : vector<2x64xf32>
    %72 = tpu.matmul %71, %70, %cst_45 {dimension_numbers = #tpu.dot_dimension_numbers<[1], [0], [0], [1], [0, 0, 1, 1], [], []>} : vector<2x128xbf16>, vector<128x64xbf16>, vector<2x64xf32> -> vector<2x64xf32>
    %c9 = arith.constant 9 : index
    %c0_46 = arith.constant 0 : index
    %73 = vector.load %arg8[%c9, %c0_46] : memref<16x512xf32, #tpu.memory_space<vmem>>, vector<1x64xf32>
    %74 = vector.broadcast %73 : vector<1x64xf32> to vector<2x64xf32>
    %75 = arith.addf %72, %74 : vector<2x64xf32>
    %cst_47 = arith.constant 0.000000e+00 : f32
    %76 = vector.broadcast %cst_47 : f32 to vector<2x64xf32>
    %77 = arith.maximumf %75, %76 : vector<2x64xf32>
    %78 = tpu.concatenate %60, %45 in 1 : vector<2x128xf32>, vector<2x128xf32> -> vector<2x256xf32>
    %c1024_48 = arith.constant 1024 : index
    %c0_49 = arith.constant 0 : index
    %79 = vector.load %arg6[%c1024_48, %c0_49] : memref<1408x128xbf16, #tpu.memory_space<vmem>>, vector<256x128xbf16>
    %80 = arith.truncf %78 : vector<2x256xf32> to vector<2x256xbf16>
    %cst_50 = arith.constant dense<0.000000e+00> : vector<2x128xf32>
    %81 = tpu.matmul %80, %79, %cst_50 {dimension_numbers = #tpu.dot_dimension_numbers<[1], [0], [0], [1], [0, 0, 1, 1], [], []>} : vector<2x256xbf16>, vector<256x128xbf16>, vector<2x128xf32> -> vector<2x128xf32>
    %c10 = arith.constant 10 : index
    %c0_51 = arith.constant 0 : index
    %82 = vector.load %arg8[%c10, %c0_51] : memref<16x512xf32, #tpu.memory_space<vmem>>, vector<1x128xf32>
    %83 = vector.broadcast %82 : vector<1x128xf32> to vector<2x128xf32>
    %84 = arith.addf %81, %83 : vector<2x128xf32>
    %cst_52 = arith.constant 0.000000e+00 : f32
    %85 = vector.broadcast %cst_52 : f32 to vector<2x128xf32>
    %86 = arith.maximumf %84, %85 : vector<2x128xf32>
    %c128 = arith.constant 128 : index
    %c0_53 = arith.constant 0 : index
    %87 = vector.load %arg7[%c128, %c0_53] : memref<384x64xbf16, #tpu.memory_space<vmem>>, vector<128x64xbf16>
    %88 = arith.truncf %86 : vector<2x128xf32> to vector<2x128xbf16>
    %cst_54 = arith.constant dense<0.000000e+00> : vector<2x64xf32>
    %89 = tpu.matmul %88, %87, %cst_54 {dimension_numbers = #tpu.dot_dimension_numbers<[1], [0], [0], [1], [0, 0, 1, 1], [], []>} : vector<2x128xbf16>, vector<128x64xbf16>, vector<2x64xf32> -> vector<2x64xf32>
    %c11 = arith.constant 11 : index
    %c0_55 = arith.constant 0 : index
    %90 = vector.load %arg8[%c11, %c0_55] : memref<16x512xf32, #tpu.memory_space<vmem>>, vector<1x64xf32>
    %91 = vector.broadcast %90 : vector<1x64xf32> to vector<2x64xf32>
    %92 = arith.addf %89, %91 : vector<2x64xf32>
    %cst_56 = arith.constant 0.000000e+00 : f32
    %93 = vector.broadcast %cst_56 : f32 to vector<2x64xf32>
    %94 = arith.maximumf %92, %93 : vector<2x64xf32>
    %95 = tpu.concatenate %77, %94 in 1 : vector<2x64xf32>, vector<2x64xf32> -> vector<2x128xf32>
    %c1280 = arith.constant 1280 : index
    %c0_57 = arith.constant 0 : index
    %96 = vector.load %arg6[%c1280, %c0_57] : memref<1408x128xbf16, #tpu.memory_space<vmem>>, vector<128x128xbf16>
    %97 = arith.truncf %95 : vector<2x128xf32> to vector<2x128xbf16>
    %cst_58 = arith.constant dense<0.000000e+00> : vector<2x128xf32>
    %98 = tpu.matmul %97, %96, %cst_58 {dimension_numbers = #tpu.dot_dimension_numbers<[1], [0], [0], [1], [0, 0, 1, 1], [], []>} : vector<2x128xbf16>, vector<128x128xbf16>, vector<2x128xf32> -> vector<2x128xf32>
    %c12 = arith.constant 12 : index
    %c0_59 = arith.constant 0 : index
    %99 = vector.load %arg8[%c12, %c0_59] : memref<16x512xf32, #tpu.memory_space<vmem>>, vector<1x128xf32>
    %100 = vector.broadcast %99 : vector<1x128xf32> to vector<2x128xf32>
    %101 = arith.addf %98, %100 : vector<2x128xf32>
    %cst_60 = arith.constant 0.000000e+00 : f32
    %102 = vector.broadcast %cst_60 : f32 to vector<2x128xf32>
    %103 = arith.maximumf %101, %102 : vector<2x128xf32>
    %c256_61 = arith.constant 256 : index
    %c0_62 = arith.constant 0 : index
    %104 = vector.load %arg7[%c256_61, %c0_62] : memref<384x64xbf16, #tpu.memory_space<vmem>>, vector<128x64xbf16>
    %105 = arith.truncf %103 : vector<2x128xf32> to vector<2x128xbf16>
    %cst_63 = arith.constant dense<0.000000e+00> : vector<2x64xf32>
    %106 = tpu.matmul %105, %104, %cst_63 {dimension_numbers = #tpu.dot_dimension_numbers<[1], [0], [0], [1], [0, 0, 1, 1], [], []>} : vector<2x128xbf16>, vector<128x64xbf16>, vector<2x64xf32> -> vector<2x64xf32>
    %c13 = arith.constant 13 : index
    %c0_64 = arith.constant 0 : index
    %107 = vector.load %arg8[%c13, %c0_64] : memref<16x512xf32, #tpu.memory_space<vmem>>, vector<1x64xf32>
    %108 = vector.broadcast %107 : vector<1x64xf32> to vector<2x64xf32>
    %109 = arith.addf %106, %108 : vector<2x64xf32>
    %cst_65 = arith.constant 0.000000e+00 : f32
    %110 = vector.broadcast %cst_65 : f32 to vector<2x64xf32>
    %111 = arith.maximumf %109, %110 : vector<2x64xf32>
    %c14 = arith.constant 14 : index
    %c0_66 = arith.constant 0 : index
    %112 = vector.load %arg8[%c14, %c0_66] : memref<16x512xf32, #tpu.memory_space<vmem>>, vector<1x64xf32>
    %113 = vector.broadcast %112 : vector<1x64xf32> to vector<2x64xf32>
    %114 = arith.mulf %111, %113 : vector<2x64xf32>
    %cst_67 = arith.constant dense<0.000000e+00> : vector<2xf32>
    %115 = vector.multi_reduction <add>, %114, %cst_67 [1] : vector<2x64xf32> to vector<2xf32>
    %116 = vector.shape_cast %115 : vector<2xf32> to vector<2x1xf32>
    %c15 = arith.constant 15 : index
    %c0_68 = arith.constant 0 : index
    %117 = vector.load %arg8[%c15, %c0_68] : memref<16x512xf32, #tpu.memory_space<vmem>>, vector<1x1xf32>
    %118 = vector.broadcast %117 : vector<1x1xf32> to vector<2x1xf32>
    %119 = arith.addf %116, %118 : vector<2x1xf32>
    %120 = arith.negf %119 : vector<2x1xf32>
    %121 = math.exp %120 : vector<2x1xf32>
    %cst_69 = arith.constant 1.000000e+00 : f32
    %122 = vector.broadcast %cst_69 : f32 to vector<2x1xf32>
    %123 = arith.addf %122, %121 : vector<2x1xf32>
    %124 = arith.divf %122, %123 : vector<2x1xf32>
    %c0_70 = arith.constant 0 : index
    %c0_71 = arith.constant 0 : index
    %125 = vector.load %arg9[%c0_70, %c0_71] : memref<2x1xf32, #tpu.memory_space<vmem>>, vector<2x1xf32>
    tpu.vector_store %arg9[%c0_70, %c0_71], %124 {strides = array<i32>} : memref<2x1xf32, #tpu.memory_space<vmem>>, vector<2x1xf32>,
    return
  }
  func.func @transform_0(%arg0: i32) -> (i32, i32) {
    %c0_i32 = arith.constant 0 : i32
    %c0_i32_0 = arith.constant 0 : i32
    return %arg0, %c0_i32 : i32, i32
  }
  func.func @transform_1(%arg0: i32) -> (i32, i32) {
    %c0_i32 = arith.constant 0 : i32
    %c0_i32_0 = arith.constant 0 : i32
    return %arg0, %c0_i32 : i32, i32
  }
  func.func @transform_2(%arg0: i32) -> (i32, i32) {
    %c0_i32 = arith.constant 0 : i32
    %c0_i32_0 = arith.constant 0 : i32
    return %arg0, %c0_i32 : i32, i32
  }
  func.func @transform_3(%arg0: i32) -> (i32, i32) {
    %c0_i32 = arith.constant 0 : i32
    %c0_i32_0 = arith.constant 0 : i32
    %c0_i32_1 = arith.constant 0 : i32
    return %c0_i32, %c0_i32_0 : i32, i32
  }
  func.func @transform_4(%arg0: i32) -> (i32, i32) {
    %c0_i32 = arith.constant 0 : i32
    %c0_i32_0 = arith.constant 0 : i32
    %c0_i32_1 = arith.constant 0 : i32
    return %c0_i32, %c0_i32_0 : i32, i32
  }
  func.func @transform_5(%arg0: i32) -> (i32, i32) {
    %c0_i32 = arith.constant 0 : i32
    %c0_i32_0 = arith.constant 0 : i32
    %c0_i32_1 = arith.constant 0 : i32
    return %c0_i32, %c0_i32_0 : i32, i32
  }
  func.func @transform_6(%arg0: i32) -> (i32, i32) {
    %c0_i32 = arith.constant 0 : i32
    %c0_i32_0 = arith.constant 0 : i32
    %c0_i32_1 = arith.constant 0 : i32
    return %c0_i32, %c0_i32_0 : i32, i32
  }
  func.func @transform_7(%arg0: i32) -> (i32, i32) {
    %c0_i32 = arith.constant 0 : i32
    %c0_i32_0 = arith.constant 0 : i32
    %c0_i32_1 = arith.constant 0 : i32
    return %c0_i32, %c0_i32_0 : i32, i32
  }
  func.func @transform_8(%arg0: i32) -> (i32, i32) {
    %c0_i32 = arith.constant 0 : i32
    %c0_i32_0 = arith.constant 0 : i32
    return %arg0, %c0_i32 : i32, i32
  }
}

</mosaic_0001>

<bundles_post_ra>
// kernel: reward_model_forward.1
= control target key start
LH: loop header
LB: loop body
LE: loop exit
PB: predicated region body
PF: predicated region fallthrough
CT: control target
= control target key end

     0   :  { %13 = vsyncpa [#allocation3], 0  ;;  %s7656_s0 = inlined_call_operand.vmem [shape: f32[2,1024], index: 0, kind: input, shape index: {}]   ;;  %s7657_s1 = inlined_call_operand.vmem [shape: f32[2,512], index: 1, kind: input, shape index: {}]   ;;  %s7658_s2 = inlined_call_operand.vmem [shape: f32[2,48], index: 2, kind: input, shape index: {}]   ;;  %s7659_s3 = inlined_call_operand.hbm [shape: bf16[1536,512], index: 3, kind: input, shape index: {}]   ;;  %s7660_s4 = inlined_call_operand.hbm [shape: bf16[1072,256], index: 4, kind: input, shape index: {}]   ;;  %s7661_s5 = inlined_call_operand.hbm [shape: bf16[1408,128], index: 5, kind: input, shape index: {}]   ;;  %s7662_s6 = inlined_call_operand.vmem [shape: bf16[384,64], index: 6, kind: input, shape index: {}]   ;;  %s7663_s7 = inlined_call_operand.hbm [shape: f32[16,512], index: 7, kind: input, shape index: {}]   ;;  %s7664_s8 = inlined_call_operand.vmem [shape: f32[2,1], index: 8, kind: output, shape index: {}]  }
   0x1   :  { %14 = vsyncpa [#allocation5], 0 }
   0x2   :  { %15 = vsyncpa [#allocation8], 0  ;;  %s7312_s27 = smov [#allocation4]   ;;  %s7218_s9 = scalar_lea.hbm %s7660_s4, 17152 }
   0x3   :  { %s39_s28 = sshll.u32 %s7312_s27, 4  ;;  %p7219_p0 = scmp.ne.s32.totalorder %s7660_s4, %s7218_s9  ;;  %s40_s28 = int_to_ptr.vmem [resolvable:$true] %s39_s28 }
   0x4   :  { %p7222_p1 = scmp.lt.u32.totalorder %s7218_s9, %s7660_s4 }
   0x6   :  { %p7224_p2 = pnand %p7222_p1, %p7219_p0 }
   0x8   :  { %7227 = shalt.err (!%p7224_p2)
}
   0x9   :  { %s7228_s14 = scalar_lea.vmem %s40_s28, 17152  ;;  %p7233_p4 = scmp.lt.s32.totalorder %s40_s28, %s40_s28 }
   0xa   :  { %p7229_p3 = scmp.ne.s32.totalorder %s40_s28, %s7228_s14  ;;  %p7234_p5 = scmp.lt.s32.totalorder %s7228_s14, %s7228_s14 }
   0xc   :  { %p7235_p6 = por %p7234_p5, %p7233_p4 }
   0xe   :  { %p7236_p7 = pnand %p7235_p6, %p7229_p3 }
  0x10   :  { %7239 = shalt.err (!%p7236_p7)
}
  0x11   :  { %s7313_s15 = smov 128   ;;  %s7314_s16 = smov 8  }
  0x12   :  { %45 = dma.hbm_to_vmem [thread:$0]  %s7660_s4, 17152, %s40_s28, [#allocation5], %s7313_s15, %s7313_s15, %s7314_s16  }
  0x13   :  { %s7315_s19 = smov [#allocation2]   ;;  %s7240_s23 = scalar_lea.hbm %s7659_s3, 49152 }
  0x14   :  { %s27_s20 = sshll.u32 %s7315_s19, 4  ;;  %p7241_p8 = scmp.ne.s32.totalorder %s7659_s3, %s7240_s23  ;;  %s28_s20 = int_to_ptr.vmem [resolvable:$true] %s27_s20 }
  0x15   :  { %p7244_p9 = scmp.lt.u32.totalorder %s7240_s23, %s7659_s3 }
  0x17   :  { %p7246_p10 = pnand %p7244_p9, %p7241_p8 }
  0x19   :  { %7249 = shalt.err (!%p7246_p10)
}
  0x1a   :  { %s7250_s29 = scalar_lea.vmem %s28_s20, 49152  ;;  %p7255_p12 = scmp.lt.s32.totalorder %s28_s20, %s28_s20 }
  0x1b   :  { %p7251_p11 = scmp.ne.s32.totalorder %s28_s20, %s7250_s29  ;;  %p7256_p13 = scmp.lt.s32.totalorder %s7250_s29, %s7250_s29 }
  0x1d   :  { %p7257_p0 = por %p7256_p13, %p7255_p12 }
  0x1f   :  { %p7258_p1 = pnand %p7257_p0, %p7251_p11 }
  0x21   :  { %7261 = shalt.err (!%p7258_p1)
}
  0x22   :  { %s7316_s4 = smov 256   ;;  %s7317_s28 = smov 16  }
  0x23   :  { %33 = dma.hbm_to_vmem [thread:$0]  %s7659_s3, 49152, %s28_s20, [#allocation3], %s7316_s4, %s7316_s4, %s7317_s28  }
  0x24   :  { %s7318_s10 = smov [#allocation6]   ;;  %s7262_s14 = scalar_lea.hbm %s7661_s5, 11264 }
  0x25   :  { %s51_s11 = sshll.u32 %s7318_s10, 4  ;;  %p7263_p2 = scmp.ne.s32.totalorder %s7661_s5, %s7262_s14  ;;  %s52_s11 = int_to_ptr.vmem [resolvable:$true] %s51_s11 }
  0x26   :  { %p7266_p3 = scmp.lt.u32.totalorder %s7262_s14, %s7661_s5 }
  0x28   :  { %p7268_p4 = pnand %p7266_p3, %p7263_p2 }
  0x2a   :  { %7271 = shalt.err (!%p7268_p4)
}
  0x2b   :  { %s7272_s19 = scalar_lea.vmem %s52_s11, 11264  ;;  %p7277_p6 = scmp.lt.s32.totalorder %s52_s11, %s52_s11 }
  0x2c   :  { %p7273_p5 = scmp.ne.s32.totalorder %s52_s11, %s7272_s19  ;;  %p7278_p7 = scmp.lt.s32.totalorder %s7272_s19, %s7272_s19 }
  0x2e   :  { %p7279_p8 = por %p7278_p7, %p7277_p6 }
  0x30   :  { %p7280_p9 = pnand %p7279_p8, %p7273_p5 }
  0x32   :  { %7283 = shalt.err (!%p7280_p9)
}
  0x33   :  { %s7319_s3 = smov 64   ;;  %s7320_s20 = smov 4  }
  0x34   :  { %57 = dma.hbm_to_vmem [thread:$0]  %s7661_s5, 11264, %s52_s11, [#allocation5], %s7319_s3, %s7319_s3, %s7320_s20  }
  0x35   :  { %s7321_s23 = smov [#allocation7]   ;;  %s7284_s27 = scalar_lea.hbm %s7663_s7, 1024 }
  0x36   :  { %s65_s24 = sshll.u32 %s7321_s23, 4  ;;  %p7285_p10 = scmp.ne.s32.totalorder %s7663_s7, %s7284_s27  ;;  %s66_s24 = int_to_ptr.vmem [resolvable:$true] %s65_s24 }
  0x37   :  { %p7288_p11 = scmp.lt.u32.totalorder %s7284_s27, %s7663_s7 }
  0x39   :  { %p7290_p12 = pnand %p7288_p11, %p7285_p10 }
  0x3b   :  { %7293 = shalt.err (!%p7290_p12)
}
  0x3c   :  { %s7294_s9 = scalar_lea.vmem %s66_s24, 1024  ;;  %p7299_p0 = scmp.lt.s32.totalorder %s66_s24, %s66_s24 }
  0x3d   :  { %p7295_p13 = scmp.ne.s32.totalorder %s66_s24, %s7294_s9  ;;  %p7300_p1 = scmp.lt.s32.totalorder %s7294_s9, %s7294_s9 }
  0x3f   :  { %p7301_p2 = por %p7300_p1, %p7299_p0 }
  0x41   :  { %p7302_p3 = pnand %p7301_p2, %p7295_p13 }
  0x43   :  { %7305 = shalt.err (!%p7302_p3)
}
  0x44   :  { %s7322_s5 = smov 512   ;;  %s7323_s10 = smov 32  }
  0x45   :  { %71 = dma.hbm_to_vmem [thread:$0]  %s7663_s7, 1024, %s66_s24, [#allocation8], %s7322_s5, %s7322_s5, %s7323_s10  }
  0x46   :  { %7306 = dma.done.wait [#allocation3], 49152  }
  0x47   :  { %7307 = vsyncadd [#allocation3], 4294918144 }
  0x48   :  { %7308 = dma.done.wait [#allocation5], 28416  }
  0x49   :  { %7309 = vsyncadd [#allocation5], 4294938880 }
  0x4a   :  { %7310 = dma.done.wait [#allocation8], 1024  }
  0x4b   :  { %7311 = vsyncadd [#allocation8], 4294966272  ;;  %v6322_v0 = vld [vmem:[#allocation2 + $0x4] ss:$16 sps:$4 sm:$0xff]   ;;  %v6324_v1 = vld [vmem:[#allocation2 + $0xc] ss:$16 sps:$4 sm:$0xff]   ;;  %v349_v38 = vlaneseq }
  0x4c   :  { %1697 = vmatprep.subr.bf16.mxu0 %v6322_v0  ;;  %v6326_v2 = vld [vmem:[#allocation2] ss:$16 sps:$4 sm:$0xff]   ;;  %v6327_v3 = vld [vmem:[#allocation2 + $0x8] ss:$16 sps:$4 sm:$0xff]   ;;  %1861 = vmatprep.subr.bf16.mxu1 %v6324_v1  ;;  %v6328_v4 = vld [vmem:[#allocation2 + $0x24] ss:$16 sps:$4 sm:$0xff]  }
  0x4d   :  { %1698 = vmatpush1.bf16.msra.mxu0 %v6326_v2  ;;  %1862 = vmatpush1.bf16.msra.mxu1 %v6327_v3  ;;  %v6330_v5 = vld [vmem:[#allocation2 + $0x2c] ss:$16 sps:$4 sm:$0xff]   ;;  %v6332_v6 = vld [vmem:[#allocation2 + $0x20] ss:$16 sps:$4 sm:$0xff]   ;;  %v6333_v7 = vld [vmem:[#allocation2 + $0x28] ss:$16 sps:$4 sm:$0xff]  }
  0x4e   :  { %1699 = vmatprep.subr.bf16.mxu0 %v6328_v4  ;;  %1863 = vmatprep.subr.bf16.mxu1 %v6330_v5  ;;  %v6334_v8 = vld [vmem:[#allocation2 + $0x44] ss:$16 sps:$4 sm:$0xff]   ;;  %v6336_v9 = vld [vmem:[#allocation2 + $0x4c] ss:$16 sps:$4 sm:$0xff]   ;;  %v6338_v10 = vld [vmem:[#allocation2 + $0x40] ss:$16 sps:$4 sm:$0xff]  }
  0x4f   :  { %v6339_v11 = vld [vmem:[#allocation2 + $0x48] ss:$16 sps:$4 sm:$0xff]   ;;  %v6340_v12 = vld [vmem:[#allocation2 + $0x64] ss:$16 sps:$4 sm:$0xff]   ;;  %v6342_v13 = vld [vmem:[#allocation2 + $0x6c] ss:$16 sps:$4 sm:$0xff]  }
  0x50   :  { %v6344_v14 = vld [vmem:[#allocation2 + $0x60] ss:$16 sps:$4 sm:$0xff]   ;;  %v6345_v15 = vld [vmem:[#allocation2 + $0x68] ss:$16 sps:$4 sm:$0xff]   ;;  %v6346_v16 = vld [vmem:[#allocation2 + $0x84] ss:$16 sps:$4 sm:$0xff]  }
  0x51   :  { %1700 = vmatpush1.bf16.msra.mxu0 %v6332_v6  ;;  %1864 = vmatpush1.bf16.msra.mxu1 %v6333_v7  ;;  %v6348_v17 = vld [vmem:[#allocation2 + $0x8c] ss:$16 sps:$4 sm:$0xff]   ;;  %v6350_v18 = vld [vmem:[#allocation2 + $0x80] ss:$16 sps:$4 sm:$0xff]   ;;  %v6351_v19 = vld [vmem:[#allocation2 + $0x88] ss:$16 sps:$4 sm:$0xff]  }
  0x52   :  { %1701 = vmatprep.subr.bf16.mxu0 %v6334_v8  ;;  %1865 = vmatprep.subr.bf16.mxu1 %v6336_v9  ;;  %v6352_v20 = vld [vmem:[#allocation2 + $0xa4] ss:$16 sps:$4 sm:$0xff]   ;;  %v6354_v21 = vld [vmem:[#allocation2 + $0xac] ss:$16 sps:$4 sm:$0xff]   ;;  %v6356_v22 = vld [vmem:[#allocation2 + $0xa0] ss:$16 sps:$4 sm:$0xff]  }
  0x53   :  { %v6357_v23 = vld [vmem:[#allocation2 + $0xa8] ss:$16 sps:$4 sm:$0xff]   ;;  %v6358_v24 = vld [vmem:[#allocation2 + $0xc4] ss:$16 sps:$4 sm:$0xff]   ;;  %v6360_v25 = vld [vmem:[#allocation2 + $0xcc] ss:$16 sps:$4 sm:$0xff]  }
  0x54   :  { %v6362_v26 = vld [vmem:[#allocation2 + $0xc0] ss:$16 sps:$4 sm:$0xff]   ;;  %v6363_v27 = vld [vmem:[#allocation2 + $0xc8] ss:$16 sps:$4 sm:$0xff]   ;;  %v6364_v28 = vld [vmem:[#allocation2 + $0xe4] ss:$16 sps:$4 sm:$0xff]  }
  0x55   :  { %1702 = vmatpush1.bf16.msra.mxu0 %v6338_v10  ;;  %1866 = vmatpush1.bf16.msra.mxu1 %v6339_v11  ;;  %v6366_v29 = vld [vmem:[#allocation2 + $0xec] ss:$16 sps:$4 sm:$0xff]   ;;  %v6368_v30 = vld [vmem:[#allocation2 + $0xe0] ss:$16 sps:$4 sm:$0xff]   ;;  %v6369_v31 = vld [vmem:[#allocation2 + $0xe8] ss:$16 sps:$4 sm:$0xff]  }
  0x56   :  { %1703 = vmatprep.subr.bf16.mxu0 %v6340_v12  ;;  %1867 = vmatprep.subr.bf16.mxu1 %v6342_v13  ;;  %v6370_v32 = vld [vmem:[#allocation2 + $0x104] ss:$16 sps:$4 sm:$0xff]   ;;  %v6372_v33 = vld [vmem:[#allocation2 + $0x10c] ss:$16 sps:$4 sm:$0xff]   ;;  %v6374_v34 = vld [vmem:[#allocation2 + $0x100] ss:$16 sps:$4 sm:$0xff]  }
  0x57   :  { %v6375_v35 = vld [vmem:[#allocation2 + $0x108] ss:$16 sps:$4 sm:$0xff]   ;;  %v7324_v36 = vmov 1983009808   ;;  %v6376_v39 = vld [vmem:[#allocation2 + $0x124] ss:$16 sps:$4 sm:$0xff]  }
  0x58   :  { %v347_v37 = vunpack.c.l.s4 %v7324_v36  ;;  %v6378_v40 = vld [vmem:[#allocation2 + $0x12c] ss:$16 sps:$4 sm:$0xff]   ;;  %v6380_v41 = vld [vmem:[#allocation2 + $0x120] ss:$16 sps:$4 sm:$0xff]   ;;  %v7423_v43 = vshrl.u32 %v349_v38, 7  ;;  %vm4378_vm0 = vcmask 392192  }
  0x59   :  { %1704 = vmatpush1.bf16.msra.mxu0 %v6344_v14  ;;  %1868 = vmatpush1.bf16.msra.mxu1 %v6345_v15  ;;  %v6381_v44 = vld [vmem:[#allocation2 + $0x128] ss:$16 sps:$4 sm:$0xff]   ;;  %v6382_v45 = vld [vmem:[#allocation2 + $0x144] ss:$16 sps:$4 sm:$0xff]   ;;  %v6384_v46 = vld [vmem:[#allocation2 + $0x14c] ss:$16 sps:$4 sm:$0xff]  }
  0x5a   :  { %1705 = vmatprep.subr.bf16.mxu0 %v6346_v16  ;;  %1869 = vmatprep.subr.bf16.mxu1 %v6348_v17  ;;  %v348_v42 = vunpack.c.0.s8 %v347_v37  ;;  %v6386_v47 = vld [vmem:[#allocation2 + $0x140] ss:$16 sps:$4 sm:$0xff]   ;;  %v6387_v48 = vld [vmem:[#allocation2 + $0x148] ss:$16 sps:$4 sm:$0xff]   ;;  %v6388_v50 = vld [vmem:[#allocation2 + $0x164] ss:$16 sps:$4 sm:$0xff]  }
  0x5b   :  { %v6390_v51 = vld [vmem:[#allocation2 + $0x16c] ss:$16 sps:$4 sm:$0xff]   ;;  %v85_v52 = vld [vmem:[%s7656_s0] sm:$0xff]  ;;  %v6393_v55 = vld [vmem:[#allocation2 + $0x168] ss:$16 sps:$4 sm:$0xff]   ;;  %vm7327_vm1 = vmmov 0  }
  0x5c   :  { %v7426_v49 = vsub.s32 %v348_v42, %v7423_v43  ;;  %v6392_v53 = vld [vmem:[#allocation2 + $0x160] ss:$16 sps:$4 sm:$0xff]   ;;  %v6394_v56 = vld [vmem:[#allocation2 + $0x184] ss:$16 sps:$4 sm:$0xff]   ;;  %v6396_v57 = vld [vmem:[#allocation2 + $0x18c] ss:$16 sps:$4 sm:$0xff]   ;;  %v345_v4 = vcombine.high %v85_v52, %v85_v52 }
  0x5d   :  { %1706 = vmatpush1.bf16.msra.mxu0 %v6350_v18  ;;  %1870 = vmatpush1.bf16.msra.mxu1 %v6351_v19  ;;  %v6398_v59 = vld [vmem:[#allocation2 + $0x180] ss:$16 sps:$4 sm:$0xff]   ;;  %v6399_v61 = vld [vmem:[#allocation2 + $0x188] ss:$16 sps:$4 sm:$0xff]   ;;  %v6400_v62 = vld [vmem:[#allocation2 + $0x1a4] ss:$16 sps:$4 sm:$0xff]  }
  0x5e   :  { %1707 = vmatprep.subr.bf16.mxu0 %v6352_v20  ;;  %1871 = vmatprep.subr.bf16.mxu1 %v6354_v21  ;;  %v352_v54 = vrot.slane %v85_v52, %v7426_v49  ;;  %v6402_v63 = vld [vmem:[#allocation2 + $0x1ac] ss:$16 sps:$4 sm:$0xff]   ;;  %v6404_v0 = vld [vmem:[#allocation2 + $0x1a0] ss:$16 sps:$4 sm:$0xff]   ;;  %v6405_v1 = vld [vmem:[#allocation2 + $0x1a8] ss:$16 sps:$4 sm:$0xff]   ;;  %v7433_v9 = vrot.slane %v345_v4, %v7426_v49 }
  0x5f   :  { %v6406_v2 = vld [vmem:[#allocation2 + $0x1c4] ss:$16 sps:$4 sm:$0xff]   ;;  %v6408_v3 = vld [vmem:[#allocation2 + $0x1cc] ss:$16 sps:$4 sm:$0xff]   ;;  %v6410_v5 = vld [vmem:[#allocation2 + $0x1c0] ss:$16 sps:$4 sm:$0xff]  }
  0x60   :  { %v360_v58 = vcombine.high %v352_v54, %v352_v54  ;;  %v6411_v6 = vld [vmem:[#allocation2 + $0x1c8] ss:$16 sps:$4 sm:$0xff]   ;;  %v6412_v7 = vld [vmem:[#allocation2 + $0x1e4] ss:$16 sps:$4 sm:$0xff]   ;;  %v6414_v8 = vld [vmem:[#allocation2 + $0x1ec] ss:$16 sps:$4 sm:$0xff]   ;;  %v361_v14 = vcombine.high %v7433_v9, %v7433_v9  ;;  %v387_v16 = vpack.c.bf16 %v352_v54, %v352_v54 }
  0x61   :  { %1708 = vmatpush1.bf16.msra.mxu0 %v6356_v22  ;;  %1872 = vmatpush1.bf16.msra.mxu1 %v6357_v23  ;;  %v6416_v10 = vld [vmem:[#allocation2 + $0x1e0] ss:$16 sps:$4 sm:$0xff]   ;;  %v6417_v11 = vld [vmem:[#allocation2 + $0x1e8] ss:$16 sps:$4 sm:$0xff]   ;;  %v6421_v12 = vld [vmem:[#allocation2 + $0x204] ss:$16 sps:$4 sm:$0xff]  }
  0x62   :  { %1709 = vmatprep.subr.bf16.mxu0 %v6358_v24  ;;  %1873 = vmatprep.subr.bf16.mxu1 %v6360_v25  ;;  %v388_v60 = vpack.c.bf16 %v360_v58, %v360_v58  ;;  %v6424_v13 = vld [vmem:[#allocation2 + $0x20c] ss:$16 sps:$4 sm:$0xff]   ;;  %v6419_v15 = vld [vmem:[#allocation2 + $0x200] ss:$16 sps:$4 sm:$0xff]   ;;  %v6422_v17 = vld [vmem:[#allocation2 + $0x208] ss:$16 sps:$4 sm:$0xff]   ;;  %v390_v20 = vpack.c.bf16 %v361_v14, %v361_v14 }
  0x63   :  { %v6427_v18 = vld [vmem:[#allocation2 + $0x224] ss:$16 sps:$4 sm:$0xff]   ;;  %v6430_v19 = vld [vmem:[#allocation2 + $0x22c] ss:$16 sps:$4 sm:$0xff]   ;;  %v6425_v21 = vld [vmem:[#allocation2 + $0x220] ss:$16 sps:$4 sm:$0xff]  }
  0x64   :  { %1729 = vmatprep.mubr.bf16.mxu0 %v388_v60  ;;  %1893 = vmatprep.mubr.bf16.mxu1 %v388_v60  ;;  %v6428_v22 = vld [vmem:[#allocation2 + $0x228] ss:$16 sps:$4 sm:$0xff]   ;;  %v6433_v23 = vld [vmem:[#allocation2 + $0x244] ss:$16 sps:$4 sm:$0xff]   ;;  %v6436_v24 = vld [vmem:[#allocation2 + $0x24c] ss:$16 sps:$4 sm:$0xff]  }
  0x65   :  { %1710 = vmatpush1.bf16.msra.mxu0 %v6362_v26  ;;  %1874 = vmatpush1.bf16.msra.mxu1 %v6363_v27  ;;  %v6431_v25 = vld [vmem:[#allocation2 + $0x240] ss:$16 sps:$4 sm:$0xff]   ;;  %v6434_v26 = vld [vmem:[#allocation2 + $0x248] ss:$16 sps:$4 sm:$0xff]   ;;  %v6439_v27 = vld [vmem:[#allocation2 + $0x264] ss:$16 sps:$4 sm:$0xff]  }
  0x66   :  { %1711 = vmatprep.subr.bf16.mxu0 %v6364_v28  ;;  %1875 = vmatprep.subr.bf16.mxu1 %v6366_v29  ;;  %v6442_v28 = vld [vmem:[#allocation2 + $0x26c] ss:$16 sps:$4 sm:$0xff]   ;;  %v6437_v29 = vld [vmem:[#allocation2 + $0x260] ss:$16 sps:$4 sm:$0xff]   ;;  %v6452_v38 = vld [vmem:[#allocation2 + $0x2a8] ss:$16 sps:$4 sm:$0xff]  }
  0x67   :  { %v6454_v36 = vld [vmem:[#allocation2 + $0x2ac] ss:$16 sps:$4 sm:$0xff]   ;;  %v6449_v37 = vld [vmem:[#allocation2 + $0x2a0] ss:$16 sps:$4 sm:$0xff]   ;;  %v6458_v42 = vld [vmem:[#allocation2 + $0x2c8] ss:$16 sps:$4 sm:$0xff]  }
  0x68   :  { %v6470_v52 = vld [vmem:[#allocation2 + $0x308] ss:$16 sps:$4 sm:$0xff]   ;;  %v6478_v54 = vld [vmem:[#allocation2 + $0x32c] ss:$16 sps:$4 sm:$0xff]   ;;  %v6511_v14 = vld [vmem:[#allocation2 + $0x3e4] ss:$16 sps:$4 sm:$0xff]  }
  0x69   :  { %1712 = vmatpush1.bf16.msra.mxu0 %v6368_v30  ;;  %1876 = vmatpush1.bf16.msra.mxu1 %v6369_v31  ;;  %v6440_v30 = vld [vmem:[#allocation2 + $0x268] ss:$16 sps:$4 sm:$0xff]   ;;  %v6445_v31 = vld [vmem:[#allocation2 + $0x284] ss:$16 sps:$4 sm:$0xff]   ;;  %v6484_v58 = vld [vmem:[#allocation2 + $0x34c] ss:$16 sps:$4 sm:$0xff]  }
  0x6a   :  { %1713 = vmatprep.subr.bf16.mxu0 %v6370_v32  ;;  %1877 = vmatprep.subr.bf16.mxu1 %v6372_v33  ;;  %v6448_v32 = vld [vmem:[#allocation2 + $0x28c] ss:$16 sps:$4 sm:$0xff]   ;;  %v6443_v33 = vld [vmem:[#allocation2 + $0x280] ss:$16 sps:$4 sm:$0xff]   ;;  %v6482_v60 = vld [vmem:[#allocation2 + $0x348] ss:$16 sps:$4 sm:$0xff]  }
  0x6b   :  { %v6494_v4 = vld [vmem:[#allocation2 + $0x388] ss:$16 sps:$4 sm:$0xff]   ;;  %vm5157_vm2 = vcmask 523264   ;;  %vm5375_vm3 = vcmask 517120   ;;  %vm5387_vm4 = vcmask 1024  }
  0x6d   :  { %1714 = vmatpush1.bf16.msra.mxu0 %v6374_v34  ;;  %1878 = vmatpush1.bf16.msra.mxu1 %v6375_v35  ;;  %v6446_v34 = vld [vmem:[#allocation2 + $0x288] ss:$16 sps:$4 sm:$0xff]   ;;  %v6451_v35 = vld [vmem:[#allocation2 + $0x2a4] ss:$16 sps:$4 sm:$0xff]  }
  0x6e   :  { %1715 = vmatprep.subr.bf16.mxu0 %v6376_v39  ;;  %1879 = vmatprep.subr.bf16.mxu1 %v6378_v40  ;;  %v6457_v39 = vld [vmem:[#allocation2 + $0x2c4] ss:$16 sps:$4 sm:$0xff]   ;;  %v6460_v40 = vld [vmem:[#allocation2 + $0x2cc] ss:$16 sps:$4 sm:$0xff]  }
  0x71   :  { %1716 = vmatpush1.bf16.msra.mxu0 %v6380_v41  ;;  %1880 = vmatpush1.bf16.msra.mxu1 %v6381_v44  ;;  %v6455_v41 = vld [vmem:[#allocation2 + $0x2c0] ss:$16 sps:$4 sm:$0xff]   ;;  %v6463_v44 = vld [vmem:[#allocation2 + $0x2e4] ss:$16 sps:$4 sm:$0xff]  }
  0x72   :  { %1717 = vmatprep.subr.bf16.mxu0 %v6382_v45  ;;  %1881 = vmatprep.subr.bf16.mxu1 %v6384_v46  ;;  %v6466_v45 = vld [vmem:[#allocation2 + $0x2ec] ss:$16 sps:$4 sm:$0xff]   ;;  %v6461_v46 = vld [vmem:[#allocation2 + $0x2e0] ss:$16 sps:$4 sm:$0xff]  }
  0x75   :  { %1718 = vmatpush1.bf16.msra.mxu0 %v6386_v47  ;;  %1882 = vmatpush1.bf16.msra.mxu1 %v6387_v48  ;;  %v6464_v47 = vld [vmem:[#allocation2 + $0x2e8] ss:$16 sps:$4 sm:$0xff]   ;;  %v6469_v48 = vld [vmem:[#allocation2 + $0x304] ss:$16 sps:$4 sm:$0xff]  }
  0x76   :  { %1719 = vmatprep.subr.bf16.mxu0 %v6388_v50  ;;  %1883 = vmatprep.subr.bf16.mxu1 %v6390_v51  ;;  %v6472_v50 = vld [vmem:[#allocation2 + $0x30c] ss:$16 sps:$4 sm:$0xff]   ;;  %v6467_v51 = vld [vmem:[#allocation2 + $0x300] ss:$16 sps:$4 sm:$0xff]  }
  0x79   :  { %1720 = vmatpush1.bf16.msra.mxu0 %v6392_v53  ;;  %1884 = vmatpush1.bf16.msra.mxu1 %v6393_v55  ;;  %v6475_v53 = vld [vmem:[#allocation2 + $0x324] ss:$16 sps:$4 sm:$0xff]   ;;  %v6473_v55 = vld [vmem:[#allocation2 + $0x320] ss:$16 sps:$4 sm:$0xff]  }
  0x7a   :  { %1721 = vmatprep.subr.bf16.mxu0 %v6394_v56  ;;  %1885 = vmatprep.subr.bf16.mxu1 %v6396_v57  ;;  %v6476_v56 = vld [vmem:[#allocation2 + $0x328] ss:$16 sps:$4 sm:$0xff]   ;;  %v6481_v57 = vld [vmem:[#allocation2 + $0x344] ss:$16 sps:$4 sm:$0xff]  }
  0x7d   :  { %1722 = vmatpush1.bf16.msra.mxu0 %v6398_v59  ;;  %1886 = vmatpush1.bf16.msra.mxu1 %v6399_v61  ;;  %v6479_v59 = vld [vmem:[#allocation2 + $0x340] ss:$16 sps:$4 sm:$0xff]   ;;  %v6487_v61 = vld [vmem:[#allocation2 + $0x364] ss:$16 sps:$4 sm:$0xff]  }
  0x7e   :  { %1723 = vmatprep.subr.bf16.mxu0 %v6400_v62  ;;  %1887 = vmatprep.subr.bf16.mxu1 %v6402_v63  ;;  %v6490_v62 = vld [vmem:[#allocation2 + $0x36c] ss:$16 sps:$4 sm:$0xff]   ;;  %v6485_v63 = vld [vmem:[#allocation2 + $0x360] ss:$16 sps:$4 sm:$0xff]  }
  0x81   :  { %1724 = vmatpush1.bf16.msra.mxu0 %v6404_v0  ;;  %1888 = vmatpush1.bf16.msra.mxu1 %v6405_v1  ;;  %v6488_v0 = vld [vmem:[#allocation2 + $0x368] ss:$16 sps:$4 sm:$0xff]   ;;  %v6493_v1 = vld [vmem:[#allocation2 + $0x384] ss:$16 sps:$4 sm:$0xff]  }
  0x82   :  { %1725 = vmatprep.subr.bf16.mxu0 %v6406_v2  ;;  %1889 = vmatprep.subr.bf16.mxu1 %v6408_v3  ;;  %v6496_v2 = vld [vmem:[#allocation2 + $0x38c] ss:$16 sps:$4 sm:$0xff]   ;;  %v6491_v3 = vld [vmem:[#allocation2 + $0x380] ss:$16 sps:$4 sm:$0xff]  }
  0x85   :  { %1726 = vmatpush1.bf16.msra.mxu0 %v6410_v5  ;;  %1890 = vmatpush1.bf16.msra.mxu1 %v6411_v6  ;;  %v6499_v5 = vld [vmem:[#allocation2 + $0x3a4] ss:$16 sps:$4 sm:$0xff]   ;;  %v6502_v6 = vld [vmem:[#allocation2 + $0x3ac] ss:$16 sps:$4 sm:$0xff]  }
  0x86   :  { %1727 = vmatprep.subr.bf16.mxu0 %v6412_v7  ;;  %1891 = vmatprep.subr.bf16.mxu1 %v6414_v8  ;;  %v6497_v7 = vld [vmem:[#allocation2 + $0x3a0] ss:$16 sps:$4 sm:$0xff]   ;;  %v6500_v8 = vld [vmem:[#allocation2 + $0x3a8] ss:$16 sps:$4 sm:$0xff]  }
  0x89   :  { %1728 = vmatpush1.bf16.msra.mxu0 %v6416_v10  ;;  %1892 = vmatpush1.bf16.msra.mxu1 %v6417_v11  ;;  %v6505_v10 = vld [vmem:[#allocation2 + $0x3c4] ss:$16 sps:$4 sm:$0xff]   ;;  %v6508_v11 = vld [vmem:[#allocation2 + $0x3cc] ss:$16 sps:$4 sm:$0xff]  }
  0x8a   :  { %1738 = vmatprep.subr.bf16.mxu0 %v6421_v12  ;;  %1902 = vmatprep.subr.bf16.mxu1 %v6424_v13  ;;  %v6503_v12 = vld [vmem:[#allocation2 + $0x3c0] ss:$16 sps:$4 sm:$0xff]   ;;  %v6506_v13 = vld [vmem:[#allocation2 + $0x3c8] ss:$16 sps:$4 sm:$0xff]  }
  0x8c   :  { %1730 = vmatmul.mubr.bf16.vlgmr.msra.gmra.mrb[0].mxu0 %v387_v16  ;;  %1894 = vmatmul.mubr.bf16.vlgmr.msra.gmra.mrb[0].mxu1 %v387_v16  ;;  %v6509_v16 = vld [vmem:[#allocation2 + $0x3e0] ss:$16 sps:$4 sm:$0xff]  }
  0x8d   :  { %1739 = vmatpush1.bf16.msra.mxu0 %v6419_v15  ;;  %1903 = vmatpush1.bf16.msra.mxu1 %v6422_v17  ;;  %v6514_v15 = vld [vmem:[#allocation2 + $0x3ec] ss:$16 sps:$4 sm:$0xff]   ;;  %v6512_v17 = vld [vmem:[#allocation2 + $0x3e8] ss:$16 sps:$4 sm:$0xff]  }
  0x8e   :  { %1740 = vmatprep.subr.bf16.mxu0 %v6427_v18  ;;  %1904 = vmatprep.subr.bf16.mxu1 %v6430_v19  ;;  %v6517_v18 = vld [vmem:[#allocation2 + $0x404] ss:$16 sps:$4 sm:$0xff]   ;;  %v6520_v19 = vld [vmem:[#allocation2 + $0x40c] ss:$16 sps:$4 sm:$0xff]  }
  0x8f   :  { %1770 = vmatprep.mubr.bf16.mxu0 %v390_v20  ;;  %1934 = vmatprep.mubr.bf16.mxu1 %v390_v20  ;;  %v6515_v20 = vld [vmem:[#allocation2 + $0x400] ss:$16 sps:$4 sm:$0xff]  }
  0x91   :  { %1741 = vmatpush1.bf16.msra.mxu0 %v6425_v21  ;;  %1905 = vmatpush1.bf16.msra.mxu1 %v6428_v22  ;;  %v389_v21 = vpack.c.bf16 %v7433_v9, %v7433_v9  ;;  %v6518_v22 = vld [vmem:[#allocation2 + $0x408] ss:$16 sps:$4 sm:$0xff]  }
  0x92   :  { %1742 = vmatprep.subr.bf16.mxu0 %v6433_v23  ;;  %1906 = vmatprep.subr.bf16.mxu1 %v6436_v24  ;;  %v7442_v23 = vld [vmem:[%s7656_s0 + $0x8] sm:$0xff]  ;;  %v6523_v24 = vld [vmem:[#allocation2 + $0x424] ss:$16 sps:$4 sm:$0xff]  }
  0x95   :  { %1743 = vmatpush1.bf16.msra.mxu0 %v6431_v25  ;;  %1907 = vmatpush1.bf16.msra.mxu1 %v6434_v26  ;;  %v6526_v25 = vld [vmem:[#allocation2 + $0x42c] ss:$16 sps:$4 sm:$0xff]   ;;  %v7446_v26 = vrot.slane %v7442_v23, %v7426_v49 }
  0x96   :  { %1744 = vmatprep.subr.bf16.mxu0 %v6439_v27  ;;  %1908 = vmatprep.subr.bf16.mxu1 %v6442_v28  ;;  %v6521_v27 = vld [vmem:[#allocation2 + $0x420] ss:$16 sps:$4 sm:$0xff]   ;;  %v6524_v28 = vld [vmem:[#allocation2 + $0x428] ss:$16 sps:$4 sm:$0xff]  }
  0x97   :  { %v377_v9 = vcombine.high %v7446_v26, %v7446_v26 }
  0x99   :  { %1745 = vmatpush1.bf16.msra.mxu0 %v6437_v29  ;;  %1909 = vmatpush1.bf16.msra.mxu1 %v6440_v30  ;;  %v6529_v29 = vld [vmem:[#allocation2 + $0x444] ss:$16 sps:$4 sm:$0xff]   ;;  %v6532_v30 = vld [vmem:[#allocation2 + $0x44c] ss:$16 sps:$4 sm:$0xff]  }
  0x9a   :  { %1746 = vmatprep.subr.bf16.mxu0 %v6445_v31  ;;  %1910 = vmatprep.subr.bf16.mxu1 %v6448_v32  ;;  %v392_v31 = vpack.c.bf16 %v377_v9, %v377_v9  ;;  %v6527_v32 = vld [vmem:[#allocation2 + $0x440] ss:$16 sps:$4 sm:$0xff]  }
  0x9b   :  { %v6605_v9 = vld [vmem:[#allocation2 + $0x5e0] ss:$16 sps:$4 sm:$0xff]  }
  0x9d   :  { %1747 = vmatpush1.bf16.msra.mxu0 %v6443_v33  ;;  %1911 = vmatpush1.bf16.msra.mxu1 %v6446_v34  ;;  %v6530_v33 = vld [vmem:[#allocation2 + $0x448] ss:$16 sps:$4 sm:$0xff]   ;;  %v6535_v34 = vld [vmem:[#allocation2 + $0x464] ss:$16 sps:$4 sm:$0xff]  }
  0x9e   :  { %1748 = vmatprep.subr.bf16.mxu0 %v6451_v35  ;;  %1912 = vmatprep.subr.bf16.mxu1 %v6454_v36  ;;  %v6538_v35 = vld [vmem:[#allocation2 + $0x46c] ss:$16 sps:$4 sm:$0xff]   ;;  %v6533_v36 = vld [vmem:[#allocation2 + $0x460] ss:$16 sps:$4 sm:$0xff]  }
  0xa1   :  { %1749 = vmatpush1.bf16.msra.mxu0 %v6449_v37  ;;  %1913 = vmatpush1.bf16.msra.mxu1 %v6452_v38  ;;  %v6536_v37 = vld [vmem:[#allocation2 + $0x468] ss:$16 sps:$4 sm:$0xff]   ;;  %v6541_v38 = vld [vmem:[#allocation2 + $0x484] ss:$16 sps:$4 sm:$0xff]  }
  0xa2   :  { %1750 = vmatprep.subr.bf16.mxu0 %v6457_v39  ;;  %1914 = vmatprep.subr.bf16.mxu1 %v6460_v40  ;;  %v6544_v39 = vld [vmem:[#allocation2 + $0x48c] ss:$16 sps:$4 sm:$0xff]   ;;  %v6539_v40 = vld [vmem:[#allocation2 + $0x480] ss:$16 sps:$4 sm:$0xff]  }
  0xa5   :  { %1751 = vmatpush1.bf16.msra.mxu0 %v6455_v41  ;;  %1915 = vmatpush1.bf16.msra.mxu1 %v6458_v42  ;;  %v6542_v41 = vld [vmem:[#allocation2 + $0x488] ss:$16 sps:$4 sm:$0xff]   ;;  %v6547_v42 = vld [vmem:[#allocation2 + $0x4a4] ss:$16 sps:$4 sm:$0xff]  }
  0xa6   :  { %1752 = vmatprep.subr.bf16.mxu0 %v6463_v44  ;;  %1916 = vmatprep.subr.bf16.mxu1 %v6466_v45  ;;  %v6550_v44 = vld [vmem:[#allocation2 + $0x4ac] ss:$16 sps:$4 sm:$0xff]   ;;  %v6545_v45 = vld [vmem:[#allocation2 + $0x4a0] ss:$16 sps:$4 sm:$0xff]  }
  0xa9   :  { %1753 = vmatpush1.bf16.msra.mxu0 %v6461_v46  ;;  %1917 = vmatpush1.bf16.msra.mxu1 %v6464_v47  ;;  %v6548_v46 = vld [vmem:[#allocation2 + $0x4a8] ss:$16 sps:$4 sm:$0xff]   ;;  %v6553_v47 = vld [vmem:[#allocation2 + $0x4c4] ss:$16 sps:$4 sm:$0xff]  }
  0xaa   :  { %1754 = vmatprep.subr.bf16.mxu0 %v6469_v48  ;;  %1918 = vmatprep.subr.bf16.mxu1 %v6472_v50  ;;  %v6556_v48 = vld [vmem:[#allocation2 + $0x4cc] ss:$16 sps:$4 sm:$0xff]   ;;  %v6551_v50 = vld [vmem:[#allocation2 + $0x4c0] ss:$16 sps:$4 sm:$0xff]  }
  0xad   :  { %1755 = vmatpush1.bf16.msra.mxu0 %v6467_v51  ;;  %1919 = vmatpush1.bf16.msra.mxu1 %v6470_v52  ;;  %v6554_v51 = vld [vmem:[#allocation2 + $0x4c8] ss:$16 sps:$4 sm:$0xff]   ;;  %v6559_v52 = vld [vmem:[#allocation2 + $0x4e4] ss:$16 sps:$4 sm:$0xff]  }
  0xae   :  { %1756 = vmatprep.subr.bf16.mxu0 %v6475_v53  ;;  %1920 = vmatprep.subr.bf16.mxu1 %v6478_v54  ;;  %v6562_v53 = vld [vmem:[#allocation2 + $0x4ec] ss:$16 sps:$4 sm:$0xff]   ;;  %v6557_v54 = vld [vmem:[#allocation2 + $0x4e0] ss:$16 sps:$4 sm:$0xff]  }
  0xb1   :  { %1757 = vmatpush1.bf16.msra.mxu0 %v6473_v55  ;;  %1921 = vmatpush1.bf16.msra.mxu1 %v6476_v56  ;;  %v6560_v55 = vld [vmem:[#allocation2 + $0x4e8] ss:$16 sps:$4 sm:$0xff]   ;;  %v6565_v56 = vld [vmem:[#allocation2 + $0x504] ss:$16 sps:$4 sm:$0xff]  }
  0xb2   :  { %1758 = vmatprep.subr.bf16.mxu0 %v6481_v57  ;;  %1922 = vmatprep.subr.bf16.mxu1 %v6484_v58  ;;  %v6568_v57 = vld [vmem:[#allocation2 + $0x50c] ss:$16 sps:$4 sm:$0xff]   ;;  %v6563_v58 = vld [vmem:[#allocation2 + $0x500] ss:$16 sps:$4 sm:$0xff]  }
  0xb5   :  { %1759 = vmatpush1.bf16.msra.mxu0 %v6479_v59  ;;  %1923 = vmatpush1.bf16.msra.mxu1 %v6482_v60  ;;  %v6566_v59 = vld [vmem:[#allocation2 + $0x508] ss:$16 sps:$4 sm:$0xff]   ;;  %v6571_v60 = vld [vmem:[#allocation2 + $0x524] ss:$16 sps:$4 sm:$0xff]  }
  0xb6   :  { %1760 = vmatprep.subr.bf16.mxu0 %v6487_v61  ;;  %1924 = vmatprep.subr.bf16.mxu1 %v6490_v62  ;;  %v6574_v61 = vld [vmem:[#allocation2 + $0x52c] ss:$16 sps:$4 sm:$0xff]   ;;  %v6569_v62 = vld [vmem:[#allocation2 + $0x520] ss:$16 sps:$4 sm:$0xff]  }
  0xb9   :  { %1761 = vmatpush1.bf16.msra.mxu0 %v6485_v63  ;;  %1925 = vmatpush1.bf16.msra.mxu1 %v6488_v0  ;;  %v6572_v63 = vld [vmem:[#allocation2 + $0x528] ss:$16 sps:$4 sm:$0xff]   ;;  %v6577_v0 = vld [vmem:[#allocation2 + $0x544] ss:$16 sps:$4 sm:$0xff]  }
  0xba   :  { %1762 = vmatprep.subr.bf16.mxu0 %v6493_v1  ;;  %1926 = vmatprep.subr.bf16.mxu1 %v6496_v2  ;;  %v6580_v1 = vld [vmem:[#allocation2 + $0x54c] ss:$16 sps:$4 sm:$0xff]   ;;  %v6575_v2 = vld [vmem:[#allocation2 + $0x540] ss:$16 sps:$4 sm:$0xff]  }
  0xbd   :  { %1763 = vmatpush1.bf16.msra.mxu0 %v6491_v3  ;;  %1927 = vmatpush1.bf16.msra.mxu1 %v6494_v4  ;;  %v6578_v3 = vld [vmem:[#allocation2 + $0x548] ss:$16 sps:$4 sm:$0xff]   ;;  %v6583_v4 = vld [vmem:[#allocation2 + $0x564] ss:$16 sps:$4 sm:$0xff]  }
  0xbe   :  { %1764 = vmatprep.subr.bf16.mxu0 %v6499_v5  ;;  %1928 = vmatprep.subr.bf16.mxu1 %v6502_v6  ;;  %v6586_v5 = vld [vmem:[#allocation2 + $0x56c] ss:$16 sps:$4 sm:$0xff]   ;;  %v6581_v6 = vld [vmem:[#allocation2 + $0x560] ss:$16 sps:$4 sm:$0xff]  }
  0xc1   :  { %1765 = vmatpush1.bf16.msra.mxu0 %v6497_v7  ;;  %1929 = vmatpush1.bf16.msra.mxu1 %v6500_v8  ;;  %v6584_v7 = vld [vmem:[#allocation2 + $0x568] ss:$16 sps:$4 sm:$0xff]   ;;  %v6589_v8 = vld [vmem:[#allocation2 + $0x584] ss:$16 sps:$4 sm:$0xff]  }
  0xc2   :  { %1766 = vmatprep.subr.bf16.mxu0 %v6505_v10  ;;  %1930 = vmatprep.subr.bf16.mxu1 %v6508_v11  ;;  %v6592_v10 = vld [vmem:[#allocation2 + $0x58c] ss:$16 sps:$4 sm:$0xff]   ;;  %v6587_v11 = vld [vmem:[#allocation2 + $0x580] ss:$16 sps:$4 sm:$0xff]  }
  0xc5   :  { %1767 = vmatpush1.bf16.msra.mxu0 %v6503_v12  ;;  %1931 = vmatpush1.bf16.msra.mxu1 %v6506_v13  ;;  %v6590_v12 = vld [vmem:[#allocation2 + $0x588] ss:$16 sps:$4 sm:$0xff]   ;;  %v6595_v13 = vld [vmem:[#allocation2 + $0x5a4] ss:$16 sps:$4 sm:$0xff]  }
  0xc6   :  { %1768 = vmatprep.subr.bf16.mxu0 %v6511_v14  ;;  %1932 = vmatprep.subr.bf16.mxu1 %v6514_v15  ;;  %v6598_v14 = vld [vmem:[#allocation2 + $0x5ac] ss:$16 sps:$4 sm:$0xff]   ;;  %v6593_v15 = vld [vmem:[#allocation2 + $0x5a0] ss:$16 sps:$4 sm:$0xff]  }
  0xc9   :  { %1769 = vmatpush1.bf16.msra.mxu0 %v6509_v16  ;;  %1933 = vmatpush1.bf16.msra.mxu1 %v6512_v17  ;;  %v6596_v16 = vld [vmem:[#allocation2 + $0x5a8] ss:$16 sps:$4 sm:$0xff]   ;;  %v6601_v17 = vld [vmem:[#allocation2 + $0x5c4] ss:$16 sps:$4 sm:$0xff]  }
  0xca   :  { %1779 = vmatprep.subr.bf16.mxu0 %v6517_v18  ;;  %1943 = vmatprep.subr.bf16.mxu1 %v6520_v19  ;;  %v6604_v18 = vld [vmem:[#allocation2 + $0x5cc] ss:$16 sps:$4 sm:$0xff]   ;;  %v362_v19 = vcombine.high %v7442_v23, %v7442_v23  ;;  %v6611_v23 = vld [vmem:[#allocation2 + $0x600] ss:$16 sps:$4 sm:$0xff]  }
  0xcc   :  { %1771 = vmatmul.mubr.bf16.vlgmr.msra.gmra.mrb[0].mxu0 %v389_v21  ;;  %1935 = vmatmul.mubr.bf16.vlgmr.msra.gmra.mrb[0].mxu1 %v389_v21  ;;  %v6602_v21 = vld [vmem:[#allocation2 + $0x5c8] ss:$16 sps:$4 sm:$0xff]  }
  0xcd   :  { %1780 = vmatpush1.bf16.msra.mxu0 %v6515_v20  ;;  %1944 = vmatpush1.bf16.msra.mxu1 %v6518_v22  ;;  %v6599_v20 = vld [vmem:[#allocation2 + $0x5c0] ss:$16 sps:$4 sm:$0xff]   ;;  %v6607_v22 = vld [vmem:[#allocation2 + $0x5e4] ss:$16 sps:$4 sm:$0xff]  }
  0xce   :  { %1781 = vmatprep.subr.bf16.mxu0 %v6523_v24  ;;  %1945 = vmatprep.subr.bf16.mxu1 %v6526_v25  ;;  %v6610_v24 = vld [vmem:[#allocation2 + $0x5ec] ss:$16 sps:$4 sm:$0xff]   ;;  %v7453_v25 = vrot.slane %v362_v19, %v7426_v49  ;;  %v6686_v19 = vld [vmem:[#allocation2 + $0x788] ss:$16 sps:$4 sm:$0xff]  }
  0xcf   :  { %1811 = vmatprep.mubr.bf16.mxu0 %v392_v31  ;;  %1975 = vmatprep.mubr.bf16.mxu1 %v392_v31 }
  0xd0   :  { %v378_v31 = vcombine.high %v7453_v25, %v7453_v25 }
  0xd1   :  { %1782 = vmatpush1.bf16.msra.mxu0 %v6521_v27  ;;  %1946 = vmatpush1.bf16.msra.mxu1 %v6524_v28  ;;  %v6608_v27 = vld [vmem:[#allocation2 + $0x5e8] ss:$16 sps:$4 sm:$0xff]   ;;  %v6613_v28 = vld [vmem:[#allocation2 + $0x604] ss:$16 sps:$4 sm:$0xff]  }
  0xd2   :  { %1783 = vmatprep.subr.bf16.mxu0 %v6529_v29  ;;  %1947 = vmatprep.subr.bf16.mxu1 %v6532_v30  ;;  %v6616_v29 = vld [vmem:[#allocation2 + $0x60c] ss:$16 sps:$4 sm:$0xff]   ;;  %v6614_v30 = vld [vmem:[#allocation2 + $0x608] ss:$16 sps:$4 sm:$0xff]  }
  0xd5   :  { %1784 = vmatpush1.bf16.msra.mxu0 %v6527_v32  ;;  %1948 = vmatpush1.bf16.msra.mxu1 %v6530_v33  ;;  %v391_v32 = vpack.c.bf16 %v7446_v26, %v7446_v26  ;;  %v6619_v33 = vld [vmem:[#allocation2 + $0x624] ss:$16 sps:$4 sm:$0xff]  }
  0xd6   :  { %1785 = vmatprep.subr.bf16.mxu0 %v6535_v34  ;;  %1949 = vmatprep.subr.bf16.mxu1 %v6538_v35  ;;  %v6622_v34 = vld [vmem:[#allocation2 + $0x62c] ss:$16 sps:$4 sm:$0xff]   ;;  %v6617_v35 = vld [vmem:[#allocation2 + $0x620] ss:$16 sps:$4 sm:$0xff]   ;;  %v6631_v26 = vld [vmem:[#allocation2 + $0x664] ss:$16 sps:$4 sm:$0xff]  }
  0xd9   :  { %1786 = vmatpush1.bf16.msra.mxu0 %v6533_v36  ;;  %1950 = vmatpush1.bf16.msra.mxu1 %v6536_v37  ;;  %v6620_v36 = vld [vmem:[#allocation2 + $0x628] ss:$16 sps:$4 sm:$0xff]   ;;  %v394_v37 = vpack.c.bf16 %v378_v31, %v378_v31  ;;  %v6701_v31 = vld [vmem:[#allocation2 + $0x7e0] ss:$16 sps:$4 sm:$0xff]  }
  0xda   :  { %1787 = vmatprep.subr.bf16.mxu0 %v6541_v38  ;;  %1951 = vmatprep.subr.bf16.mxu1 %v6544_v39  ;;  %v6625_v38 = vld [vmem:[#allocation2 + $0x644] ss:$16 sps:$4 sm:$0xff]   ;;  %v6628_v39 = vld [vmem:[#allocation2 + $0x64c] ss:$16 sps:$4 sm:$0xff]  }
  0xdd   :  { %1788 = vmatpush1.bf16.msra.mxu0 %v6539_v40  ;;  %1952 = vmatpush1.bf16.msra.mxu1 %v6542_v41  ;;  %v6623_v40 = vld [vmem:[#allocation2 + $0x640] ss:$16 sps:$4 sm:$0xff]   ;;  %v6626_v41 = vld [vmem:[#allocation2 + $0x648] ss:$16 sps:$4 sm:$0xff]  }
  0xde   :  { %1789 = vmatprep.subr.bf16.mxu0 %v6547_v42  ;;  %1953 = vmatprep.subr.bf16.mxu1 %v6550_v44  ;;  %v6634_v42 = vld [vmem:[#allocation2 + $0x66c] ss:$16 sps:$4 sm:$0xff]   ;;  %v6629_v44 = vld [vmem:[#allocation2 + $0x660] ss:$16 sps:$4 sm:$0xff]  }
  0xe1   :  { %1790 = vmatpush1.bf16.msra.mxu0 %v6545_v45  ;;  %1954 = vmatpush1.bf16.msra.mxu1 %v6548_v46  ;;  %v6632_v45 = vld [vmem:[#allocation2 + $0x668] ss:$16 sps:$4 sm:$0xff]   ;;  %v6637_v46 = vld [vmem:[#allocation2 + $0x684] ss:$16 sps:$4 sm:$0xff]  }
  0xe2   :  { %1791 = vmatprep.subr.bf16.mxu0 %v6553_v47  ;;  %1955 = vmatprep.subr.bf16.mxu1 %v6556_v48  ;;  %v6640_v47 = vld [vmem:[#allocation2 + $0x68c] ss:$16 sps:$4 sm:$0xff]   ;;  %v6635_v48 = vld [vmem:[#allocation2 + $0x680] ss:$16 sps:$4 sm:$0xff]  }
  0xe5   :  { %1792 = vmatpush1.bf16.msra.mxu0 %v6551_v50  ;;  %1956 = vmatpush1.bf16.msra.mxu1 %v6554_v51  ;;  %v6638_v50 = vld [vmem:[#allocation2 + $0x688] ss:$16 sps:$4 sm:$0xff]   ;;  %v6643_v51 = vld [vmem:[#allocation2 + $0x6a4] ss:$16 sps:$4 sm:$0xff]  }
  0xe6   :  { %1793 = vmatprep.subr.bf16.mxu0 %v6559_v52  ;;  %1957 = vmatprep.subr.bf16.mxu1 %v6562_v53  ;;  %v6646_v52 = vld [vmem:[#allocation2 + $0x6ac] ss:$16 sps:$4 sm:$0xff]   ;;  %v6641_v53 = vld [vmem:[#allocation2 + $0x6a0] ss:$16 sps:$4 sm:$0xff]  }
  0xe9   :  { %1794 = vmatpush1.bf16.msra.mxu0 %v6557_v54  ;;  %1958 = vmatpush1.bf16.msra.mxu1 %v6560_v55  ;;  %v6644_v54 = vld [vmem:[#allocation2 + $0x6a8] ss:$16 sps:$4 sm:$0xff]   ;;  %v6649_v55 = vld [vmem:[#allocation2 + $0x6c4] ss:$16 sps:$4 sm:$0xff]  }
  0xea   :  { %1795 = vmatprep.subr.bf16.mxu0 %v6565_v56  ;;  %1959 = vmatprep.subr.bf16.mxu1 %v6568_v57  ;;  %v6652_v56 = vld [vmem:[#allocation2 + $0x6cc] ss:$16 sps:$4 sm:$0xff]   ;;  %v6647_v57 = vld [vmem:[#allocation2 + $0x6c0] ss:$16 sps:$4 sm:$0xff]  }
  0xed   :  { %1796 = vmatpush1.bf16.msra.mxu0 %v6563_v58  ;;  %1960 = vmatpush1.bf16.msra.mxu1 %v6566_v59  ;;  %v6650_v58 = vld [vmem:[#allocation2 + $0x6c8] ss:$16 sps:$4 sm:$0xff]   ;;  %v6655_v59 = vld [vmem:[#allocation2 + $0x6e4] ss:$16 sps:$4 sm:$0xff]  }
  0xee   :  { %1797 = vmatprep.subr.bf16.mxu0 %v6571_v60  ;;  %1961 = vmatprep.subr.bf16.mxu1 %v6574_v61  ;;  %v6658_v60 = vld [vmem:[#allocation2 + $0x6ec] ss:$16 sps:$4 sm:$0xff]   ;;  %v6653_v61 = vld [vmem:[#allocation2 + $0x6e0] ss:$16 sps:$4 sm:$0xff]  }
  0xf1   :  { %1798 = vmatpush1.bf16.msra.mxu0 %v6569_v62  ;;  %1962 = vmatpush1.bf16.msra.mxu1 %v6572_v63  ;;  %v6656_v62 = vld [vmem:[#allocation2 + $0x6e8] ss:$16 sps:$4 sm:$0xff]   ;;  %v6661_v63 = vld [vmem:[#allocation2 + $0x704] ss:$16 sps:$4 sm:$0xff]  }
  0xf2   :  { %1799 = vmatprep.subr.bf16.mxu0 %v6577_v0  ;;  %1963 = vmatprep.subr.bf16.mxu1 %v6580_v1  ;;  %v6664_v0 = vld [vmem:[#allocation2 + $0x70c] ss:$16 sps:$4 sm:$0xff]   ;;  %v6659_v1 = vld [vmem:[#allocation2 + $0x700] ss:$16 sps:$4 sm:$0xff]  }
  0xf5   :  { %1800 = vmatpush1.bf16.msra.mxu0 %v6575_v2  ;;  %1964 = vmatpush1.bf16.msra.mxu1 %v6578_v3  ;;  %v6662_v2 = vld [vmem:[#allocation2 + $0x708] ss:$16 sps:$4 sm:$0xff]   ;;  %v6667_v3 = vld [vmem:[#allocation2 + $0x724] ss:$16 sps:$4 sm:$0xff]  }
  0xf6   :  { %1801 = vmatprep.subr.bf16.mxu0 %v6583_v4  ;;  %1965 = vmatprep.subr.bf16.mxu1 %v6586_v5  ;;  %v6670_v4 = vld [vmem:[#allocation2 + $0x72c] ss:$16 sps:$4 sm:$0xff]   ;;  %v6665_v5 = vld [vmem:[#allocation2 + $0x720] ss:$16 sps:$4 sm:$0xff]  }
  0xf9   :  { %1802 = vmatpush1.bf16.msra.mxu0 %v6581_v6  ;;  %1966 = vmatpush1.bf16.msra.mxu1 %v6584_v7  ;;  %v6668_v6 = vld [vmem:[#allocation2 + $0x728] ss:$16 sps:$4 sm:$0xff]   ;;  %v6673_v7 = vld [vmem:[#allocation2 + $0x744] ss:$16 sps:$4 sm:$0xff]  }
  0xfa   :  { %1803 = vmatprep.subr.bf16.mxu0 %v6589_v8  ;;  %1967 = vmatprep.subr.bf16.mxu1 %v6592_v10  ;;  %v6676_v8 = vld [vmem:[#allocation2 + $0x74c] ss:$16 sps:$4 sm:$0xff]   ;;  %v6671_v10 = vld [vmem:[#allocation2 + $0x740] ss:$16 sps:$4 sm:$0xff]  }
  0xfd   :  { %1804 = vmatpush1.bf16.msra.mxu0 %v6587_v11  ;;  %1968 = vmatpush1.bf16.msra.mxu1 %v6590_v12  ;;  %v6674_v11 = vld [vmem:[#allocation2 + $0x748] ss:$16 sps:$4 sm:$0xff]   ;;  %v6679_v12 = vld [vmem:[#allocation2 + $0x764] ss:$16 sps:$4 sm:$0xff]  }
  0xfe   :  { %1805 = vmatprep.subr.bf16.mxu0 %v6595_v13  ;;  %1969 = vmatprep.subr.bf16.mxu1 %v6598_v14  ;;  %v6682_v13 = vld [vmem:[#allocation2 + $0x76c] ss:$16 sps:$4 sm:$0xff]   ;;  %v6677_v14 = vld [vmem:[#allocation2 + $0x760] ss:$16 sps:$4 sm:$0xff]  }
 0x101   :  { %1806 = vmatpush1.bf16.msra.mxu0 %v6593_v15  ;;  %1970 = vmatpush1.bf16.msra.mxu1 %v6596_v16  ;;  %v6680_v15 = vld [vmem:[#allocation2 + $0x768] ss:$16 sps:$4 sm:$0xff]   ;;  %v6685_v16 = vld [vmem:[#allocation2 + $0x784] ss:$16 sps:$4 sm:$0xff]  }
 0x102   :  { %1807 = vmatprep.subr.bf16.mxu0 %v6601_v17  ;;  %1971 = vmatprep.subr.bf16.mxu1 %v6604_v18  ;;  %v6688_v17 = vld [vmem:[#allocation2 + $0x78c] ss:$16 sps:$4 sm:$0xff]   ;;  %v6683_v18 = vld [vmem:[#allocation2 + $0x780] ss:$16 sps:$4 sm:$0xff]  }
 0x105   :  { %1808 = vmatpush1.bf16.msra.mxu0 %v6599_v20  ;;  %1972 = vmatpush1.bf16.msra.mxu1 %v6602_v21  ;;  %v6691_v20 = vld [vmem:[#allocation2 + $0x7a4] ss:$16 sps:$4 sm:$0xff]   ;;  %v6694_v21 = vld [vmem:[#allocation2 + $0x7ac] ss:$16 sps:$4 sm:$0xff]  }
 0x106   :  { %1809 = vmatprep.subr.bf16.mxu0 %v6607_v22  ;;  %1973 = vmatprep.subr.bf16.mxu1 %v6610_v24  ;;  %v6689_v22 = vld [vmem:[#allocation2 + $0x7a0] ss:$16 sps:$4 sm:$0xff]   ;;  %v6692_v24 = vld [vmem:[#allocation2 + $0x7a8] ss:$16 sps:$4 sm:$0xff]  }
 0x109   :  { %1810 = vmatpush1.bf16.msra.mxu0 %v6605_v9  ;;  %1974 = vmatpush1.bf16.msra.mxu1 %v6608_v27  ;;  %v6697_v9 = vld [vmem:[#allocation2 + $0x7c4] ss:$16 sps:$4 sm:$0xff]   ;;  %v6700_v27 = vld [vmem:[#allocation2 + $0x7cc] ss:$16 sps:$4 sm:$0xff]  }
 0x10a   :  { %1820 = vmatprep.subr.bf16.mxu0 %v6613_v28  ;;  %1984 = vmatprep.subr.bf16.mxu1 %v6616_v29  ;;  %v6695_v28 = vld [vmem:[#allocation2 + $0x7c0] ss:$16 sps:$4 sm:$0xff]   ;;  %v6698_v29 = vld [vmem:[#allocation2 + $0x7c8] ss:$16 sps:$4 sm:$0xff]  }
 0x10c   :  { %1812 = vmatmul.mubr.bf16.vlgmr.msra.gmra.mrb[0].mxu0 %v391_v32  ;;  %1976 = vmatmul.mubr.bf16.vlgmr.msra.gmra.mrb[0].mxu1 %v391_v32  ;;  %v6704_v32 = vld [vmem:[#allocation2 + $0x7e8] ss:$16 sps:$4 sm:$0xff]  }
 0x10d   :  { %1821 = vmatpush1.bf16.msra.mxu0 %v6611_v23  ;;  %1985 = vmatpush1.bf16.msra.mxu1 %v6614_v30  ;;  %v6703_v23 = vld [vmem:[#allocation2 + $0x7e4] ss:$16 sps:$4 sm:$0xff]   ;;  %v6706_v30 = vld [vmem:[#allocation2 + $0x7ec] ss:$16 sps:$4 sm:$0xff]  }
 0x10e   :  { %1822 = vmatprep.subr.bf16.mxu0 %v6619_v33  ;;  %1986 = vmatprep.subr.bf16.mxu1 %v6622_v34  ;;  %v6710_v33 = vld [vmem:[#allocation4 + $0x4] ss:$8 sps:$4 sm:$0xff]   ;;  %v6708_v34 = vld [vmem:[#allocation4] ss:$8 sps:$4 sm:$0xff]  }
 0x10f   :  { %1852 = vmatprep.mubr.bf16.mxu0 %v394_v37  ;;  %2016 = vmatprep.mubr.bf16.mxu1 %v394_v37  ;;  %v6711_v37 = vld [vmem:[#allocation4 + $0x10] ss:$8 sps:$4 sm:$0xff]  }
 0x111   :  { %1823 = vmatpush1.bf16.msra.mxu0 %v6617_v35  ;;  %1987 = vmatpush1.bf16.msra.mxu1 %v6620_v36  ;;  %v393_v35 = vpack.c.bf16 %v7453_v25, %v7453_v25  ;;  %v6713_v36 = vld [vmem:[#allocation4 + $0x14] ss:$8 sps:$4 sm:$0xff]  }
 0x112   :  { %1824 = vmatprep.subr.bf16.mxu0 %v6625_v38  ;;  %1988 = vmatprep.subr.bf16.mxu1 %v6628_v39  ;;  %v6716_v38 = vld [vmem:[#allocation4 + $0x24] ss:$8 sps:$4 sm:$0xff]   ;;  %v6714_v39 = vld [vmem:[#allocation4 + $0x20] ss:$8 sps:$4 sm:$0xff]   ;;  %v6725_v25 = vld [vmem:[#allocation4 + $0x54] ss:$8 sps:$4 sm:$0xff]  }
 0x115   :  { %1825 = vmatpush1.bf16.msra.mxu0 %v6623_v40  ;;  %1989 = vmatpush1.bf16.msra.mxu1 %v6626_v41  ;;  %v6719_v40 = vld [vmem:[#allocation4 + $0x34] ss:$8 sps:$4 sm:$0xff]   ;;  %v6717_v41 = vld [vmem:[#allocation4 + $0x30] ss:$8 sps:$4 sm:$0xff]  }
 0x116   :  { %1826 = vmatprep.subr.bf16.mxu0 %v6631_v26  ;;  %1990 = vmatprep.subr.bf16.mxu1 %v6634_v42  ;;  %v6722_v26 = vld [vmem:[#allocation4 + $0x44] ss:$8 sps:$4 sm:$0xff]   ;;  %v6720_v42 = vld [vmem:[#allocation4 + $0x40] ss:$8 sps:$4 sm:$0xff]  }
 0x119   :  { %1827 = vmatpush1.bf16.msra.mxu0 %v6629_v44  ;;  %1991 = vmatpush1.bf16.msra.mxu1 %v6632_v45  ;;  %v6723_v44 = vld [vmem:[#allocation4 + $0x50] ss:$8 sps:$4 sm:$0xff]   ;;  %v6728_v45 = vld [vmem:[#allocation4 + $0x64] ss:$8 sps:$4 sm:$0xff]  }
 0x11a   :  { %1828 = vmatprep.subr.bf16.mxu0 %v6637_v46  ;;  %1992 = vmatprep.subr.bf16.mxu1 %v6640_v47  ;;  %v6726_v46 = vld [vmem:[#allocation4 + $0x60] ss:$8 sps:$4 sm:$0xff]   ;;  %v6731_v47 = vld [vmem:[#allocation4 + $0x74] ss:$8 sps:$4 sm:$0xff]  }
 0x11d   :  { %1829 = vmatpush1.bf16.msra.mxu0 %v6635_v48  ;;  %1993 = vmatpush1.bf16.msra.mxu1 %v6638_v50  ;;  %v6729_v48 = vld [vmem:[#allocation4 + $0x70] ss:$8 sps:$4 sm:$0xff]   ;;  %v6734_v50 = vld [vmem:[#allocation4 + $0x84] ss:$8 sps:$4 sm:$0xff]  }
 0x11e   :  { %1830 = vmatprep.subr.bf16.mxu0 %v6643_v51  ;;  %1994 = vmatprep.subr.bf16.mxu1 %v6646_v52  ;;  %v6732_v51 = vld [vmem:[#allocation4 + $0x80] ss:$8 sps:$4 sm:$0xff]   ;;  %v6737_v52 = vld [vmem:[#allocation4 + $0x94] ss:$8 sps:$4 sm:$0xff]  }
 0x121   :  { %1831 = vmatpush1.bf16.msra.mxu0 %v6641_v53  ;;  %1995 = vmatpush1.bf16.msra.mxu1 %v6644_v54  ;;  %v6735_v53 = vld [vmem:[#allocation4 + $0x90] ss:$8 sps:$4 sm:$0xff]   ;;  %v6740_v54 = vld [vmem:[#allocation4 + $0xa4] ss:$8 sps:$4 sm:$0xff]  }
 0x122   :  { %1832 = vmatprep.subr.bf16.mxu0 %v6649_v55  ;;  %1996 = vmatprep.subr.bf16.mxu1 %v6652_v56  ;;  %v6738_v55 = vld [vmem:[#allocation4 + $0xa0] ss:$8 sps:$4 sm:$0xff]   ;;  %v6743_v56 = vld [vmem:[#allocation4 + $0xb4] ss:$8 sps:$4 sm:$0xff]  }
 0x125   :  { %1833 = vmatpush1.bf16.msra.mxu0 %v6647_v57  ;;  %1997 = vmatpush1.bf16.msra.mxu1 %v6650_v58  ;;  %v6741_v57 = vld [vmem:[#allocation4 + $0xb0] ss:$8 sps:$4 sm:$0xff]   ;;  %v6746_v58 = vld [vmem:[#allocation4 + $0xc4] ss:$8 sps:$4 sm:$0xff]  }
 0x126   :  { %1834 = vmatprep.subr.bf16.mxu0 %v6655_v59  ;;  %1998 = vmatprep.subr.bf16.mxu1 %v6658_v60  ;;  %v6744_v59 = vld [vmem:[#allocation4 + $0xc0] ss:$8 sps:$4 sm:$0xff]   ;;  %v6749_v60 = vld [vmem:[#allocation4 + $0xd4] ss:$8 sps:$4 sm:$0xff]  }
 0x129   :  { %1835 = vmatpush1.bf16.msra.mxu0 %v6653_v61  ;;  %1999 = vmatpush1.bf16.msra.mxu1 %v6656_v62  ;;  %v6747_v61 = vld [vmem:[#allocation4 + $0xd0] ss:$8 sps:$4 sm:$0xff]   ;;  %v6752_v62 = vld [vmem:[#allocation4 + $0xe4] ss:$8 sps:$4 sm:$0xff]  }
 0x12a   :  { %1836 = vmatprep.subr.bf16.mxu0 %v6661_v63  ;;  %2000 = vmatprep.subr.bf16.mxu1 %v6664_v0  ;;  %v6750_v63 = vld [vmem:[#allocation4 + $0xe0] ss:$8 sps:$4 sm:$0xff]   ;;  %v6755_v0 = vld [vmem:[#allocation4 + $0xf4] ss:$8 sps:$4 sm:$0xff]  }
 0x12d   :  { %1837 = vmatpush1.bf16.msra.mxu0 %v6659_v1  ;;  %2001 = vmatpush1.bf16.msra.mxu1 %v6662_v2  ;;  %v6753_v1 = vld [vmem:[#allocation4 + $0xf0] ss:$8 sps:$4 sm:$0xff]   ;;  %v6758_v2 = vld [vmem:[#allocation4 + $0x104] ss:$8 sps:$4 sm:$0xff]  }
 0x12e   :  { %1838 = vmatprep.subr.bf16.mxu0 %v6667_v3  ;;  %2002 = vmatprep.subr.bf16.mxu1 %v6670_v4  ;;  %v6804_v3 = vld [vmem:[#allocation6 + $0x40] sm:$0xff]  }
 0x12f   :  { %v6805_v4 = vld [vmem:[#allocation6] sm:$0xff]  }
 0x131   :  { %1839 = vmatpush1.bf16.msra.mxu0 %v6665_v5  ;;  %2003 = vmatpush1.bf16.msra.mxu1 %v6668_v6  ;;  %v6806_v5 = vld [vmem:[#allocation6 + $0x48] sm:$0xff]  }
 0x132   :  { %1840 = vmatprep.subr.bf16.mxu0 %v6673_v7  ;;  %2004 = vmatprep.subr.bf16.mxu1 %v6676_v8  ;;  %v6807_v6 = vld [vmem:[#allocation6 + $0x8] sm:$0xff]   ;;  %v6808_v7 = vld [vmem:[#allocation6 + $0x50] sm:$0xff]  }
 0x133   :  { %v6809_v8 = vld [vmem:[#allocation6 + $0x10] sm:$0xff]  }
 0x135   :  { %1841 = vmatpush1.bf16.msra.mxu0 %v6671_v10  ;;  %2005 = vmatpush1.bf16.msra.mxu1 %v6674_v11  ;;  %v6810_v10 = vld [vmem:[#allocation6 + $0x58] sm:$0xff]  }
 0x136   :  { %1842 = vmatprep.subr.bf16.mxu0 %v6679_v12  ;;  %2006 = vmatprep.subr.bf16.mxu1 %v6682_v13  ;;  %v6811_v11 = vld [vmem:[#allocation6 + $0x18] sm:$0xff]   ;;  %v6812_v12 = vld [vmem:[#allocation6 + $0x60] sm:$0xff]  }
 0x137   :  { %v6813_v13 = vld [vmem:[#allocation6 + $0x20] sm:$0xff]  }
 0x139   :  { %1843 = vmatpush1.bf16.msra.mxu0 %v6677_v14  ;;  %2007 = vmatpush1.bf16.msra.mxu1 %v6680_v15  ;;  %v6814_v14 = vld [vmem:[#allocation6 + $0x68] sm:$0xff]  }
 0x13a   :  { %1844 = vmatprep.subr.bf16.mxu0 %v6685_v16  ;;  %2008 = vmatprep.subr.bf16.mxu1 %v6688_v17  ;;  %v6815_v15 = vld [vmem:[#allocation6 + $0x28] sm:$0xff]   ;;  %v7462_v16 = vsub.s32 0, %v7423_v43 }
 0x13b   :  { %v7464_v17 = vld [vmem:[#allocation7] ss:$8 sm:$0xf] }
 0x13d   :  { %1845 = vmatpush1.bf16.msra.mxu0 %v6683_v18  ;;  %2009 = vmatpush1.bf16.msra.mxu1 %v6686_v19  ;;  %v7467_v18 = vsub.s32 1, %v7423_v43  ;;  %v411_v19 = vsub.s32 3, %v7423_v43 }
 0x13e   :  { %1846 = vmatprep.subr.bf16.mxu0 %v6691_v20  ;;  %2010 = vmatprep.subr.bf16.mxu1 %v6694_v21  ;;  %v400_v20 = vrot.slane %v7464_v17, %v7462_v16 }
 0x13f   :  { %v404_v21 = vrot.slane %v7464_v17, %v7467_v18 }
 0x141   :  { %1847 = vmatpush1.bf16.msra.mxu0 %v6689_v22  ;;  %2011 = vmatpush1.bf16.msra.mxu1 %v6692_v24  ;;  %v412_v22 = vrot.slane %v7464_v17, %v411_v19 }
 0x142   :  { %1848 = vmatprep.subr.bf16.mxu0 %v6697_v9  ;;  %2012 = vmatprep.subr.bf16.mxu1 %v6700_v27 }
 0x145   :  { %1849 = vmatpush1.bf16.msra.mxu0 %v6695_v28  ;;  %2013 = vmatpush1.bf16.msra.mxu1 %v6698_v29 }
 0x146   :  { %1850 = vmatprep.subr.bf16.mxu0 %v6703_v23  ;;  %2014 = vmatprep.subr.bf16.mxu1 %v6706_v30 }
 0x149   :  { %1851 = vmatpush1.bf16.msra.mxu0 %v6701_v31  ;;  %2015 = vmatpush1.bf16.msra.mxu1 %v6704_v32 }
 0x14a   :  { %2430 = vmatprep.subr.bf16.mxu0 %v6710_v33  ;;  %6028 = vmatprep.subr.bf16.mxu1 %v6804_v3  ;;  %v6797_v3 = vld [vmem:[#allocation4 + $0x1d4] ss:$8 sps:$4 sm:$0xff]  }
 0x14c   :  { %1853 = vmatmul.mubr.bf16.vlgmr.msra.gmra.mrb[0].mxu0 %v393_v35  ;;  %2017 = vmatmul.mubr.bf16.vlgmr.msra.gmra.mrb[0].mxu1 %v393_v35 }
 0x14d   :  { %2431 = vmatpush1.bf16.msra.mxu0 %v6708_v34  ;;  %6029 = vmatpush3.bf16.msra.mxu1 %v6805_v4  ;;  %v6795_v4 = vld [vmem:[#allocation4 + $0x1d0] ss:$8 sps:$4 sm:$0xff]  }
 0x14e   :  { %2432 = vmatprep.subr.bf16.mxu0 %v6713_v36  ;;  %6030 = vmatprep.subr.bf16.mxu1 %v6806_v5 }
 0x151   :  { %2433 = vmatpush1.bf16.msra.mxu0 %v6711_v37  ;;  %6031 = vmatpush3.bf16.msra.mxu1 %v6807_v6  ;;  %v6800_v6 = vld [vmem:[#allocation4 + $0x1e4] ss:$8 sps:$4 sm:$0xff]  }
 0x152   :  { %2434 = vmatprep.subr.bf16.mxu0 %v6716_v38  ;;  %6032 = vmatprep.subr.bf16.mxu1 %v6808_v7  ;;  %v6798_v7 = vld [vmem:[#allocation4 + $0x1e0] ss:$8 sps:$4 sm:$0xff]  }
 0x155   :  { %2435 = vmatpush1.bf16.msra.mxu0 %v6714_v39  ;;  %6033 = vmatpush3.bf16.msra.mxu1 %v6809_v8  ;;  %v6756_v39 = vld [vmem:[#allocation4 + $0x100] ss:$8 sps:$4 sm:$0xff]  }
 0x156   :  { %2436 = vmatprep.subr.bf16.mxu0 %v6719_v40  ;;  %6034 = vmatprep.subr.bf16.mxu1 %v6810_v10  ;;  %v6803_v10 = vld [vmem:[#allocation4 + $0x1f4] ss:$8 sps:$4 sm:$0xff]  }
 0x159   :  { %2437 = vmatpush1.bf16.msra.mxu0 %v6717_v41  ;;  %6035 = vmatpush3.bf16.msra.mxu1 %v6811_v11  ;;  %v6761_v41 = vld [vmem:[#allocation4 + $0x114] ss:$8 sps:$4 sm:$0xff]   ;;  %v6801_v11 = vld [vmem:[#allocation4 + $0x1f0] ss:$8 sps:$4 sm:$0xff]  }
 0x15a   :  { %2438 = vmatprep.subr.bf16.mxu0 %v6722_v26  ;;  %6036 = vmatprep.subr.bf16.mxu1 %v6812_v12 }
 0x15d   :  { %2439 = vmatpush1.bf16.msra.mxu0 %v6720_v42  ;;  %6037 = vmatpush3.bf16.msra.mxu1 %v6813_v13  ;;  %v6759_v42 = vld [vmem:[#allocation4 + $0x110] ss:$8 sps:$4 sm:$0xff]  }
 0x15e   :  { %2440 = vmatprep.subr.bf16.mxu0 %v6725_v25  ;;  %6038 = vmatprep.subr.bf16.mxu1 %v6814_v14  ;;  %v6764_v25 = vld [vmem:[#allocation4 + $0x124] ss:$8 sps:$4 sm:$0xff]  }
 0x15f   :  { %v6816_v14 = vld [vmem:[#allocation6 + $0x70] sm:$0xff]  }
 0x161   :  { %2441 = vmatpush1.bf16.msra.mxu0 %v6723_v44  ;;  %6039 = vmatpush3.bf16.msra.mxu1 %v6815_v15  ;;  %v6762_v44 = vld [vmem:[#allocation4 + $0x120] ss:$8 sps:$4 sm:$0xff]  }
 0x162   :  { %2442 = vmatprep.subr.bf16.mxu0 %v6728_v45  ;;  %v6767_v45 = vld [vmem:[#allocation4 + $0x134] ss:$8 sps:$4 sm:$0xff]   ;;  %v6817_v15 = vld [vmem:[#allocation6 + $0x30] sm:$0xff]   ;;  %6040 = vmatprep.subr.bf16.mxu1 %v6816_v14 }
 0x163   :  { %v6966_v14 = vld [vmem:[#allocation2 + $0xb0c] ss:$16 sps:$4 sm:$0xff]  }
 0x165   :  { %2443 = vmatpush1.bf16.msra.mxu0 %v6726_v46  ;;  %v6765_v46 = vld [vmem:[#allocation4 + $0x130] ss:$8 sps:$4 sm:$0xff]   ;;  %6041 = vmatpush3.bf16.msra.mxu1 %v6817_v15 }
 0x166   :  { %2444 = vmatprep.subr.bf16.mxu0 %v6731_v47  ;;  %v6770_v47 = vld [vmem:[#allocation4 + $0x144] ss:$8 sps:$4 sm:$0xff]   ;;  %v6964_v15 = vld [vmem:[#allocation2 + $0xb08] ss:$16 sps:$4 sm:$0xff]  }
 0x169   :  { %2445 = vmatpush1.bf16.msra.mxu0 %v6729_v48  ;;  %v6768_v48 = vld [vmem:[#allocation4 + $0x140] ss:$8 sps:$4 sm:$0xff]  }
 0x16a   :  { %2446 = vmatprep.subr.bf16.mxu0 %v6734_v50  ;;  %v6773_v50 = vld [vmem:[#allocation4 + $0x154] ss:$8 sps:$4 sm:$0xff]  }
 0x16d   :  { %2447 = vmatpush1.bf16.msra.mxu0 %v6732_v51  ;;  %v6771_v51 = vld [vmem:[#allocation4 + $0x150] ss:$8 sps:$4 sm:$0xff]  }
 0x16e   :  { %2448 = vmatprep.subr.bf16.mxu0 %v6737_v52  ;;  %v6776_v52 = vld [vmem:[#allocation4 + $0x164] ss:$8 sps:$4 sm:$0xff]  }
 0x171   :  { %2449 = vmatpush1.bf16.msra.mxu0 %v6735_v53  ;;  %v6774_v53 = vld [vmem:[#allocation4 + $0x160] ss:$8 sps:$4 sm:$0xff]  }
 0x172   :  { %2450 = vmatprep.subr.bf16.mxu0 %v6740_v54  ;;  %v6779_v54 = vld [vmem:[#allocation4 + $0x174] ss:$8 sps:$4 sm:$0xff]  }
 0x175   :  { %2451 = vmatpush1.bf16.msra.mxu0 %v6738_v55  ;;  %v6777_v55 = vld [vmem:[#allocation4 + $0x170] ss:$8 sps:$4 sm:$0xff]  }
 0x176   :  { %2452 = vmatprep.subr.bf16.mxu0 %v6743_v56  ;;  %v6782_v56 = vld [vmem:[#allocation4 + $0x184] ss:$8 sps:$4 sm:$0xff]  }
 0x179   :  { %2453 = vmatpush1.bf16.msra.mxu0 %v6741_v57  ;;  %v6780_v57 = vld [vmem:[#allocation4 + $0x180] ss:$8 sps:$4 sm:$0xff]  }
 0x17a   :  { %2454 = vmatprep.subr.bf16.mxu0 %v6746_v58  ;;  %v6785_v58 = vld [vmem:[#allocation4 + $0x194] ss:$8 sps:$4 sm:$0xff]  }
 0x17d   :  { %2455 = vmatpush1.bf16.msra.mxu0 %v6744_v59  ;;  %v6783_v59 = vld [vmem:[#allocation4 + $0x190] ss:$8 sps:$4 sm:$0xff]  }
 0x17e   :  { %2456 = vmatprep.subr.bf16.mxu0 %v6749_v60  ;;  %v6788_v60 = vld [vmem:[#allocation4 + $0x1a4] ss:$8 sps:$4 sm:$0xff]  }
 0x181   :  { %2457 = vmatpush1.bf16.msra.mxu0 %v6747_v61  ;;  %v6786_v61 = vld [vmem:[#allocation4 + $0x1a0] ss:$8 sps:$4 sm:$0xff]  }
 0x182   :  { %2458 = vmatprep.subr.bf16.mxu0 %v6752_v62  ;;  %v6791_v62 = vld [vmem:[#allocation4 + $0x1b4] ss:$8 sps:$4 sm:$0xff]  }
 0x185   :  { %2459 = vmatpush1.bf16.msra.mxu0 %v6750_v63  ;;  %v6789_v63 = vld [vmem:[#allocation4 + $0x1b0] ss:$8 sps:$4 sm:$0xff]  }
 0x186   :  { %2460 = vmatprep.subr.bf16.mxu0 %v6755_v0  ;;  %v6794_v0 = vld [vmem:[#allocation4 + $0x1c4] ss:$8 sps:$4 sm:$0xff]  }
 0x189   :  { %2461 = vmatpush1.bf16.msra.mxu0 %v6753_v1  ;;  %v6792_v1 = vld [vmem:[#allocation4 + $0x1c0] ss:$8 sps:$4 sm:$0xff]  }
 0x18a   :  { %2471 = vmatprep.subr.bf16.mxu0 %v6758_v2  ;;  %v407_v2 = vsub.s32 2, %v7423_v43  ;;  %v7123_v43 = vld [vmem:[#allocation6 + $0xf8] sm:$0xff]  }
 0x18c   :  { %v408_v5 = vrot.slane %v7464_v17, %v407_v2  ;;  %v6818_v17 = vld [vmem:[#allocation6 + $0x78] sm:$0xff]  }
 0x18d   :  { %6042 = vmatprep.subr.bf16.mxu1 %v6818_v17  ;;  %v6972_v17 = vld [vmem:[#allocation2 + $0xb2c] ss:$16 sps:$4 sm:$0xff]  }
 0x21f   :  { %v1854_v24 = vpop.f32.mrb[0].mxu0  ;;  %v7477_v9 = vpop.f32.mrb[0].mxu1 }
 0x220   :  { %v6254_v27 = vadd.f32 %v1854_v24, %v400_v20  ;;  %v1856_v28 = vpop.f32.mrb[1].mxu0  ;;  %v2020_v29 = vpop.f32.mrb[1].mxu1  ;;  %v6256_v8 = vadd.f32 %v7477_v9, %v408_v5  ;;  %v6819_v20 = vld [vmem:[#allocation6 + $0x38] sm:$0xff]   ;;  %v6825_v24 = vld [vmem:[#allocation2 + $0x804] ss:$16 sps:$4 sm:$0xff]  }
 0x221   :  { %v6255_v23 = vadd.f32 %v1856_v28, %v404_v21  ;;  %v6257_v30 = vadd.f32 %v2020_v29, %v412_v22  ;;  %v1858_v31 = vpop.f32.mrb[2].mxu0  ;;  %v2022_v32 = vpop.f32.mrb[2].mxu1  ;;  %v6822_v21 = vld [vmem:[#allocation2 + $0x80c] ss:$16 sps:$4 sm:$0xff]   ;;  %v6820_v22 = vld [vmem:[#allocation2 + $0x808] ss:$16 sps:$4 sm:$0xff]   ;;  %6043 = vmatpush3.bf16.msra.mxu1 %v6819_v20 }
 0x222   :  { %v2025_v33 = vmax.f32 %v6254_v27, 0.0  ;;  %v1859_v34 = vpop.f32.mrb[3].mxu0  ;;  %v2023_v35 = vpop.f32.mrb[3].mxu1  ;;  %v2027_v12 = vmax.f32 %v6256_v8, 0.0  ;;  %3503 = vmatprep.subr.bf16.mxu1 %v6825_v24  ;;  %v6828_v9 = vld [vmem:[#allocation2 + $0x82c] ss:$16 sps:$4 sm:$0xff]  }
 0x223   :  { %v2026_v36 = vmax.f32 %v6255_v23, 0.0  ;;  %v2028_v37 = vmax.f32 %v6257_v30, 0.0  ;;  %v6826_v27 = vld [vmem:[#allocation2 + $0x828] ss:$16 sps:$4 sm:$0xff]   ;;  %v6834_v28 = vld [vmem:[#allocation2 + $0x84c] ss:$16 sps:$4 sm:$0xff]  }
 0x224   :  { %v2093_v40 = vpack.c.bf16 %v2025_v33, %v2025_v33  ;;  %v2095_v13 = vpack.c.bf16 %v2027_v12, %v2027_v12  ;;  %v6832_v29 = vld [vmem:[#allocation2 + $0x848] ss:$16 sps:$4 sm:$0xff]   ;;  %v6840_v23 = vld [vmem:[#allocation2 + $0x86c] ss:$16 sps:$4 sm:$0xff]  }
 0x225   :  { %v2094_v38 = vpack.c.bf16 %v2026_v36, %v2026_v36  ;;  %v2096_v26 = vpack.c.bf16 %v2028_v37, %v2028_v37  ;;  %v6838_v30 = vld [vmem:[#allocation2 + $0x868] ss:$16 sps:$4 sm:$0xff]   ;;  %v6846_v31 = vld [vmem:[#allocation2 + $0x88c] ss:$16 sps:$4 sm:$0xff]  }
 0x226   :  { %v6844_v32 = vld [vmem:[#allocation2 + $0x888] ss:$16 sps:$4 sm:$0xff]   ;;  %v6852_v33 = vld [vmem:[#allocation2 + $0x8ac] ss:$16 sps:$4 sm:$0xff]  }
 0x227   :  { %2462 = vmatprep.mubr.bf16.mxu0 %v2094_v38  ;;  %v6850_v34 = vld [vmem:[#allocation2 + $0x8a8] ss:$16 sps:$4 sm:$0xff]   ;;  %v6858_v35 = vld [vmem:[#allocation2 + $0x8cc] ss:$16 sps:$4 sm:$0xff]  }
 0x228   :  { %2463 = vmatmul.mubr.bf16.vlgmr.msra.gmra.mrb[4].mxu0 %v2093_v40  ;;  %v6856_v36 = vld [vmem:[#allocation2 + $0x8c8] ss:$16 sps:$4 sm:$0xff]   ;;  %v6864_v37 = vld [vmem:[#allocation2 + $0x8ec] ss:$16 sps:$4 sm:$0xff]  }
 0x229   :  { %2472 = vmatpush1.bf16.msra.mxu0 %v6756_v39  ;;  %2503 = vmatprep.mubr.bf16.mxu0 %v2096_v26  ;;  %v6862_v38 = vld [vmem:[#allocation2 + $0x8e8] ss:$16 sps:$4 sm:$0xff]   ;;  %v6870_v39 = vld [vmem:[#allocation2 + $0x90c] ss:$16 sps:$4 sm:$0xff]  }
 0x22a   :  { %2473 = vmatprep.subr.bf16.mxu0 %v6761_v41  ;;  %v6868_v40 = vld [vmem:[#allocation2 + $0x908] ss:$16 sps:$4 sm:$0xff]   ;;  %v6876_v41 = vld [vmem:[#allocation2 + $0x92c] ss:$16 sps:$4 sm:$0xff]  }
 0x22b   :  { %v6874_v26 = vld [vmem:[#allocation2 + $0x928] ss:$16 sps:$4 sm:$0xff]   ;;  %v6942_v5 = vld [vmem:[#allocation2 + $0xa8c] ss:$16 sps:$4 sm:$0xff]  }
 0x22c   :  { %v6946_v8 = vld [vmem:[#allocation2 + $0xaa8] ss:$16 sps:$4 sm:$0xff]   ;;  %v6960_v12 = vld [vmem:[#allocation2 + $0xaec] ss:$16 sps:$4 sm:$0xff]  }
 0x22d   :  { %2474 = vmatpush1.bf16.msra.mxu0 %v6759_v42  ;;  %v6882_v42 = vld [vmem:[#allocation2 + $0x94c] ss:$16 sps:$4 sm:$0xff]   ;;  %v6970_v20 = vld [vmem:[#allocation2 + $0xb28] ss:$16 sps:$4 sm:$0xff]  }
 0x22e   :  { %2475 = vmatprep.subr.bf16.mxu0 %v6764_v25  ;;  %v6880_v25 = vld [vmem:[#allocation2 + $0x948] ss:$16 sps:$4 sm:$0xff]   ;;  %v6984_v24 = vld [vmem:[#allocation2 + $0xb6c] ss:$16 sps:$4 sm:$0xff]  }
 0x231   :  { %2476 = vmatpush1.bf16.msra.mxu0 %v6762_v44  ;;  %v6888_v44 = vld [vmem:[#allocation2 + $0x96c] ss:$16 sps:$4 sm:$0xff]  }
 0x232   :  { %2477 = vmatprep.subr.bf16.mxu0 %v6767_v45  ;;  %v6886_v45 = vld [vmem:[#allocation2 + $0x968] ss:$16 sps:$4 sm:$0xff]  }
 0x235   :  { %2478 = vmatpush1.bf16.msra.mxu0 %v6765_v46  ;;  %v6894_v46 = vld [vmem:[#allocation2 + $0x98c] ss:$16 sps:$4 sm:$0xff]  }
 0x236   :  { %2479 = vmatprep.subr.bf16.mxu0 %v6770_v47  ;;  %v6892_v47 = vld [vmem:[#allocation2 + $0x988] ss:$16 sps:$4 sm:$0xff]  }
 0x239   :  { %2480 = vmatpush1.bf16.msra.mxu0 %v6768_v48  ;;  %v6900_v48 = vld [vmem:[#allocation2 + $0x9ac] ss:$16 sps:$4 sm:$0xff]  }
 0x23a   :  { %2481 = vmatprep.subr.bf16.mxu0 %v6773_v50  ;;  %v6898_v50 = vld [vmem:[#allocation2 + $0x9a8] ss:$16 sps:$4 sm:$0xff]  }
 0x23d   :  { %2482 = vmatpush1.bf16.msra.mxu0 %v6771_v51  ;;  %v6906_v51 = vld [vmem:[#allocation2 + $0x9cc] ss:$16 sps:$4 sm:$0xff]  }
 0x23e   :  { %2483 = vmatprep.subr.bf16.mxu0 %v6776_v52  ;;  %v6904_v52 = vld [vmem:[#allocation2 + $0x9c8] ss:$16 sps:$4 sm:$0xff]  }
 0x241   :  { %2484 = vmatpush1.bf16.msra.mxu0 %v6774_v53  ;;  %v7487_v53 = vld [vmem:[%s7657_s1] sm:$0xff] }
 0x242   :  { %2485 = vmatprep.subr.bf16.mxu0 %v6779_v54  ;;  %v6912_v54 = vld [vmem:[#allocation2 + $0x9ec] ss:$16 sps:$4 sm:$0xff]  }
 0x245   :  { %2486 = vmatpush1.bf16.msra.mxu0 %v6777_v55  ;;  %v2822_v55 = vrot.slane %v7487_v53, %v7426_v49 }
 0x246   :  { %2487 = vmatprep.subr.bf16.mxu0 %v6782_v56  ;;  %v6910_v56 = vld [vmem:[#allocation2 + $0x9e8] ss:$16 sps:$4 sm:$0xff]  }
 0x249   :  { %2488 = vmatpush1.bf16.msra.mxu0 %v6780_v57  ;;  %v2830_v57 = vcombine.high %v2822_v55, %v2822_v55 }
 0x24a   :  { %2489 = vmatprep.subr.bf16.mxu0 %v6785_v58 }
 0x24b   :  { %v7491_v58 = vpack.c.bf16 %v2830_v57, %v2830_v57  ;;  %v6841_v57 = vld [vmem:[#allocation2 + $0x860] ss:$16 sps:$4 sm:$0xff]  }
 0x24d   :  { %2490 = vmatpush1.bf16.msra.mxu0 %v6783_v59  ;;  %v6918_v59 = vld [vmem:[#allocation2 + $0xa0c] ss:$16 sps:$4 sm:$0xff]  }
 0x24e   :  { %2491 = vmatprep.subr.bf16.mxu0 %v6788_v60  ;;  %v6916_v60 = vld [vmem:[#allocation2 + $0xa08] ss:$16 sps:$4 sm:$0xff]  }
 0x251   :  { %2492 = vmatpush1.bf16.msra.mxu0 %v6786_v61  ;;  %v7493_v61 = vpack.c.bf16 %v2822_v55, %v2822_v55  ;;  %v6835_v55 = vld [vmem:[#allocation2 + $0x840] ss:$16 sps:$4 sm:$0xff]  }
 0x252   :  { %2493 = vmatprep.subr.bf16.mxu0 %v6791_v62  ;;  %v6924_v62 = vld [vmem:[#allocation2 + $0xa2c] ss:$16 sps:$4 sm:$0xff]  }
 0x255   :  { %2494 = vmatpush1.bf16.msra.mxu0 %v6789_v63  ;;  %v6922_v63 = vld [vmem:[#allocation2 + $0xa28] ss:$16 sps:$4 sm:$0xff]  }
 0x256   :  { %2495 = vmatprep.subr.bf16.mxu0 %v6794_v0  ;;  %v6930_v0 = vld [vmem:[#allocation2 + $0xa4c] ss:$16 sps:$4 sm:$0xff]  }
 0x259   :  { %2496 = vmatpush1.bf16.msra.mxu0 %v6792_v1  ;;  %v6928_v1 = vld [vmem:[#allocation2 + $0xa48] ss:$16 sps:$4 sm:$0xff]  }
 0x25a   :  { %2497 = vmatprep.subr.bf16.mxu0 %v6797_v3  ;;  %v6936_v3 = vld [vmem:[#allocation2 + $0xa6c] ss:$16 sps:$4 sm:$0xff]  }
 0x25d   :  { %2498 = vmatpush1.bf16.msra.mxu0 %v6795_v4  ;;  %v6934_v4 = vld [vmem:[#allocation2 + $0xa68] ss:$16 sps:$4 sm:$0xff]  }
 0x25e   :  { %2499 = vmatprep.subr.bf16.mxu0 %v6800_v6  ;;  %v6940_v6 = vld [vmem:[#allocation2 + $0xa88] ss:$16 sps:$4 sm:$0xff]  }
 0x261   :  { %2500 = vmatpush1.bf16.msra.mxu0 %v6798_v7  ;;  %v6948_v7 = vld [vmem:[#allocation2 + $0xaac] ss:$16 sps:$4 sm:$0xff]  }
 0x262   :  { %2501 = vmatprep.subr.bf16.mxu0 %v6803_v10  ;;  %v6954_v10 = vld [vmem:[#allocation2 + $0xacc] ss:$16 sps:$4 sm:$0xff]  }
 0x265   :  { %2502 = vmatpush1.bf16.msra.mxu0 %v6801_v11  ;;  %v6952_v11 = vld [vmem:[#allocation2 + $0xac8] ss:$16 sps:$4 sm:$0xff]  }
 0x266   :  { %3585 = vmatprep.subr.bf16.mxu0 %v6822_v21  ;;  %v6978_v21 = vld [vmem:[#allocation2 + $0xb4c] ss:$16 sps:$4 sm:$0xff]  }
 0x268   :  { %2504 = vmatmul.mubr.bf16.vlgmr.msra.gmra.mrb[4].mxu0 %v2095_v13  ;;  %v6958_v13 = vld [vmem:[#allocation2 + $0xae8] ss:$16 sps:$4 sm:$0xff]  }
 0x269   :  { %3586 = vmatpush1.bf16.msra.mxu0 %v6820_v22  ;;  %3617 = vmatprep.mubr.bf16.mxu0 %v7491_v58  ;;  %v6976_v22 = vld [vmem:[#allocation2 + $0xb48] ss:$16 sps:$4 sm:$0xff]  }
 0x26a   :  { %3587 = vmatprep.subr.bf16.mxu0 %v6828_v9  ;;  %v6982_v9 = vld [vmem:[#allocation2 + $0xb68] ss:$16 sps:$4 sm:$0xff]  }
 0x26d   :  { %3588 = vmatpush1.bf16.msra.mxu0 %v6826_v27  ;;  %v6990_v27 = vld [vmem:[#allocation2 + $0xb8c] ss:$16 sps:$4 sm:$0xff]  }
 0x26e   :  { %3589 = vmatprep.subr.bf16.mxu0 %v6834_v28  ;;  %v6988_v28 = vld [vmem:[#allocation2 + $0xb88] ss:$16 sps:$4 sm:$0xff]  }
 0x271   :  { %3590 = vmatpush1.bf16.msra.mxu0 %v6832_v29  ;;  %v6996_v29 = vld [vmem:[#allocation2 + $0xbac] ss:$16 sps:$4 sm:$0xff]  }
 0x272   :  { %3591 = vmatprep.subr.bf16.mxu0 %v6840_v23  ;;  %v6994_v23 = vld [vmem:[#allocation2 + $0xba8] ss:$16 sps:$4 sm:$0xff]  }
 0x275   :  { %3592 = vmatpush1.bf16.msra.mxu0 %v6838_v30  ;;  %v2098_v30 = vld [vmem:[#allocation7 + $0x2] ss:$8 sm:$0x3] }
 0x276   :  { %3593 = vmatprep.subr.bf16.mxu0 %v6846_v31  ;;  %v7002_v31 = vld [vmem:[#allocation2 + $0xbcc] ss:$16 sps:$4 sm:$0xff]  }
 0x279   :  { %3594 = vmatpush1.bf16.msra.mxu0 %v6844_v32  ;;  %v2103_v32 = vrot.slane %v2098_v30, %v7462_v16 }
 0x27a   :  { %3595 = vmatprep.subr.bf16.mxu0 %v6852_v33  ;;  %v7000_v33 = vld [vmem:[#allocation2 + $0xbc8] ss:$16 sps:$4 sm:$0xff]  }
 0x27d   :  { %3596 = vmatpush1.bf16.msra.mxu0 %v6850_v34  ;;  %v2815_v34 = vcombine.high %v7487_v53, %v7487_v53  ;;  %v6829_v53 = vld [vmem:[#allocation2 + $0x820] ss:$16 sps:$4 sm:$0xff]  }
 0x27e   :  { %3597 = vmatprep.subr.bf16.mxu0 %v6858_v35  ;;  %v2107_v35 = vrot.slane %v2098_v30, %v7467_v18  ;;  %v6931_v30 = vld [vmem:[#allocation2 + $0xa40] ss:$16 sps:$4 sm:$0xff]  }
 0x281   :  { %3598 = vmatpush1.bf16.msra.mxu0 %v6856_v36  ;;  %v2829_v36 = vrot.slane %v2815_v34, %v7426_v49  ;;  %v6943_v34 = vld [vmem:[#allocation2 + $0xa80] ss:$16 sps:$4 sm:$0xff]  }
 0x282   :  { %3599 = vmatprep.subr.bf16.mxu0 %v6864_v37 }
 0x285   :  { %3600 = vmatpush1.bf16.msra.mxu0 %v6862_v38  ;;  %v7008_v38 = vld [vmem:[#allocation2 + $0xbec] ss:$16 sps:$4 sm:$0xff]  }
 0x286   :  { %3601 = vmatprep.subr.bf16.mxu0 %v6870_v39 }
 0x289   :  { %3602 = vmatpush1.bf16.msra.mxu0 %v6868_v40 }
 0x28a   :  { %3603 = vmatprep.subr.bf16.mxu0 %v6876_v41  ;;  %v7006_v41 = vld [vmem:[#allocation2 + $0xbe8] ss:$16 sps:$4 sm:$0xff]  }
 0x28d   :  { %3604 = vmatpush1.bf16.msra.mxu0 %v6874_v26  ;;  %v2831_v26 = vcombine.high %v2829_v36, %v2829_v36 }
 0x28e   :  { %3605 = vmatprep.subr.bf16.mxu0 %v6882_v42 }
 0x291   :  { %3606 = vmatpush1.bf16.msra.mxu0 %v6880_v25 }
 0x292   :  { %3607 = vmatprep.subr.bf16.mxu0 %v6888_v44 }
 0x295   :  { %3608 = vmatpush1.bf16.msra.mxu0 %v6886_v45 }
 0x296   :  { %3609 = vmatprep.subr.bf16.mxu0 %v6894_v46  ;;  %v7502_v46 = vpack.c.bf16 %v2831_v26, %v2831_v26  ;;  %v6975_v26 = vld [vmem:[#allocation2 + $0xb24] ss:$16 sps:$4 sm:$0xff]  }
 0x299   :  { %3610 = vmatpush1.bf16.msra.mxu0 %v6892_v47 }
 0x29a   :  { %3611 = vmatprep.subr.bf16.mxu0 %v6900_v48  ;;  %v7504_v48 = vpack.c.bf16 %v2829_v36, %v2829_v36  ;;  %v6957_v36 = vld [vmem:[#allocation2 + $0xac4] ss:$16 sps:$4 sm:$0xff]  }
 0x29d   :  { %3612 = vmatpush1.bf16.msra.mxu0 %v6898_v50  ;;  %v6823_v50 = vld [vmem:[#allocation2 + $0x800] ss:$16 sps:$4 sm:$0xff]  }
 0x29e   :  { %3613 = vmatprep.subr.bf16.mxu0 %v6906_v51 }
 0x2a1   :  { %3614 = vmatpush1.bf16.msra.mxu0 %v6904_v52  ;;  %v6831_v52 = vld [vmem:[#allocation2 + $0x824] ss:$16 sps:$4 sm:$0xff]  }
 0x2a2   :  { %3615 = vmatprep.subr.bf16.mxu0 %v6912_v54  ;;  %v6837_v54 = vld [vmem:[#allocation2 + $0x844] ss:$16 sps:$4 sm:$0xff]  }
 0x2a5   :  { %3616 = vmatpush1.bf16.msra.mxu0 %v6910_v56  ;;  %v6843_v56 = vld [vmem:[#allocation2 + $0x864] ss:$16 sps:$4 sm:$0xff]  }
 0x2a6   :  { %3626 = vmatprep.subr.bf16.mxu0 %v6918_v59  ;;  %v6849_v59 = vld [vmem:[#allocation2 + $0x884] ss:$16 sps:$4 sm:$0xff]  }
 0x2a8   :  { %3618 = vmatmul.mubr.bf16.vlgmr.msra.gmra.mrb[8].mxu0 %v7493_v61 }
 0x2a9   :  { %3627 = vmatpush1.bf16.msra.mxu0 %v6916_v60  ;;  %3658 = vmatprep.mubr.bf16.mxu0 %v7502_v46  ;;  %v6847_v60 = vld [vmem:[#allocation2 + $0x880] ss:$16 sps:$4 sm:$0xff]  }
 0x2aa   :  { %3628 = vmatprep.subr.bf16.mxu0 %v6924_v62  ;;  %v6855_v62 = vld [vmem:[#allocation2 + $0x8a4] ss:$16 sps:$4 sm:$0xff]  }
 0x2ad   :  { %3629 = vmatpush1.bf16.msra.mxu0 %v6922_v63  ;;  %v6853_v63 = vld [vmem:[#allocation2 + $0x8a0] ss:$16 sps:$4 sm:$0xff]  }
 0x2ae   :  { %3630 = vmatprep.subr.bf16.mxu0 %v6930_v0  ;;  %v6861_v0 = vld [vmem:[#allocation2 + $0x8c4] ss:$16 sps:$4 sm:$0xff]  }
 0x2b1   :  { %3631 = vmatpush1.bf16.msra.mxu0 %v6928_v1  ;;  %v6867_v1 = vld [vmem:[#allocation2 + $0x8e4] ss:$16 sps:$4 sm:$0xff]  }
 0x2b2   :  { %3632 = vmatprep.subr.bf16.mxu0 %v6936_v3  ;;  %v6865_v3 = vld [vmem:[#allocation2 + $0x8e0] ss:$16 sps:$4 sm:$0xff]  }
 0x2b5   :  { %3633 = vmatpush1.bf16.msra.mxu0 %v6934_v4  ;;  %v6873_v4 = vld [vmem:[#allocation2 + $0x904] ss:$16 sps:$4 sm:$0xff]  }
 0x2b6   :  { %3634 = vmatprep.subr.bf16.mxu0 %v6942_v5  ;;  %v6871_v5 = vld [vmem:[#allocation2 + $0x900] ss:$16 sps:$4 sm:$0xff]  }
 0x2b9   :  { %3635 = vmatpush1.bf16.msra.mxu0 %v6940_v6  ;;  %v6879_v6 = vld [vmem:[#allocation2 + $0x924] ss:$16 sps:$4 sm:$0xff]  }
 0x2ba   :  { %3636 = vmatprep.subr.bf16.mxu0 %v6948_v7  ;;  %v6877_v7 = vld [vmem:[#allocation2 + $0x920] ss:$16 sps:$4 sm:$0xff]  }
 0x2bd   :  { %3637 = vmatpush1.bf16.msra.mxu0 %v6946_v8  ;;  %v6885_v8 = vld [vmem:[#allocation2 + $0x944] ss:$16 sps:$4 sm:$0xff]  }
 0x2be   :  { %3638 = vmatprep.subr.bf16.mxu0 %v6954_v10  ;;  %v6883_v10 = vld [vmem:[#allocation2 + $0x940] ss:$16 sps:$4 sm:$0xff]  }
 0x2c1   :  { %3639 = vmatpush1.bf16.msra.mxu0 %v6952_v11  ;;  %v6891_v11 = vld [vmem:[#allocation2 + $0x964] ss:$16 sps:$4 sm:$0xff]  }
 0x2c2   :  { %3640 = vmatprep.subr.bf16.mxu0 %v6960_v12  ;;  %v6889_v12 = vld [vmem:[#allocation2 + $0x960] ss:$16 sps:$4 sm:$0xff]  }
 0x2c5   :  { %3641 = vmatpush1.bf16.msra.mxu0 %v6958_v13  ;;  %v6897_v13 = vld [vmem:[#allocation2 + $0x984] ss:$16 sps:$4 sm:$0xff]  }
 0x2c6   :  { %3642 = vmatprep.subr.bf16.mxu0 %v6966_v14  ;;  %v6895_v14 = vld [vmem:[#allocation2 + $0x980] ss:$16 sps:$4 sm:$0xff]  }
 0x2c9   :  { %3643 = vmatpush1.bf16.msra.mxu0 %v6964_v15  ;;  %v6903_v15 = vld [vmem:[#allocation2 + $0x9a4] ss:$16 sps:$4 sm:$0xff]  }
 0x2ca   :  { %3644 = vmatprep.subr.bf16.mxu0 %v6972_v17  ;;  %v6901_v17 = vld [vmem:[#allocation2 + $0x9a0] ss:$16 sps:$4 sm:$0xff]  }
 0x2cd   :  { %3645 = vmatpush1.bf16.msra.mxu0 %v6970_v20  ;;  %v6909_v20 = vld [vmem:[#allocation2 + $0x9c4] ss:$16 sps:$4 sm:$0xff]  }
 0x2ce   :  { %3646 = vmatprep.subr.bf16.mxu0 %v6978_v21  ;;  %v6907_v21 = vld [vmem:[#allocation2 + $0x9c0] ss:$16 sps:$4 sm:$0xff]  }
 0x2d1   :  { %3647 = vmatpush1.bf16.msra.mxu0 %v6976_v22  ;;  %v6915_v22 = vld [vmem:[#allocation2 + $0x9e4] ss:$16 sps:$4 sm:$0xff]  }
 0x2d2   :  { %3648 = vmatprep.subr.bf16.mxu0 %v6984_v24  ;;  %v6913_v24 = vld [vmem:[#allocation2 + $0x9e0] ss:$16 sps:$4 sm:$0xff]  }
 0x2d5   :  { %3649 = vmatpush1.bf16.msra.mxu0 %v6982_v9  ;;  %v6921_v9 = vld [vmem:[#allocation2 + $0xa04] ss:$16 sps:$4 sm:$0xff]  }
 0x2d6   :  { %3650 = vmatprep.subr.bf16.mxu0 %v6990_v27  ;;  %v6919_v27 = vld [vmem:[#allocation2 + $0xa00] ss:$16 sps:$4 sm:$0xff]  }
 0x2d9   :  { %3651 = vmatpush1.bf16.msra.mxu0 %v6988_v28  ;;  %v6927_v28 = vld [vmem:[#allocation2 + $0xa24] ss:$16 sps:$4 sm:$0xff]  }
 0x2da   :  { %3652 = vmatprep.subr.bf16.mxu0 %v6996_v29  ;;  %v6925_v29 = vld [vmem:[#allocation2 + $0xa20] ss:$16 sps:$4 sm:$0xff]  }
 0x2dd   :  { %3653 = vmatpush1.bf16.msra.mxu0 %v6994_v23  ;;  %v6933_v23 = vld [vmem:[#allocation2 + $0xa44] ss:$16 sps:$4 sm:$0xff]  }
 0x2de   :  { %3654 = vmatprep.subr.bf16.mxu0 %v7002_v31  ;;  %v6939_v31 = vld [vmem:[#allocation2 + $0xa64] ss:$16 sps:$4 sm:$0xff]  }
 0x2e1   :  { %3655 = vmatpush1.bf16.msra.mxu0 %v7000_v33  ;;  %v6945_v33 = vld [vmem:[#allocation2 + $0xa84] ss:$16 sps:$4 sm:$0xff]  }
 0x2e2   :  { %3656 = vmatprep.subr.bf16.mxu0 %v7008_v38  ;;  %v6963_v38 = vld [vmem:[#allocation2 + $0xae4] ss:$16 sps:$4 sm:$0xff]  }
 0x2e5   :  { %3657 = vmatpush1.bf16.msra.mxu0 %v7006_v41  ;;  %v6967_v41 = vld [vmem:[#allocation2 + $0xb00] ss:$16 sps:$4 sm:$0xff]  }
 0x2e8   :  { %3659 = vmatmul.mubr.bf16.vlgmr.msra.gmra.mrb[8].mxu0 %v7504_v48 }
 0x33b   :  { %v2505_v37 = vpop.f32.mrb[4].mxu0 }
 0x33c   :  { %v6258_v39 = vadd.f32 %v2505_v37, %v2103_v32  ;;  %v2507_v40 = vpop.f32.mrb[5].mxu0  ;;  %v6937_v32 = vld [vmem:[#allocation2 + $0xa60] ss:$16 sps:$4 sm:$0xff]  }
 0x33d   :  { %v6259_v42 = vadd.f32 %v2507_v40, %v2107_v35  ;;  %v2509_v25 = vpop.f32.mrb[6].mxu0  ;;  %v6951_v35 = vld [vmem:[#allocation2 + $0xaa4] ss:$16 sps:$4 sm:$0xff]   ;;  %v6955_v37 = vld [vmem:[#allocation2 + $0xac0] ss:$16 sps:$4 sm:$0xff]  }
 0x33e   :  { %v2512_v44 = vmax.f32 %v6258_v39, 0.0  ;;  %v2510_v45 = vpop.f32.mrb[7].mxu0  ;;  %v6961_v39 = vld [vmem:[#allocation2 + $0xae0] ss:$16 sps:$4 sm:$0xff]   ;;  %v6969_v40 = vld [vmem:[#allocation2 + $0xb04] ss:$16 sps:$4 sm:$0xff]  }
 0x33f   :  { %v2513_v47 = vmax.f32 %v6259_v42, 0.0  ;;  %v6973_v42 = vld [vmem:[#allocation2 + $0xb20] ss:$16 sps:$4 sm:$0xff]   ;;  %v6981_v25 = vld [vmem:[#allocation2 + $0xb44] ss:$16 sps:$4 sm:$0xff]  }
 0x340   :  { %v2546_v51 = vpack.c.bf16 %v2512_v44, %v2512_v44  ;;  %v6979_v44 = vld [vmem:[#allocation2 + $0xb40] ss:$16 sps:$4 sm:$0xff]   ;;  %v6987_v45 = vld [vmem:[#allocation2 + $0xb64] ss:$16 sps:$4 sm:$0xff]  }
 0x341   :  { %v2547_v49 = vpack.c.bf16 %v2513_v47, %v2513_v47  ;;  %v6993_v47 = vld [vmem:[#allocation2 + $0xb84] ss:$16 sps:$4 sm:$0xff]  }
 0x343   :  { %2677 = vmatprep.mubr.bf16.mxu1 %v2547_v49  ;;  %v6991_v49 = vld [vmem:[#allocation2 + $0xb80] ss:$16 sps:$4 sm:$0xff]  }
 0x344   :  { %2678 = vmatmul.mubr.bf16.vlgmr.msra.gmra.mrb[4].mxu1 %v2546_v51  ;;  %v6997_v51 = vld [vmem:[#allocation2 + $0xba0] ss:$16 sps:$4 sm:$0xff]  }
 0x345   :  { %3504 = vmatpush1.bf16.msra.mxu1 %v6823_v50  ;;  %3535 = vmatprep.mubr.bf16.mxu1 %v7491_v58  ;;  %v6859_v58 = vld [vmem:[#allocation2 + $0x8c0] ss:$16 sps:$4 sm:$0xff]   ;;  %v6999_v50 = vld [vmem:[#allocation2 + $0xba4] ss:$16 sps:$4 sm:$0xff]  }
 0x346   :  { %3505 = vmatprep.subr.bf16.mxu1 %v6831_v52  ;;  %v7005_v52 = vld [vmem:[#allocation2 + $0xbc4] ss:$16 sps:$4 sm:$0xff]  }
 0x349   :  { %3506 = vmatpush1.bf16.msra.mxu1 %v6829_v53  ;;  %v7003_v53 = vld [vmem:[#allocation2 + $0xbc0] ss:$16 sps:$4 sm:$0xff]  }
 0x34a   :  { %3507 = vmatprep.subr.bf16.mxu1 %v6837_v54  ;;  %v7011_v54 = vld [vmem:[#allocation2 + $0xbe4] ss:$16 sps:$4 sm:$0xff]  }
 0x34d   :  { %3508 = vmatpush1.bf16.msra.mxu1 %v6835_v55  ;;  %v7009_v55 = vld [vmem:[#allocation2 + $0xbe0] ss:$16 sps:$4 sm:$0xff]  }
 0x34e   :  { %3509 = vmatprep.subr.bf16.mxu1 %v6843_v56  ;;  %v7015_v56 = vld [vmem:[#allocation4 + $0x204] ss:$8 sps:$4 sm:$0xff]  }
 0x351   :  { %3510 = vmatpush1.bf16.msra.mxu1 %v6841_v57  ;;  %v7013_v57 = vld [vmem:[#allocation4 + $0x200] ss:$8 sps:$4 sm:$0xff]  }
 0x352   :  { %3511 = vmatprep.subr.bf16.mxu1 %v6849_v59  ;;  %v7018_v59 = vld [vmem:[#allocation4 + $0x214] ss:$8 sps:$4 sm:$0xff]  }
 0x355   :  { %3512 = vmatpush1.bf16.msra.mxu1 %v6847_v60  ;;  %v7016_v60 = vld [vmem:[#allocation4 + $0x210] ss:$8 sps:$4 sm:$0xff]  }
 0x356   :  { %3513 = vmatprep.subr.bf16.mxu1 %v6855_v62  ;;  %v7021_v62 = vld [vmem:[#allocation4 + $0x224] ss:$8 sps:$4 sm:$0xff]  }
 0x359   :  { %3514 = vmatpush1.bf16.msra.mxu1 %v6853_v63  ;;  %v7019_v63 = vld [vmem:[#allocation4 + $0x220] ss:$8 sps:$4 sm:$0xff]  }
 0x35a   :  { %3515 = vmatprep.subr.bf16.mxu1 %v6861_v0  ;;  %v7024_v0 = vld [vmem:[#allocation4 + $0x234] ss:$8 sps:$4 sm:$0xff]  }
 0x35d   :  { %3516 = vmatpush1.bf16.msra.mxu1 %v6859_v58  ;;  %v7022_v58 = vld [vmem:[#allocation4 + $0x230] ss:$8 sps:$4 sm:$0xff]  }
 0x35e   :  { %3517 = vmatprep.subr.bf16.mxu1 %v6867_v1  ;;  %v7027_v1 = vld [vmem:[#allocation4 + $0x244] ss:$8 sps:$4 sm:$0xff]  }
 0x361   :  { %3518 = vmatpush1.bf16.msra.mxu1 %v6865_v3  ;;  %v7025_v3 = vld [vmem:[#allocation4 + $0x240] ss:$8 sps:$4 sm:$0xff]  }
 0x362   :  { %3519 = vmatprep.subr.bf16.mxu1 %v6873_v4  ;;  %v7030_v4 = vld [vmem:[#allocation4 + $0x254] ss:$8 sps:$4 sm:$0xff]  }
 0x365   :  { %3520 = vmatpush1.bf16.msra.mxu1 %v6871_v5  ;;  %v7028_v5 = vld [vmem:[#allocation4 + $0x250] ss:$8 sps:$4 sm:$0xff]  }
 0x366   :  { %3521 = vmatprep.subr.bf16.mxu1 %v6879_v6  ;;  %v7031_v6 = vld [vmem:[#allocation4 + $0x260] ss:$8 sps:$4 sm:$0xff]  }
 0x369   :  { %3522 = vmatpush1.bf16.msra.mxu1 %v6877_v7  ;;  %v7036_v7 = vld [vmem:[#allocation4 + $0x274] ss:$8 sps:$4 sm:$0xff]  }
 0x36a   :  { %3523 = vmatprep.subr.bf16.mxu1 %v6885_v8  ;;  %v7034_v8 = vld [vmem:[#allocation4 + $0x270] ss:$8 sps:$4 sm:$0xff]  }
 0x36d   :  { %3524 = vmatpush1.bf16.msra.mxu1 %v6883_v10  ;;  %v7039_v10 = vld [vmem:[#allocation4 + $0x284] ss:$8 sps:$4 sm:$0xff]  }
 0x36e   :  { %3525 = vmatprep.subr.bf16.mxu1 %v6891_v11  ;;  %v7037_v11 = vld [vmem:[#allocation4 + $0x280] ss:$8 sps:$4 sm:$0xff]  }
 0x371   :  { %3526 = vmatpush1.bf16.msra.mxu1 %v6889_v12  ;;  %v7042_v12 = vld [vmem:[#allocation4 + $0x294] ss:$8 sps:$4 sm:$0xff]  }
 0x372   :  { %3527 = vmatprep.subr.bf16.mxu1 %v6897_v13  ;;  %v7040_v13 = vld [vmem:[#allocation4 + $0x290] ss:$8 sps:$4 sm:$0xff]  }
 0x375   :  { %3528 = vmatpush1.bf16.msra.mxu1 %v6895_v14  ;;  %v7045_v14 = vld [vmem:[#allocation4 + $0x2a4] ss:$8 sps:$4 sm:$0xff]  }
 0x376   :  { %3529 = vmatprep.subr.bf16.mxu1 %v6903_v15  ;;  %v7043_v15 = vld [vmem:[#allocation4 + $0x2a0] ss:$8 sps:$4 sm:$0xff]  }
 0x379   :  { %3530 = vmatpush1.bf16.msra.mxu1 %v6901_v17  ;;  %v7048_v17 = vld [vmem:[#allocation4 + $0x2b4] ss:$8 sps:$4 sm:$0xff]  }
 0x37a   :  { %3531 = vmatprep.subr.bf16.mxu1 %v6909_v20  ;;  %v7046_v20 = vld [vmem:[#allocation4 + $0x2b0] ss:$8 sps:$4 sm:$0xff]  }
 0x37d   :  { %3532 = vmatpush1.bf16.msra.mxu1 %v6907_v21  ;;  %v7051_v21 = vld [vmem:[#allocation4 + $0x2c4] ss:$8 sps:$4 sm:$0xff]  }
 0x37e   :  { %3533 = vmatprep.subr.bf16.mxu1 %v6915_v22  ;;  %v7049_v22 = vld [vmem:[#allocation4 + $0x2c0] ss:$8 sps:$4 sm:$0xff]  }
 0x381   :  { %3534 = vmatpush1.bf16.msra.mxu1 %v6913_v24  ;;  %v7054_v24 = vld [vmem:[#allocation4 + $0x2d4] ss:$8 sps:$4 sm:$0xff]  }
 0x382   :  { %3544 = vmatprep.subr.bf16.mxu1 %v6921_v9  ;;  %v7052_v9 = vld [vmem:[#allocation4 + $0x2d0] ss:$8 sps:$4 sm:$0xff]  }
 0x384   :  { %3536 = vmatmul.mubr.bf16.vlgmr.msra.gmra.mrb[8].mxu1 %v7493_v61  ;;  %v6949_v61 = vld [vmem:[#allocation2 + $0xaa0] ss:$16 sps:$4 sm:$0xff]  }
 0x385   :  { %3545 = vmatpush1.bf16.msra.mxu1 %v6919_v27  ;;  %3576 = vmatprep.mubr.bf16.mxu1 %v7502_v46  ;;  %v6985_v46 = vld [vmem:[#allocation2 + $0xb60] ss:$16 sps:$4 sm:$0xff]  }
 0x386   :  { %3546 = vmatprep.subr.bf16.mxu1 %v6927_v28  ;;  %v7057_v28 = vld [vmem:[#allocation4 + $0x2e4] ss:$8 sps:$4 sm:$0xff]  }
 0x389   :  { %3547 = vmatpush1.bf16.msra.mxu1 %v6925_v29 }
 0x38a   :  { %3548 = vmatprep.subr.bf16.mxu1 %v6933_v23  ;;  %v7055_v23 = vld [vmem:[#allocation4 + $0x2e0] ss:$8 sps:$4 sm:$0xff]  }
 0x38d   :  { %3549 = vmatpush1.bf16.msra.mxu1 %v6931_v30 }
 0x38e   :  { %3550 = vmatprep.subr.bf16.mxu1 %v6939_v31 }
 0x391   :  { %3551 = vmatpush1.bf16.msra.mxu1 %v6937_v32 }
 0x392   :  { %3552 = vmatprep.subr.bf16.mxu1 %v6945_v33 }
 0x395   :  { %3553 = vmatpush1.bf16.msra.mxu1 %v6943_v34 }
 0x396   :  { %3554 = vmatprep.subr.bf16.mxu1 %v6951_v35 }
 0x399   :  { %3555 = vmatpush1.bf16.msra.mxu1 %v6949_v61  ;;  %v7060_v61 = vld [vmem:[#allocation4 + $0x2f4] ss:$8 sps:$4 sm:$0xff]  }
 0x39a   :  { %3556 = vmatprep.subr.bf16.mxu1 %v6957_v36 }
 0x39d   :  { %3557 = vmatpush1.bf16.msra.mxu1 %v6955_v37  ;;  %v7058_v37 = vld [vmem:[#allocation4 + $0x2f0] ss:$8 sps:$4 sm:$0xff]  }
 0x39e   :  { %3558 = vmatprep.subr.bf16.mxu1 %v6963_v38  ;;  %v7063_v38 = vld [vmem:[#allocation4 + $0x304] ss:$8 sps:$4 sm:$0xff]  }
 0x3a1   :  { %3559 = vmatpush1.bf16.msra.mxu1 %v6961_v39  ;;  %v7109_v39 = vld [vmem:[#allocation6 + $0xc0] sm:$0xff]  }
 0x3a2   :  { %3560 = vmatprep.subr.bf16.mxu1 %v6969_v40  ;;  %v7110_v40 = vld [vmem:[#allocation6 + $0x80] sm:$0xff]   ;;  %6050 = vmatprep.subr.bf16.mxu0 %v7109_v39  ;;  %v7103_v39 = vld [vmem:[#allocation4 + $0x3e0] ss:$8 sps:$4 sm:$0xff]  }
 0x3a3   :  { %6051 = vmatpush3.bf16.msra.mxu0 %v7110_v40 }
 0x3a5   :  { %3561 = vmatpush1.bf16.msra.mxu1 %v6967_v41  ;;  %v7111_v41 = vld [vmem:[#allocation6 + $0xc8] sm:$0xff]  }
 0x3a6   :  { %3562 = vmatprep.subr.bf16.mxu1 %v6975_v26  ;;  %v7112_v26 = vld [vmem:[#allocation6 + $0x88] sm:$0xff]   ;;  %6052 = vmatprep.subr.bf16.mxu0 %v7111_v41 }
 0x3a7   :  { %6053 = vmatpush3.bf16.msra.mxu0 %v7112_v26  ;;  %v7108_v41 = vld [vmem:[#allocation4 + $0x3f4] ss:$8 sps:$4 sm:$0xff]   ;;  %v7106_v26 = vld [vmem:[#allocation4 + $0x3f0] ss:$8 sps:$4 sm:$0xff]  }
 0x3a9   :  { %3563 = vmatpush1.bf16.msra.mxu1 %v6973_v42  ;;  %v7113_v42 = vld [vmem:[#allocation6 + $0xd0] sm:$0xff]  }
 0x3aa   :  { %3564 = vmatprep.subr.bf16.mxu1 %v6981_v25  ;;  %v7114_v25 = vld [vmem:[#allocation6 + $0x90] sm:$0xff]   ;;  %6054 = vmatprep.subr.bf16.mxu0 %v7113_v42 }
 0x3ab   :  { %6055 = vmatpush3.bf16.msra.mxu0 %v7114_v25 }
 0x3ad   :  { %3565 = vmatpush1.bf16.msra.mxu1 %v6979_v44  ;;  %v7115_v44 = vld [vmem:[#allocation6 + $0xd8] sm:$0xff]  }
 0x3ae   :  { %3566 = vmatprep.subr.bf16.mxu1 %v6987_v45  ;;  %v7116_v45 = vld [vmem:[#allocation6 + $0x98] sm:$0xff]   ;;  %6056 = vmatprep.subr.bf16.mxu0 %v7115_v44  ;;  %v7121_v44 = vld [vmem:[#allocation6 + $0xf0] sm:$0xff]  }
 0x3af   :  { %6057 = vmatpush3.bf16.msra.mxu0 %v7116_v45  ;;  %v7122_v45 = vld [vmem:[#allocation6 + $0xb0] sm:$0xff]  }
 0x3b1   :  { %3567 = vmatpush1.bf16.msra.mxu1 %v6985_v46  ;;  %v7117_v46 = vld [vmem:[#allocation6 + $0xe0] sm:$0xff]  }
 0x3b2   :  { %3568 = vmatprep.subr.bf16.mxu1 %v6993_v47  ;;  %v7118_v47 = vld [vmem:[#allocation6 + $0xa0] sm:$0xff]   ;;  %6058 = vmatprep.subr.bf16.mxu0 %v7117_v46  ;;  %v7127_v46 = vld [vmem:[#allocation4 + $0x404] ss:$8 sps:$4 sm:$0xff]  }
 0x3b3   :  { %6059 = vmatpush3.bf16.msra.mxu0 %v7118_v47  ;;  %v7141_v47 = vld [vmem:[#allocation6 + $0x100] sm:$0xff]  }
 0x3b5   :  { %3569 = vmatpush1.bf16.msra.mxu1 %v6991_v49  ;;  %v7119_v49 = vld [vmem:[#allocation6 + $0xe8] sm:$0xff]  }
 0x3b6   :  { %3570 = vmatprep.subr.bf16.mxu1 %v6999_v50  ;;  %v7120_v50 = vld [vmem:[#allocation6 + $0xa8] sm:$0xff]   ;;  %6060 = vmatprep.subr.bf16.mxu0 %v7119_v49 }
 0x3b7   :  { %6061 = vmatpush3.bf16.msra.mxu0 %v7120_v50  ;;  %v7144_v49 = vld [vmem:[#allocation6 + $0x148] sm:$0xff]  }
 0x3b8   :  { %6062 = vmatprep.subr.bf16.mxu0 %v7121_v44  ;;  %v7145_v50 = vld [vmem:[#allocation6 + $0x108] sm:$0xff]  }
 0x3b9   :  { %3571 = vmatpush1.bf16.msra.mxu1 %v6997_v51  ;;  %v7516_v51 = vld [vmem:[#allocation7 + $0x1] ss:$8 sm:$0xf] }
 0x3ba   :  { %3572 = vmatprep.subr.bf16.mxu1 %v7005_v52  ;;  %v2858_v52 = vrot.slane %v7516_v51, %v411_v19  ;;  %v7066_v19 = vld [vmem:[#allocation4 + $0x314] ss:$8 sps:$4 sm:$0xff]  }
 0x3bb   :  { %v7512_v27 = vpop.f32.mrb[8].mxu0  ;;  %6063 = vmatpush3.bf16.msra.mxu0 %v7122_v45  ;;  %v4190_v45 = vld [vmem:[#allocation7 + $0x5] ss:$0 sm:$0xff] }
 0x3bc   :  { %v3662_v29 = vpop.f32.mrb[9].mxu0  ;;  %6064 = vmatprep.subr.bf16.mxu0 %v7123_v43 }
 0x3bd   :  { %3573 = vmatpush1.bf16.msra.mxu1 %v7003_v53  ;;  %v3664_v31 = vpop.f32.mrb[10].mxu0  ;;  %v2846_v53 = vrot.slane %v7516_v51, %v7462_v16 }
 0x3be   :  { %3574 = vmatprep.subr.bf16.mxu1 %v7011_v54  ;;  %v3665_v33 = vpop.f32.mrb[11].mxu0  ;;  %v2850_v54 = vrot.slane %v7516_v51, %v7467_v18  ;;  %v7096_v31 = vld [vmem:[#allocation4 + $0x3b4] ss:$8 sps:$4 sm:$0xff]  }
 0x3bf   :  { %v7099_v33 = vld [vmem:[#allocation4 + $0x3c4] ss:$8 sps:$4 sm:$0xff]  }
 0x3c1   :  { %3575 = vmatpush1.bf16.msra.mxu1 %v7009_v55  ;;  %v6263_v55 = vadd.f32 %v3662_v29, %v2858_v52  ;;  %v7088_v29 = vld [vmem:[#allocation4 + $0x390] ss:$8 sps:$4 sm:$0xff]   ;;  %v7149_v52 = vld [vmem:[#allocation6 + $0x110] sm:$0xff]  }
 0x3c2   :  { %4072 = vmatprep.subr.bf16.mxu1 %v7015_v56 }
 0x3c4   :  { %3577 = vmatmul.mubr.bf16.vlgmr.msra.gmra.mrb[8].mxu1 %v7504_v48  ;;  %v7033_v48 = vld [vmem:[#allocation4 + $0x264] ss:$8 sps:$4 sm:$0xff]  }
 0x3c5   :  { %4073 = vmatpush1.bf16.msra.mxu1 %v7013_v57 }
 0x3c6   :  { %4074 = vmatprep.subr.bf16.mxu1 %v7018_v59 }
 0x3c9   :  { %4075 = vmatpush1.bf16.msra.mxu1 %v7016_v60 }
 0x3ca   :  { %4076 = vmatprep.subr.bf16.mxu1 %v7021_v62 }
 0x3cd   :  { %4077 = vmatpush1.bf16.msra.mxu1 %v7019_v63 }
 0x3ce   :  { %4078 = vmatprep.subr.bf16.mxu1 %v7024_v0 }
 0x3d1   :  { %4079 = vmatpush1.bf16.msra.mxu1 %v7022_v58  ;;  %v3670_v58 = vmax.f32 %v6263_v55, 0.0 }
 0x3d2   :  { %4080 = vmatprep.subr.bf16.mxu1 %v7027_v1 }
 0x3d5   :  { %4081 = vmatpush1.bf16.msra.mxu1 %v7025_v3 }
 0x3d6   :  { %4082 = vmatprep.subr.bf16.mxu1 %v7030_v4  ;;  %v7061_v4 = vld [vmem:[#allocation4 + $0x300] ss:$8 sps:$4 sm:$0xff]  }
 0x3d9   :  { %4083 = vmatpush1.bf16.msra.mxu1 %v7028_v5 }
 0x3da   :  { %4084 = vmatprep.subr.bf16.mxu1 %v7033_v48  ;;  %v3738_v48 = vpack.c.bf16 %v3670_v58, %v3670_v58 }
 0x3dd   :  { %4085 = vmatpush1.bf16.msra.mxu1 %v7031_v6  ;;  %v7064_v6 = vld [vmem:[#allocation4 + $0x310] ss:$8 sps:$4 sm:$0xff]  }
 0x3de   :  { %4086 = vmatprep.subr.bf16.mxu1 %v7036_v7  ;;  %v7069_v7 = vld [vmem:[#allocation4 + $0x324] ss:$8 sps:$4 sm:$0xff]  }
 0x3e1   :  { %4087 = vmatpush1.bf16.msra.mxu1 %v7034_v8  ;;  %v7067_v8 = vld [vmem:[#allocation4 + $0x320] ss:$8 sps:$4 sm:$0xff]  }
 0x3e2   :  { %4088 = vmatprep.subr.bf16.mxu1 %v7039_v10  ;;  %v7072_v10 = vld [vmem:[#allocation4 + $0x334] ss:$8 sps:$4 sm:$0xff]  }
 0x3e5   :  { %4089 = vmatpush1.bf16.msra.mxu1 %v7037_v11  ;;  %v7070_v11 = vld [vmem:[#allocation4 + $0x330] ss:$8 sps:$4 sm:$0xff]  }
 0x3e6   :  { %4090 = vmatprep.subr.bf16.mxu1 %v7042_v12  ;;  %v7075_v12 = vld [vmem:[#allocation4 + $0x344] ss:$8 sps:$4 sm:$0xff]  }
 0x3e9   :  { %4091 = vmatpush1.bf16.msra.mxu1 %v7040_v13  ;;  %v7073_v13 = vld [vmem:[#allocation4 + $0x340] ss:$8 sps:$4 sm:$0xff]  }
 0x3ea   :  { %4092 = vmatprep.subr.bf16.mxu1 %v7045_v14  ;;  %v7078_v14 = vld [vmem:[#allocation4 + $0x354] ss:$8 sps:$4 sm:$0xff]  }
 0x3ed   :  { %4093 = vmatpush1.bf16.msra.mxu1 %v7043_v15  ;;  %v7076_v15 = vld [vmem:[#allocation4 + $0x350] ss:$8 sps:$4 sm:$0xff]  }
 0x3ee   :  { %4094 = vmatprep.subr.bf16.mxu1 %v7048_v17  ;;  %v7081_v17 = vld [vmem:[#allocation4 + $0x364] ss:$8 sps:$4 sm:$0xff]  }
 0x3f1   :  { %4095 = vmatpush1.bf16.msra.mxu1 %v7046_v20  ;;  %v7079_v20 = vld [vmem:[#allocation4 + $0x360] ss:$8 sps:$4 sm:$0xff]  }
 0x3f2   :  { %4096 = vmatprep.subr.bf16.mxu1 %v7051_v21  ;;  %v7084_v21 = vld [vmem:[#allocation4 + $0x374] ss:$8 sps:$4 sm:$0xff]  }
 0x3f5   :  { %4097 = vmatpush1.bf16.msra.mxu1 %v7049_v22  ;;  %v7082_v22 = vld [vmem:[#allocation4 + $0x370] ss:$8 sps:$4 sm:$0xff]  }
 0x3f6   :  { %4098 = vmatprep.subr.bf16.mxu1 %v7054_v24  ;;  %v7087_v24 = vld [vmem:[#allocation4 + $0x384] ss:$8 sps:$4 sm:$0xff]  }
 0x3f9   :  { %4099 = vmatpush1.bf16.msra.mxu1 %v7052_v9  ;;  %v7085_v9 = vld [vmem:[#allocation4 + $0x380] ss:$8 sps:$4 sm:$0xff]  }
 0x3fa   :  { %4100 = vmatprep.subr.bf16.mxu1 %v7057_v28  ;;  %v7090_v28 = vld [vmem:[#allocation4 + $0x394] ss:$8 sps:$4 sm:$0xff]  }
 0x3fd   :  { %4101 = vmatpush1.bf16.msra.mxu1 %v7055_v23  ;;  %v7093_v23 = vld [vmem:[#allocation4 + $0x3a4] ss:$8 sps:$4 sm:$0xff]  }
 0x3fe   :  { %4102 = vmatprep.subr.bf16.mxu1 %v7060_v61  ;;  %v7102_v61 = vld [vmem:[#allocation4 + $0x3d4] ss:$8 sps:$4 sm:$0xff]  }
 0x401   :  { %4103 = vmatpush1.bf16.msra.mxu1 %v7058_v37  ;;  %v2854_v37 = vrot.slane %v7516_v51, %v407_v2  ;;  %v7124_v2 = vld [vmem:[#allocation6 + $0xb8] sm:$0xff]   ;;  %v7148_v51 = vld [vmem:[#allocation6 + $0x150] sm:$0xff]  }
 0x402   :  { %4113 = vmatprep.subr.bf16.mxu1 %v7063_v38  ;;  %v7105_v38 = vld [vmem:[#allocation4 + $0x3e4] ss:$8 sps:$4 sm:$0xff]   ;;  %6065 = vmatpush3.bf16.msra.mxu0 %v7124_v2 }
 0x403   :  { %v6262_v40 = vadd.f32 %v7512_v27, %v2854_v37  ;;  %4382 = vmatprep.subr.bf16.mxu0 %v7127_v46  ;;  %v7140_v27 = vld [vmem:[#allocation6 + $0x140] sm:$0xff]   ;;  %v7161_v37 = vld [vmem:[#allocation6 + $0x128] sm:$0xff]  }
 0x405   :  { %v3669_v42 = vmax.f32 %v6262_v40, 0.0  ;;  %v7164_v40 = vld [vmem:[#allocation6 + $0x178] sm:$0xff]  }
 0x407   :  { %v3737_v25 = vpack.c.bf16 %v3669_v42, %v3669_v42  ;;  %v7169_v42 = vld [vmem:[#allocation6 + $0x240] sm:$0xff]  }
 0x417   :  { %v6044_v30 = vpop.f32.mrb[4].mxu1 }
 0x418   :  { %v6045_v32 = vpop.f32.mrb[5].mxu1 }
 0x419   :  { %v7514_v34 = vadd.f32 %v6045_v32, %v6044_v30  ;;  %v6047_v35 = vpop.f32.mrb[6].mxu1  ;;  %v7091_v30 = vld [vmem:[#allocation4 + $0x3a0] ss:$8 sps:$4 sm:$0xff]   ;;  %v7094_v32 = vld [vmem:[#allocation4 + $0x3b0] ss:$8 sps:$4 sm:$0xff]  }
 0x41a   :  { %v6048_v36 = vpop.f32.mrb[7].mxu1  ;;  %v7097_v35 = vld [vmem:[#allocation4 + $0x3c0] ss:$8 sps:$4 sm:$0xff]  }
 0x41b   :  { %v7100_v36 = vld [vmem:[#allocation4 + $0x3d0] ss:$8 sps:$4 sm:$0xff]  }
 0x497   :  { %v3578_v56 = vpop.f32.mrb[8].mxu1 }
 0x498   :  { %v6260_v57 = vadd.f32 %v3578_v56, %v2846_v53  ;;  %v3580_v59 = vpop.f32.mrb[9].mxu1  ;;  %v3740_v53 = vld [vmem:[#allocation7 + $0x3] ss:$8 sm:$0x3] }
 0x499   :  { %v6261_v60 = vadd.f32 %v3580_v59, %v2850_v54  ;;  %v3582_v62 = vpop.f32.mrb[10].mxu1  ;;  %v3745_v54 = vrot.slane %v3740_v53, %v7462_v16  ;;  %v3749_v55 = vrot.slane %v3740_v53, %v7467_v18 }
 0x49a   :  { %v3667_v63 = vmax.f32 %v6260_v57, 0.0  ;;  %v3583_v0 = vpop.f32.mrb[11].mxu1 }
 0x49b   :  { %v3668_v1 = vmax.f32 %v6261_v60, 0.0 }
 0x49c   :  { %v3735_v5 = vpack.c.bf16 %v3667_v63, %v3667_v63 }
 0x49d   :  { %v3736_v3 = vpack.c.bf16 %v3668_v1, %v3668_v1 }
 0x49f   :  { %4104 = vmatprep.mubr.bf16.mxu1 %v3736_v3  ;;  %v7125_v3 = vld [vmem:[#allocation4 + $0x400] ss:$8 sps:$4 sm:$0xff]  }
 0x4a0   :  { %4105 = vmatmul.mubr.bf16.vlgmr.msra.gmra.mrb[12].mxu1 %v3735_v5  ;;  %v7130_v5 = vld [vmem:[#allocation4 + $0x414] ss:$8 sps:$4 sm:$0xff]  }
 0x4a1   :  { %4114 = vmatpush1.bf16.msra.mxu1 %v7061_v4  ;;  %4145 = vmatprep.mubr.bf16.mxu1 %v3738_v48  ;;  %v7325_v48 = vmov 0  }
 0x4a2   :  { %4115 = vmatprep.subr.bf16.mxu1 %v7066_v19  ;;  %v7128_v19 = vld [vmem:[#allocation4 + $0x410] ss:$8 sps:$4 sm:$0xff]  }
 0x4a5   :  { %4116 = vmatpush1.bf16.msra.mxu1 %v7064_v6  ;;  %v7133_v6 = vld [vmem:[#allocation4 + $0x424] ss:$8 sps:$4 sm:$0xff]  }
 0x4a6   :  { %4117 = vmatprep.subr.bf16.mxu1 %v7069_v7  ;;  %v7131_v7 = vld [vmem:[#allocation4 + $0x420] ss:$8 sps:$4 sm:$0xff]  }
 0x4a9   :  { %4118 = vmatpush1.bf16.msra.mxu1 %v7067_v8  ;;  %v4327_v8 = vld [vmem:[%s7658_s2] sm:$0x3] }
 0x4aa   :  { %4119 = vmatprep.subr.bf16.mxu1 %v7072_v10  ;;  %v7134_v10 = vld [vmem:[#allocation6 + $0x1c0] sm:$0xff]  }
 0x4ad   :  { %4120 = vmatpush1.bf16.msra.mxu1 %v7070_v11  ;;  %v4334_v11 = vpack.c.bf16 %v4327_v8, %v4327_v8  ;;  %v7174_v8 = vld [vmem:[%s7662_s6 + $0x20] sm:$0xff]  }
 0x4ae   :  { %4121 = vmatprep.subr.bf16.mxu1 %v7075_v12  ;;  %v7135_v12 = vld [vmem:[#allocation6 + $0x180] sm:$0xff]  }
 0x4b1   :  { %4122 = vmatpush1.bf16.msra.mxu1 %v7073_v13  ;;  %v7136_v13 = vld [vmem:[#allocation6 + $0x1c8] sm:$0xff]  }
 0x4b2   :  { %4123 = vmatprep.subr.bf16.mxu1 %v7078_v14  ;;  %v7137_v14 = vld [vmem:[#allocation6 + $0x188] sm:$0xff]  }
 0x4b5   :  { %4124 = vmatpush1.bf16.msra.mxu1 %v7076_v15  ;;  %v7138_v15 = vld [vmem:[#allocation6 + $0x1d0] sm:$0xff]  }
 0x4b6   :  { %4125 = vmatprep.subr.bf16.mxu1 %v7081_v17  ;;  %v7139_v17 = vld [vmem:[#allocation6 + $0x190] sm:$0xff]  }
 0x4b9   :  { %4126 = vmatpush1.bf16.msra.mxu1 %v7079_v20  ;;  %v7142_v20 = vld [vmem:[#allocation6 + $0x1d8] sm:$0xff]  }
 0x4ba   :  { %4127 = vmatprep.subr.bf16.mxu1 %v7084_v21  ;;  %v7143_v21 = vld [vmem:[#allocation6 + $0x198] sm:$0xff]  }
 0x4bd   :  { %4128 = vmatpush1.bf16.msra.mxu1 %v7082_v22  ;;  %v7146_v22 = vld [vmem:[#allocation6 + $0x1e0] sm:$0xff]  }
 0x4be   :  { %4129 = vmatprep.subr.bf16.mxu1 %v7087_v24  ;;  %v7147_v24 = vld [vmem:[#allocation6 + $0x1a0] sm:$0xff]  }
 0x4c1   :  { %4130 = vmatpush1.bf16.msra.mxu1 %v7085_v9  ;;  %v7150_v9 = vld [vmem:[#allocation6 + $0x1e8] sm:$0xff]  }
 0x4c2   :  { %4131 = vmatprep.subr.bf16.mxu1 %v7090_v28  ;;  %v7151_v28 = vld [vmem:[#allocation6 + $0x1a8] sm:$0xff]  }
 0x4c5   :  { %4132 = vmatpush1.bf16.msra.mxu1 %v7088_v29  ;;  %v7152_v29 = vld [vmem:[#allocation6 + $0x158] sm:$0xff]  }
 0x4c6   :  { %4133 = vmatprep.subr.bf16.mxu1 %v7093_v23  ;;  %v7153_v23 = vld [vmem:[#allocation6 + $0x118] sm:$0xff]  }
 0x4c9   :  { %4134 = vmatpush1.bf16.msra.mxu1 %v7091_v30  ;;  %v7154_v30 = vld [vmem:[#allocation6 + $0x1f0] sm:$0xff]  }
 0x4ca   :  { %4135 = vmatprep.subr.bf16.mxu1 %v7096_v31  ;;  %v7155_v31 = vld [vmem:[#allocation6 + $0x1b0] sm:$0xff]  }
 0x4cd   :  { %4136 = vmatpush1.bf16.msra.mxu1 %v7094_v32  ;;  %v7156_v32 = vld [vmem:[#allocation6 + $0x160] sm:$0xff]  }
 0x4ce   :  { %4137 = vmatprep.subr.bf16.mxu1 %v7099_v33  ;;  %v7157_v33 = vld [vmem:[#allocation6 + $0x120] sm:$0xff]  }
 0x4d1   :  { %4138 = vmatpush1.bf16.msra.mxu1 %v7097_v35  ;;  %v7158_v35 = vld [vmem:[#allocation6 + $0x1f8] sm:$0xff]  }
 0x4d2   :  { %4139 = vmatprep.subr.bf16.mxu1 %v7102_v61  ;;  %v7159_v61 = vld [vmem:[#allocation6 + $0x1b8] sm:$0xff]  }
 0x4d5   :  { %4140 = vmatpush1.bf16.msra.mxu1 %v7100_v36  ;;  %v7160_v36 = vld [vmem:[#allocation6 + $0x168] sm:$0xff]  }
 0x4d6   :  { %4141 = vmatprep.subr.bf16.mxu1 %v7105_v38  ;;  %v7162_v38 = vld [vmem:[#allocation6 + $0x170] sm:$0xff]  }
 0x4d9   :  { %4142 = vmatpush1.bf16.msra.mxu1 %v7103_v39  ;;  %v7163_v39 = vld [vmem:[#allocation6 + $0x130] sm:$0xff]  }
 0x4da   :  { %4143 = vmatprep.subr.bf16.mxu1 %v7108_v41  ;;  %v7165_v41 = vld [vmem:[#allocation6 + $0x138] sm:$0xff]  }
 0x4dd   :  { %4144 = vmatpush1.bf16.msra.mxu1 %v7106_v26  ;;  %v7326_v26 = vmov 0.0  }
 0x4de   :  { %6072 = vmatprep.subr.bf16.mxu1 %v7140_v27 }
 0x4e0   :  { %4146 = vmatmul.mubr.bf16.vlgmr.msra.gmra.mrb[12].mxu1 %v3737_v25  ;;  %v2548_v25 = vld [vmem:[#allocation7 + $0x4] ss:$0 sm:$0xff] }
 0x4e1   :  { %6073 = vmatpush3.bf16.msra.mxu1 %v7141_v47  ;;  %v2680_v27 = vadd.f32 %v7514_v34, %v2548_v25 }
 0x4e2   :  { %6074 = vmatprep.subr.bf16.mxu1 %v7144_v49 }
 0x4e3   :  { %v4628_v53 = vpack.c.bf16 %v2680_v27, %v2680_v27  ;;  %v7195_v27 = vld [vmem:[%s7662_s6 + $0x68] sm:$0xff]  }
 0x4e5   :  { %6075 = vmatpush3.bf16.msra.mxu1 %v7145_v50 }
 0x4e6   :  { %6076 = vmatprep.subr.bf16.mxu1 %v7148_v51  ;;  %v4336_v51 = vld [vmem:[#allocation7 + $0x6] ss:$8 sm:$0x3] }
 0x4e9   :  { %6077 = vmatpush3.bf16.msra.mxu1 %v7149_v52  ;;  %v7170_v52 = vld [vmem:[#allocation6 + $0x200] sm:$0xff]  }
 0x4ea   :  { %6078 = vmatprep.subr.bf16.mxu1 %v7152_v29  ;;  %v4630_v29 = vld [vmem:[#allocation7 + $0x20] ss:$0 sm:$0xff] }
 0x4ed   :  { %6079 = vmatpush3.bf16.msra.mxu1 %v7153_v23 }
 0x4ee   :  { %6080 = vmatprep.subr.bf16.mxu1 %v7156_v32 }
 0x4f1   :  { %6081 = vmatpush3.bf16.msra.mxu1 %v7157_v33 }
 0x4f2   :  { %6082 = vmatprep.subr.bf16.mxu1 %v7160_v36 }
 0x4f5   :  { %6083 = vmatpush3.bf16.msra.mxu1 %v7161_v37  ;;  %v7191_v37 = vld [vmem:[%s7662_s6 + $0x48] sm:$0xff]  }
 0x4f6   :  { %6084 = vmatprep.subr.bf16.mxu1 %v7162_v38 }
 0x4f9   :  { %6085 = vmatpush3.bf16.msra.mxu1 %v7163_v39  ;;  %v4459_v39 = vld [vmem:[#allocation7 + $0x7] ss:$0 sm:$0xff] }
 0x4fa   :  { %6086 = vmatprep.subr.bf16.mxu1 %v7164_v40 }
 0x4fd   :  { %6087 = vmatpush3.bf16.msra.mxu1 %v7165_v41 }
 0x4fe   :  { %6174 = vmatprep.subr.bf16.mxu1 %v7326_v26 }
 0x5b3   :  { %v4147_v56 = vpop.f32.mrb[12].mxu1 }
 0x5b4   :  { %v6264_v57 = vadd.f32 %v4147_v56, %v3745_v54  ;;  %v4149_v59 = vpop.f32.mrb[13].mxu1  ;;  %v7172_v54 = vld [vmem:[#allocation6 + $0x248] sm:$0xff]   ;;  %v4345_v56 = vrot.slane %v4336_v51, %v7467_v18  ;;  %v7166_v18 = vld [vmem:[%s7662_s6] sm:$0xff]  }
 0x5b5   :  { %v6265_v60 = vadd.f32 %v4149_v59, %v3749_v55  ;;  %v4151_v62 = vpop.f32.mrb[14].mxu1  ;;  %v4341_v55 = vrot.slane %v4336_v51, %v7462_v16  ;;  %v7175_v59 = vld [vmem:[#allocation6 + $0x250] sm:$0xff]  }
 0x5b6   :  { %v4154_v63 = vmax.f32 %v6264_v57, 0.0  ;;  %v4152_v0 = vpop.f32.mrb[15].mxu1  ;;  %v7173_v57 = vld [vmem:[#allocation6 + $0x208] sm:$0xff]  }
 0x5b7   :  { %v4155_v58 = vmax.f32 %v6265_v60, 0.0 }
 0x5b8   :  { %v4188_v4 = vpack.c.bf16 %v4154_v63, %v4154_v63 }
 0x5b9   :  { %v4189_v1 = vpack.c.bf16 %v4155_v58, %v4155_v58  ;;  %v7176_v58 = vld [vmem:[#allocation6 + $0x210] sm:$0xff]  }
 0x5bb   :  { %4319 = vmatprep.mubr.bf16.mxu0 %v4189_v1 }
 0x5bc   :  { %4320 = vmatmul.mubr.bf16.vlgmr.msra.gmra.mrb[12].mxu0 %v4188_v4  ;;  %v7178_v4 = vld [vmem:[#allocation6 + $0x258] sm:$0xff]  }
 0x5bd   :  { %4383 = vmatpush1.bf16.msra.mxu0 %v7125_v3  ;;  %4414 = vmatprep.mubr.bf16.mxu0 %v7325_v48  ;;  %v7167_v48 = vld [vmem:[%s7662_s6 + $0x8] sm:$0xff]  }
 0x5be   :  { %4384 = vmatprep.subr.bf16.mxu0 %v7130_v5 }
 0x5c1   :  { %4385 = vmatpush1.bf16.msra.mxu0 %v7128_v19 }
 0x5c2   :  { %4386 = vmatprep.subr.bf16.mxu0 %v7133_v6  ;;  %v7168_v6 = vld [vmem:[%s7662_s6 + $0x10] sm:$0xff]  }
 0x5c5   :  { %4387 = vmatpush1.bf16.msra.mxu0 %v7131_v7  ;;  %v7171_v7 = vld [vmem:[%s7662_s6 + $0x18] sm:$0xff]  }
 0x5c6   :  { %6094 = vmatprep.subr.bf16.mxu0 %v7134_v10  ;;  %v7177_v10 = vld [vmem:[%s7662_s6 + $0x28] sm:$0xff]  }
 0x5c8   :  { %5946 = vmatmul.mubr.msk.bf16.vlgmr.msra.gmra.mrb[16].mxu0 %vm4378_vm0, %v4334_v11  ;;  %v7179_v11 = vld [vmem:[#allocation6 + $0x218] sm:$0xff]  }
 0x5c9   :  { %6095 = vmatpush3.bf16.msra.mxu0 %v7135_v12  ;;  %v7180_v12 = vld [vmem:[%s7662_s6 + $0x30] sm:$0xff]  }
 0x5ca   :  { %6096 = vmatprep.subr.bf16.mxu0 %v7136_v13  ;;  %v7181_v13 = vld [vmem:[#allocation6 + $0x260] sm:$0xff]  }
 0x5cd   :  { %6097 = vmatpush3.bf16.msra.mxu0 %v7137_v14  ;;  %v7182_v14 = vld [vmem:[#allocation6 + $0x220] sm:$0xff]  }
 0x5ce   :  { %6098 = vmatprep.subr.bf16.mxu0 %v7138_v15  ;;  %v7183_v15 = vld [vmem:[%s7662_s6 + $0x38] sm:$0xff]  }
 0x5d1   :  { %6099 = vmatpush3.bf16.msra.mxu0 %v7139_v17  ;;  %v7184_v17 = vld [vmem:[#allocation6 + $0x268] sm:$0xff]  }
 0x5d2   :  { %6100 = vmatprep.subr.bf16.mxu0 %v7142_v20  ;;  %v7185_v20 = vld [vmem:[#allocation6 + $0x228] sm:$0xff]  }
 0x5d5   :  { %6101 = vmatpush3.bf16.msra.mxu0 %v7143_v21  ;;  %v7186_v21 = vld [vmem:[#allocation6 + $0x270] sm:$0xff]  }
 0x5d6   :  { %6102 = vmatprep.subr.bf16.mxu0 %v7146_v22  ;;  %v7187_v22 = vld [vmem:[#allocation6 + $0x230] sm:$0xff]  }
 0x5d9   :  { %6103 = vmatpush3.bf16.msra.mxu0 %v7147_v24  ;;  %v7188_v24 = vld [vmem:[#allocation6 + $0x278] sm:$0xff]  }
 0x5da   :  { %6104 = vmatprep.subr.bf16.mxu0 %v7150_v9  ;;  %v7189_v9 = vld [vmem:[#allocation6 + $0x238] sm:$0xff]  }
 0x5dd   :  { %6105 = vmatpush3.bf16.msra.mxu0 %v7151_v28 }
 0x5de   :  { %6106 = vmatprep.subr.bf16.mxu0 %v7154_v30 }
 0x5e1   :  { %6107 = vmatpush3.bf16.msra.mxu0 %v7155_v31 }
 0x5e2   :  { %6108 = vmatprep.subr.bf16.mxu0 %v7158_v35 }
 0x5e5   :  { %6109 = vmatpush3.bf16.msra.mxu0 %v7159_v61  ;;  %v7190_v61 = vld [vmem:[%s7662_s6 + $0x40] sm:$0xff]  }
 0x5e6   :  { %6125 = vmatprep.subr.bf16.mxu0 %v7169_v42 }
 0x68f   :  { %v6066_v44 = vpop.f32.mrb[12].mxu0 }
 0x690   :  { %v6067_v43 = vpop.f32.mrb[13].mxu0 }
 0x691   :  { %v6068_v2 = vadd.f32 %v6067_v43, %v6066_v44  ;;  %v6069_v46 = vpop.f32.mrb[14].mxu0  ;;  %v7192_v44 = vld [vmem:[%s7662_s6 + $0x50] sm:$0xff]  }
 0x692   :  { %v6070_v47 = vpop.f32.mrb[15].mxu0  ;;  %v7194_v46 = vld [vmem:[%s7662_s6 + $0x60] sm:$0xff]  }
 0x693   :  { %v4322_v49 = vadd.f32 %v6068_v2, %v4190_v45  ;;  %v7193_v2 = vld [vmem:[%s7662_s6 + $0x58] sm:$0xff]   ;;  %v7196_v47 = vld [vmem:[%s7662_s6 + $0x70] sm:$0xff]  }
 0x695   :  { %v4629_v50 = vpack.c.bf16 %v4322_v49, %v4322_v49  ;;  %v7197_v49 = vld [vmem:[%s7662_s6 + $0x78] sm:$0xff]  }
 0x697   :  { %4759 = vmatprep.mubr.bf16.mxu0 %v4629_v50 }
 0x698   :  { %4760 = vmatmul.mubr.bf16.vlgmr.msra.gmra.mrb[20].mxu0 %v4628_v53 }
 0x699   :  { %5037 = vmatprep.mubr.bf16.mxu0 %v4629_v50  ;;  %6126 = vmatpush3.bf16.msra.mxu0 %v7170_v52 }
 0x69a   :  { %6127 = vmatprep.subr.bf16.mxu0 %v7172_v54 }
 0x69b   :  { %v4416_v60 = vpop.f32.mrb[16].mxu0 }
 0x69c   :  { %v4417_v34 = vadd.f32 %v4416_v60, %v4341_v55  ;;  %v4418_v62 = vpop.f32.mrb[17].mxu0  ;;  %v4908_v55 = vld [vmem:[#allocation7 + $0x22] ss:$0 sm:$0xff] }
 0x69d   :  { %v4419_v63 = vadd.f32 %v4418_v62, %v4345_v56  ;;  %v4420_v0 = vpop.f32.mrb[18].mxu0  ;;  %6128 = vmatpush3.bf16.msra.mxu0 %v7173_v57 }
 0x69e   :  { %v4423_v1 = vmax.f32 %v4417_v34, 0.0  ;;  %v4421_v3 = vpop.f32.mrb[19].mxu0  ;;  %6129 = vmatprep.subr.bf16.mxu0 %v7175_v59  ;;  %v7198_v0 = vld [vmem:[#allocation6 + $0x280] sm:$0xff]  }
 0x69f   :  { %v4424_v5 = vmax.f32 %v4419_v63, 0.0  ;;  %v7201_v3 = vld [vmem:[#allocation6 + $0x298] sm:$0xff]  }
 0x6a0   :  { %v4457_v19 = vpack.c.bf16 %v4423_v1, %v4423_v1  ;;  %v7200_v1 = vld [vmem:[#allocation6 + $0x290] sm:$0xff]  }
 0x6a1   :  { %v4458_v16 = vpack.c.bf16 %v4424_v5, %v4424_v5  ;;  %6130 = vmatpush3.bf16.msra.mxu0 %v7176_v58  ;;  %v7199_v58 = vld [vmem:[#allocation6 + $0x288] sm:$0xff]  }
 0x6a2   :  { %6131 = vmatprep.subr.bf16.mxu0 %v7178_v4  ;;  %v7202_v4 = vld [vmem:[#allocation6 + $0x2a0] sm:$0xff]   ;;  %v7203_v5 = vld [vmem:[#allocation6 + $0x2a8] sm:$0xff]  }
 0x6a3   :  { %4588 = vmatprep.mubr.bf16.mxu1 %v4458_v16  ;;  %v7204_v16 = vld [vmem:[#allocation6 + $0x2b0] sm:$0xff]  }
 0x6a4   :  { %4589 = vmatmul.mubr.bf16.vlgmr.msra.gmra.mrb[16].mxu1 %v4457_v19  ;;  %v7206_v19 = vld [vmem:[%s7662_s6 + $0x80] sm:$0xff]  }
 0x6a5   :  { %6175 = vmatpush3.bf16.msra.mxu1 %v7166_v18  ;;  %6132 = vmatpush3.bf16.msra.mxu0 %v7179_v11  ;;  %v7205_v18 = vld [vmem:[#allocation6 + $0x2b8] sm:$0xff]   ;;  %v7208_v11 = vld [vmem:[%s7662_s6 + $0x90] sm:$0xff]  }
 0x6a6   :  { %6176 = vmatprep.subr.bf16.mxu1 %v7326_v26  ;;  %6133 = vmatprep.subr.bf16.mxu0 %v7181_v13 }
 0x6a7   :  { %6190 = vmatprep.mubr.msk.bf16.mxu1 %vm7327_vm1, %v7326_v26 }
 0x6a9   :  { %6177 = vmatpush3.bf16.msra.mxu1 %v7167_v48  ;;  %6134 = vmatpush3.bf16.msra.mxu0 %v7182_v14  ;;  %v7207_v48 = vld [vmem:[%s7662_s6 + $0x88] sm:$0xff]  }
 0x6aa   :  { %6178 = vmatprep.subr.bf16.mxu1 %v7326_v26  ;;  %6135 = vmatprep.subr.bf16.mxu0 %v7184_v17  ;;  %v7210_v17 = vld [vmem:[%s7662_s6 + $0xa0] sm:$0xff]  }
 0x6ad   :  { %6179 = vmatpush3.bf16.msra.mxu1 %v7168_v6  ;;  %6136 = vmatpush3.bf16.msra.mxu0 %v7185_v20  ;;  %v5063_v6 = vld [vmem:[#allocation7 + $0x23] ss:$0 sm:$0xff]  ;;  %v7211_v20 = vld [vmem:[%s7662_s6 + $0xa8] sm:$0xff]  }
 0x6ae   :  { %6180 = vmatprep.subr.bf16.mxu1 %v7326_v26  ;;  %6137 = vmatprep.subr.bf16.mxu0 %v7186_v21  ;;  %v4785_v21 = vld [vmem:[#allocation7 + $0x21] ss:$0 sm:$0xff] }
 0x6b1   :  { %6181 = vmatpush3.bf16.msra.mxu1 %v7171_v7  ;;  %6138 = vmatpush3.bf16.msra.mxu0 %v7187_v22 }
 0x6b2   :  { %6182 = vmatprep.subr.bf16.mxu1 %v7326_v26  ;;  %6139 = vmatprep.subr.bf16.mxu0 %v7188_v24 }
 0x6b5   :  { %6183 = vmatpush3.bf16.msra.mxu1 %v7174_v8  ;;  %6140 = vmatpush3.bf16.msra.mxu0 %v7189_v9 }
 0x6b6   :  { %6184 = vmatprep.subr.bf16.mxu1 %v7326_v26  ;;  %6214 = vmatprep.subr.bf16.mxu0 %v7326_v26 }
 0x6b9   :  { %6185 = vmatpush3.bf16.msra.mxu1 %v7177_v10 }
 0x6ba   :  { %6186 = vmatprep.subr.bf16.mxu1 %v7326_v26 }
 0x6bd   :  { %6187 = vmatpush3.bf16.msra.mxu1 %v7180_v12 }
 0x6be   :  { %6188 = vmatprep.subr.bf16.mxu1 %v7326_v26 }
 0x6c1   :  { %6189 = vmatpush3.bf16.msra.mxu1 %v7183_v15  ;;  %v7209_v15 = vld [vmem:[%s7662_s6 + $0x98] sm:$0xff]  }
 0x6c2   :  { %6194 = vmatprep.subr.bf16.mxu1 %v7326_v26 }
 0x76b   :  { %v6110_v28 = vpop.f32.mrb[20].mxu0 }
 0x76c   :  { %v6111_v23 = vpop.f32.mrb[21].mxu0 }
 0x76d   :  { %v6112_v30 = vadd.f32 %v6111_v23, %v6110_v28  ;;  %v6113_v31 = vpop.f32.mrb[22].mxu0  ;;  %v7212_v23 = vld [vmem:[%s7662_s6 + $0xb0] sm:$0xff]  }
 0x76e   :  { %v6114_v32 = vpop.f32.mrb[23].mxu0  ;;  %v5176_v31 = vld [vmem:[#allocation7 + $0x24] ss:$0 sm:$0xff] }
 0x76f   :  { %v4762_v33 = vadd.f32 %v6112_v30, %v4630_v29  ;;  %v7213_v30 = vld [vmem:[%s7662_s6 + $0xb8] sm:$0xff]  }
 0x771   :  { %v4767_v35 = vmax.f32 %v4762_v33, 0.0 }
 0x773   :  { %v4784_v36 = vpack.c.bf16 %v4767_v35, %v4767_v35 }
 0x775   :  { %6191 = vmatmul.mubr.bf16.vlgmr.msra.gmra.mrb[20].mxu1 %v4784_v36 }
 0x776   :  { %6195 = vmatpush3.bf16.msra.mxu1 %v7190_v61  ;;  %6210 = vmatprep.mubr.msk.bf16.mxu1 %vm7327_vm1, %v7326_v26 }
 0x777   :  { %v6088_v38 = vpop.f32.mrb[16].mxu1  ;;  %6196 = vmatprep.subr.bf16.mxu1 %v7326_v26 }
 0x778   :  { %v6089_v40 = vpop.f32.mrb[17].mxu1 }
 0x779   :  { %v6090_v41 = vadd.f32 %v6089_v40, %v6088_v38  ;;  %v6091_v42 = vpop.f32.mrb[18].mxu1 }
 0x77a   :  { %v6092_v25 = vpop.f32.mrb[19].mxu1  ;;  %6197 = vmatpush3.bf16.msra.mxu1 %v7191_v37 }
 0x77b   :  { %v4591_v45 = vadd.f32 %v6090_v41, %v4459_v39  ;;  %6198 = vmatprep.subr.bf16.mxu1 %v7326_v26  ;;  %v5283_v39 = vld [vmem:[#allocation7 + $0x25] ss:$0 sm:$0xff] }
 0x77d   :  { %v4907_v43 = vpack.c.bf16 %v4591_v45, %v4591_v45 }
 0x77e   :  { %6199 = vmatpush3.bf16.msra.mxu1 %v7192_v44 }
 0x77f   :  { %5038 = vmatmul.mubr.bf16.vlgmr.msra.gmra.mrb[24].mxu0 %v4907_v43  ;;  %6200 = vmatprep.subr.bf16.mxu1 %v7326_v26 }
 0x780   :  { %6230 = vmatprep.mubr.msk.bf16.mxu0 %vm7327_vm1, %v7326_v26  ;;  %6215 = vmatpush3.bf16.msra.mxu0 %v7198_v0 }
 0x781   :  { %6216 = vmatprep.subr.bf16.mxu0 %v7326_v26 }
 0x782   :  { %6201 = vmatpush3.bf16.msra.mxu1 %v7193_v2 }
 0x783   :  { %6202 = vmatprep.subr.bf16.mxu1 %v7326_v26 }
 0x784   :  { %6217 = vmatpush3.bf16.msra.mxu0 %v7199_v58 }
 0x785   :  { %6218 = vmatprep.subr.bf16.mxu0 %v7326_v26 }
 0x786   :  { %6203 = vmatpush3.bf16.msra.mxu1 %v7194_v46  ;;  %v5379_v46 = vld [vmem:[#allocation7 + $0x27] ss:$0 sm:$0xff] }
 0x787   :  { %6204 = vmatprep.subr.bf16.mxu1 %v7326_v26 }
 0x788   :  { %6219 = vmatpush3.bf16.msra.mxu0 %v7200_v1 }
 0x789   :  { %6220 = vmatprep.subr.bf16.mxu0 %v7326_v26 }
 0x78a   :  { %6205 = vmatpush3.bf16.msra.mxu1 %v7195_v27 }
 0x78b   :  { %6206 = vmatprep.subr.bf16.mxu1 %v7326_v26 }
 0x78c   :  { %6221 = vmatpush3.bf16.msra.mxu0 %v7201_v3 }
 0x78d   :  { %6222 = vmatprep.subr.bf16.mxu0 %v7326_v26 }
 0x78e   :  { %6207 = vmatpush3.bf16.msra.mxu1 %v7196_v47 }
 0x78f   :  { %6208 = vmatprep.subr.bf16.mxu1 %v7326_v26 }
 0x790   :  { %6223 = vmatpush3.bf16.msra.mxu0 %v7202_v4 }
 0x791   :  { %6224 = vmatprep.subr.bf16.mxu0 %v7326_v26 }
 0x792   :  { %6209 = vmatpush3.bf16.msra.mxu1 %v7197_v49 }
 0x793   :  { %6234 = vmatprep.subr.bf16.mxu1 %v7326_v26 }
 0x794   :  { %6225 = vmatpush3.bf16.msra.mxu0 %v7203_v5 }
 0x795   :  { %6226 = vmatprep.subr.bf16.mxu0 %v7326_v26 }
 0x798   :  { %6227 = vmatpush3.bf16.msra.mxu0 %v7204_v16 }
 0x799   :  { %6228 = vmatprep.subr.bf16.mxu0 %v7326_v26 }
 0x79c   :  { %6229 = vmatpush3.bf16.msra.mxu0 %v7205_v18 }
 0x848   :  { %v7609_v50 = vpop.f32.mrb[20].mxu1 }
 0x849   :  { %v6192_v51 = vpop.f32.mrb[21].mxu1  ;;  %v4869_v22 = vadd.f32 %v7609_v50, %v4785_v21 }
 0x84a   :  { %v4871_v52 = vpop.f32.mrb[22].mxu1 }
 0x84b   :  { %v6193_v53 = vpop.f32.mrb[23].mxu1  ;;  %v4874_v24 = vmax.f32 %v4869_v22, 0.0 }
 0x852   :  { %v6141_v54 = vpop.f32.mrb[24].mxu0 }
 0x853   :  { %v6142_v56 = vpop.f32.mrb[25].mxu0 }
 0x854   :  { %v6143_v57 = vadd.f32 %v6142_v56, %v6141_v54  ;;  %v6144_v59 = vpop.f32.mrb[26].mxu0 }
 0x855   :  { %v6145_v60 = vpop.f32.mrb[27].mxu0 }
 0x856   :  { %v5040_v34 = vadd.f32 %v6143_v57, %v4908_v55 }
 0x858   :  { %v5045_v62 = vmax.f32 %v5040_v34, 0.0 }
 0x85a   :  { %v5062_v63 = vpack.c.bf16 %v5045_v62, %v5045_v62 }
 0x85c   :  { %6211 = vmatmul.mubr.bf16.vlgmr.msra.gmra.mrb[24].mxu1 %v5062_v63 }
 0x85d   :  { %6250 = vmatprep.mubr.msk.bf16.mxu1 %vm7327_vm1, %v7326_v26  ;;  %6235 = vmatpush3.bf16.msra.mxu1 %v7206_v19 }
 0x85e   :  { %6236 = vmatprep.subr.bf16.mxu1 %v7326_v26 }
 0x861   :  { %6237 = vmatpush3.bf16.msra.mxu1 %v7207_v48 }
 0x862   :  { %6238 = vmatprep.subr.bf16.mxu1 %v7326_v26 }
 0x865   :  { %6239 = vmatpush3.bf16.msra.mxu1 %v7208_v11 }
 0x866   :  { %6240 = vmatprep.subr.bf16.mxu1 %v7326_v26 }
 0x869   :  { %6241 = vmatpush3.bf16.msra.mxu1 %v7209_v15 }
 0x86a   :  { %6242 = vmatprep.subr.bf16.mxu1 %v7326_v26 }
 0x86d   :  { %6243 = vmatpush3.bf16.msra.mxu1 %v7210_v17 }
 0x86e   :  { %6244 = vmatprep.subr.bf16.mxu1 %v7326_v26 }
 0x871   :  { %6245 = vmatpush3.bf16.msra.mxu1 %v7211_v20 }
 0x872   :  { %6246 = vmatprep.subr.bf16.mxu1 %v7326_v26 }
 0x875   :  { %6247 = vmatpush3.bf16.msra.mxu1 %v7212_v23 }
 0x876   :  { %6248 = vmatprep.subr.bf16.mxu1 %v7326_v26  ;;  %v5373_v26 = vld [vmem:[#allocation7 + $0x26] ss:$0 sm:$0xff] }
 0x879   :  { %6249 = vmatpush3.bf16.msra.mxu1 %v7213_v30 }
 0x92f   :  { %v5146_v7 = vpop.f32.mrb[24].mxu1 }
 0x930   :  { %v6212_v8 = vpop.f32.mrb[25].mxu1  ;;  %v5147_v10 = vadd.f32 %v5146_v7, %v5063_v6 }
 0x931   :  { %v5149_v12 = vpop.f32.mrb[26].mxu1 }
 0x932   :  { %v6213_v13 = vpop.f32.mrb[27].mxu1  ;;  %v5152_v14 = vmax.f32 %v5147_v10, 0.0 }
 0x934   :  { %5154 = vrot.lane.b32.xlu0 %v5152_v14, %s7319_s3 }
 0x9a6   :  { %v5155_v9 = vpop.permute.xlu0 %5154 }
 0x9a7   :  { %v5158_v28 = vsel %vm5157_vm2, %v4874_v24, %v5155_v9 }
 0x9a8   :  { %v5175_v29 = vpack.c.bf16 %v5158_v28, %v5158_v28 }
 0x9aa   :  { %6231 = vmatmul.mubr.bf16.vlgmr.msra.gmra.mrb[28].mxu0 %v5175_v29 }
 0xa7d   :  { %v5259_v32 = vpop.f32.mrb[28].mxu0 }
 0xa7e   :  { %v5260_v33 = vadd.f32 %v5259_v32, %v5176_v31  ;;  %v6232_v35 = vpop.f32.mrb[29].mxu0 }
 0xa7f   :  { %v5262_v61 = vpop.f32.mrb[30].mxu0 }
 0xa80   :  { %v5265_v36 = vmax.f32 %v5260_v33, 0.0  ;;  %v6233_v37 = vpop.f32.mrb[31].mxu0 }
 0xa82   :  { %v5282_v38 = vpack.c.bf16 %v5265_v36, %v5265_v36 }
 0xa84   :  { %6251 = vmatmul.mubr.bf16.vlgmr.msra.gmra.mrb[28].mxu1 %v5282_v38 }
 0xb57   :  { %v5366_v40 = vpop.f32.mrb[28].mxu1 }
 0xb58   :  { %v5367_v41 = vadd.f32 %v5366_v40, %v5283_v39  ;;  %v6252_v42 = vpop.f32.mrb[29].mxu1 }
 0xb59   :  { %v5369_v25 = vpop.f32.mrb[30].mxu1 }
 0xb5a   :  { %v5372_v44 = vmax.f32 %v5367_v41, 0.0  ;;  %v6253_v45 = vpop.f32.mrb[31].mxu1 }
 0xb5c   :  { %v5374_v43 = vmul.f32 %v5373_v26, %v5372_v44 }
 0xb5e   :  { %v5376_v2 = vsel %vm5375_vm3, %v5374_v43, 0.0 }
 0xb5f   :  { %5377 = vadd.xlane.f32.xlu0 %v5376_v2 }
 0xbec   :  { %v5378_v27 = vpop.xlane.xlu0 %5377 }
 0xbed   :  { %v5380_v47 = vadd.f32 %v5379_v46, %v5378_v27 }
 0xbef   :  { %v6027_v49 = vmul.f32 -1.442695, %v5380_v47 }
 0xbf1   :  { %7214 = vpow2.f32 %v6027_v49 }
 0xbfb   :  { %v7215_v50 = vpop.eup %7214 }
 0xbfc   :  { %v5384_v51 = vadd.f32 1.0, %v7215_v50 }
 0xbfe   :  { %7216 = vrcp.f32 %v5384_v51 }
 0xc08   :  { %v7217_v52 = vpop.eup %7216 }
 0xc09   :  { %5388 = vst.msk [vmem:[%s7664_s8] sm:$0x3] %vm5387_vm4, %v7217_v52 }
 0xc0a   :  { %5393 = vsyncpa [#allocation3], 1 }
 0xc0b   :  { %5394 = vsyncpa [#allocation5], 1 }
 0xc0c   :  { %5395 = vsyncpa [#allocation8], 1 }

</bundles_post_ra>
